<compile_context>
chip_gen: v5e
topology: v5e:2x2
jax: 0.10.0
libtpu: 0.0.40
codegen_flags: <defaults>
</compile_context>

<pallas_src>
import functools

import jax
import jax.numpy as jnp
import numpy as np
from jax.experimental import pallas as pl
from jax.experimental.pallas import tpu as pltpu


def _corr_kernel(x1_ref, x2_ref, mask_ref, out_ref, *, H, W, radius, C, B):
    """Whole batch in one grid step.

    x1_ref:   (B*C, H*W)  -- input1, batch+channel packed into sublanes
    x2_ref:   (B*C, H*W)  -- input2, same packing
    mask_ref: (D,   H*W)  -- precomputed 0/1 zero-padding validity mask
    out_ref:  (B, D, H*W) -- correlation for all D = (2r+1)^2 displacements
    """
    P = 2 * radius + 1
    D = P * P
    HW = H * W
    GROUP = 4  # displacements per output slab (half-sublane-tile aligned)

    # Load once, cast once, fold the 1/C normalization into x1 (one multiply
    # total instead of one per displacement).
    x1 = x1_ref[...].astype(jnp.float32) * (1.0 / C)      # (B*C, HW)
    x2 = x2_ref[...].astype(jnp.float32)                  # (B*C, HW)

    # Statically unrolled displacement loop, processed in groups of GROUP so
    # results are retired to VMEM as multi-row slabs (fewer, wider stores) and
    # live ranges stay well under the 64-vreg file.
    for g in range(0, D, GROUP):
        n = min(GROUP, D - g)
        rows = [[] for _ in range(B)]                     # per-batch result rows
        for d in range(g, g + n):
            dy = d // P - radius
            dx = d % P - radius
            off = dy * W + dx                             # flat-index offset
            if off == 0:
                shifted = x2
            else:
                # shifted[r, p] = x2[r, (p + off) mod HW]  (XLU lane rotate)
                shifted = pltpu.roll(x2, shift=(-off) % HW, axis=1)

            prod = x1 * shifted                           # (B*C, HW), one vmul
            for b in range(B):
                # Channel reduction on the VPU/XLU (tiny K=C).
                rows[b].append(
                    jnp.sum(prod[b * C:(b + 1) * C], axis=0, keepdims=True))

        # One mask slab and one multiply per group (instead of per displacement).
        mslab = mask_ref[g:g + n, :]                      # (n, HW) constant 0/1
        for b in range(B):
            slab = rows[b][0] if n == 1 else jnp.concatenate(rows[b], axis=0)
            out_ref[b, g:g + n, :] = slab * mslab


def my_corr_wrapper(input1, input2, radius):
    """Pallas equivalent of MyCorrWrapper(radius).forward(input1, input2)."""
    B, C, H, W = input1.shape
    P = 2 * radius + 1
    D = P * P
    HW = H * W

    # Free (metadata-only) reshapes to the packed, lane-dense layout.
    x1 = input1.reshape(B * C, HW)
    x2 = input2.reshape(B * C, HW)

    # Precompute the zero-padding validity mask for every displacement
    # (compile-time constant, built on the host with numpy).
    rr = np.arange(H)[:, None]
    cc = np.arange(W)[None, :]
    masks = []
    for dy in range(-radius, radius + 1):
        for dx in range(-radius, radius + 1):
            m = ((rr + dy >= 0) & (rr + dy < H)
                 & (cc + dx >= 0) & (cc + dx < W))
            masks.append(m.reshape(-1))
    mask = jnp.asarray(np.stack(masks, axis=0).astype(np.float32))   # (D, HW)

    kernel = functools.partial(_corr_kernel, H=H, W=W, radius=radius, C=C, B=B)

    out_flat = pl.pallas_call(
        kernel,
        out_shape=jax.ShapeDtypeStruct((B, D, HW), jnp.float32),
        grid_spec=pltpu.PrefetchScalarGridSpec(
            num_scalar_prefetch=0,
            grid=(1,),                                    # single grid step
            in_specs=[
                pl.BlockSpec((B * C, HW), lambda i: (0, 0)),
                pl.BlockSpec((B * C, HW), lambda i: (0, 0)),
                pl.BlockSpec((D, HW), lambda i: (0, 0)),
            ],
            out_specs=pl.BlockSpec((B, D, HW), lambda i: (0, 0, 0)),
        ),
        compiler_params=pltpu.CompilerParams(
            dimension_semantics=("arbitrary",),
        ),
    )(x1, x2, mask)

    return out_flat.reshape(B, D, H, W)


def corr_reference(input1, input2, radius):
    """Pure-JAX reference of the spatial correlation sampler + rearrange + /C."""
    B, C, H, W = input1.shape
    P = 2 * radius + 1
    x2p = jnp.pad(input2, ((0, 0), (0, 0), (radius, radius), (radius, radius)))
    outs = []
    for dy in range(P):
        for dx in range(P):
            shifted = x2p[:, :, dy:dy + H, dx:dx + W]
            outs.append(jnp.sum(input1 * shifted, axis=1))
    return jnp.stack(outs, axis=1) / C


if __name__ == "__main__":
    radius = 3                      # search_range -> patch_size = 7, D = 49
    B, C, H, W = 2, 4, 16, 16

    key = jax.random.PRNGKey(0)
    k1, k2 = jax.random.split(key)
    input1 = jax.random.normal(k1, (B, C, H, W), dtype=jnp.float32)
    input2 = jax.random.normal(k2, (B, C, H, W), dtype=jnp.float32)

    out = my_corr_wrapper(input1, input2, radius)
    out = jax.block_until_ready(out)

    ref = jax.block_until_ready(corr_reference(input1, input2, radius))
    assert out.shape == (B, (2 * radius + 1) ** 2, H, W), out.shape
    np.testing.assert_allclose(np.asarray(out), np.asarray(ref), rtol=1e-5, atol=1e-5)

    print("KERNEL_OK")
</pallas_src>

<mosaic_0001>
module attributes {stable_mosaic.version = 11 : i64} {
  func.func @_corr_kernel(%arg0: i32, %arg1: memref<8x256xf32, #tpu.memory_space<vmem>>, %arg2: memref<8x256xf32, #tpu.memory_space<vmem>>, %arg3: memref<49x256xf32, #tpu.memory_space<vmem>>, %arg4: memref<2x49x256xf32, #tpu.memory_space<vmem>>) attributes {dimension_semantics = [#tpu.dimension_semantics<arbitrary>], iteration_bounds = array<i64: 1>, scalar_prefetch = 0 : i64, scratch_operands = 0 : i64, tpu.core_type = #tpu.core_type<tc>, window_params = [{pipeline_mode = #tpu.pipeline_mode<synchronous>, transform_indices = @transform_0, window_bounds = array<i64: 8, 256>}, {pipeline_mode = #tpu.pipeline_mode<synchronous>, transform_indices = @transform_1, window_bounds = array<i64: 8, 256>}, {pipeline_mode = #tpu.pipeline_mode<synchronous>, transform_indices = @transform_2, window_bounds = array<i64: 49, 256>}, {pipeline_mode = #tpu.pipeline_mode<synchronous>, transform_indices = @transform_3, window_bounds = array<i64: 2, 49, 256>}]} {
    %c0 = arith.constant 0 : index
    %c0_0 = arith.constant 0 : index
    %0 = vector.load %arg1[%c0, %c0_0] : memref<8x256xf32, #tpu.memory_space<vmem>>, vector<8x256xf32>
    %cst = arith.constant 2.500000e-01 : f32
    %1 = vector.broadcast %cst : f32 to vector<8x256xf32>
    %2 = arith.mulf %0, %1 : vector<8x256xf32>
    %c0_1 = arith.constant 0 : index
    %c0_2 = arith.constant 0 : index
    %3 = vector.load %arg2[%c0_1, %c0_2] : memref<8x256xf32, #tpu.memory_space<vmem>>, vector<8x256xf32>
    %c51_i32 = arith.constant 51 : i32
    %4 = tpu.dynamic_rotate %3 by %c51_i32 dim 1 : vector<8x256xf32>, i32 -> vector<8x256xf32>
    %5 = arith.mulf %2, %4 : vector<8x256xf32>
    %6 = vector.extract_strided_slice %5 {offsets = [0, 0], sizes = [4, 256], strides = [1, 1]} : vector<8x256xf32> to vector<4x256xf32>
    %cst_3 = arith.constant dense<0.000000e+00> : vector<256xf32>
    %7 = vector.multi_reduction <add>, %6, %cst_3 [0] : vector<4x256xf32> to vector<256xf32>
    %8 = vector.shape_cast %7 : vector<256xf32> to vector<1x256xf32>
    %9 = vector.extract_strided_slice %5 {offsets = [4, 0], sizes = [4, 256], strides = [1, 1]} : vector<8x256xf32> to vector<4x256xf32>
    %cst_4 = arith.constant dense<0.000000e+00> : vector<256xf32>
    %10 = vector.multi_reduction <add>, %9, %cst_4 [0] : vector<4x256xf32> to vector<256xf32>
    %11 = vector.shape_cast %10 : vector<256xf32> to vector<1x256xf32>
    %c50_i32 = arith.constant 50 : i32
    %12 = tpu.dynamic_rotate %3 by %c50_i32 dim 1 : vector<8x256xf32>, i32 -> vector<8x256xf32>
    %13 = arith.mulf %2, %12 : vector<8x256xf32>
    %14 = vector.extract_strided_slice %13 {offsets = [0, 0], sizes = [4, 256], strides = [1, 1]} : vector<8x256xf32> to vector<4x256xf32>
    %cst_5 = arith.constant dense<0.000000e+00> : vector<256xf32>
    %15 = vector.multi_reduction <add>, %14, %cst_5 [0] : vector<4x256xf32> to vector<256xf32>
    %16 = vector.shape_cast %15 : vector<256xf32> to vector<1x256xf32>
    %17 = vector.extract_strided_slice %13 {offsets = [4, 0], sizes = [4, 256], strides = [1, 1]} : vector<8x256xf32> to vector<4x256xf32>
    %cst_6 = arith.constant dense<0.000000e+00> : vector<256xf32>
    %18 = vector.multi_reduction <add>, %17, %cst_6 [0] : vector<4x256xf32> to vector<256xf32>
    %19 = vector.shape_cast %18 : vector<256xf32> to vector<1x256xf32>
    %c49_i32 = arith.constant 49 : i32
    %20 = tpu.dynamic_rotate %3 by %c49_i32 dim 1 : vector<8x256xf32>, i32 -> vector<8x256xf32>
    %21 = arith.mulf %2, %20 : vector<8x256xf32>
    %22 = vector.extract_strided_slice %21 {offsets = [0, 0], sizes = [4, 256], strides = [1, 1]} : vector<8x256xf32> to vector<4x256xf32>
    %cst_7 = arith.constant dense<0.000000e+00> : vector<256xf32>
    %23 = vector.multi_reduction <add>, %22, %cst_7 [0] : vector<4x256xf32> to vector<256xf32>
    %24 = vector.shape_cast %23 : vector<256xf32> to vector<1x256xf32>
    %25 = vector.extract_strided_slice %21 {offsets = [4, 0], sizes = [4, 256], strides = [1, 1]} : vector<8x256xf32> to vector<4x256xf32>
    %cst_8 = arith.constant dense<0.000000e+00> : vector<256xf32>
    %26 = vector.multi_reduction <add>, %25, %cst_8 [0] : vector<4x256xf32> to vector<256xf32>
    %27 = vector.shape_cast %26 : vector<256xf32> to vector<1x256xf32>
    %c48_i32 = arith.constant 48 : i32
    %28 = tpu.dynamic_rotate %3 by %c48_i32 dim 1 : vector<8x256xf32>, i32 -> vector<8x256xf32>
    %29 = arith.mulf %2, %28 : vector<8x256xf32>
    %30 = vector.extract_strided_slice %29 {offsets = [0, 0], sizes = [4, 256], strides = [1, 1]} : vector<8x256xf32> to vector<4x256xf32>
    %cst_9 = arith.constant dense<0.000000e+00> : vector<256xf32>
    %31 = vector.multi_reduction <add>, %30, %cst_9 [0] : vector<4x256xf32> to vector<256xf32>
    %32 = vector.shape_cast %31 : vector<256xf32> to vector<1x256xf32>
    %33 = vector.extract_strided_slice %29 {offsets = [4, 0], sizes = [4, 256], strides = [1, 1]} : vector<8x256xf32> to vector<4x256xf32>
    %cst_10 = arith.constant dense<0.000000e+00> : vector<256xf32>
    %34 = vector.multi_reduction <add>, %33, %cst_10 [0] : vector<4x256xf32> to vector<256xf32>
    %35 = vector.shape_cast %34 : vector<256xf32> to vector<1x256xf32>
    %c0_11 = arith.constant 0 : index
    %c0_12 = arith.constant 0 : index
    %36 = vector.load %arg3[%c0_11, %c0_12] : memref<49x256xf32, #tpu.memory_space<vmem>>, vector<4x256xf32>
    %37 = tpu.concatenate %8, %16, %24, %32 in 0 : vector<1x256xf32>, vector<1x256xf32>, vector<1x256xf32>, vector<1x256xf32> -> vector<4x256xf32>
    %38 = arith.mulf %37, %36 : vector<4x256xf32>
    %c0_13 = arith.constant 0 : index
    %c0_14 = arith.constant 0 : index
    %c0_15 = arith.constant 0 : index
    %39 = vector.load %arg4[%c0_13, %c0_14, %c0_15] : memref<2x49x256xf32, #tpu.memory_space<vmem>>, vector<1x4x256xf32>
    %40 = vector.shape_cast %39 : vector<1x4x256xf32> to vector<4x256xf32>
    %41 = vector.shape_cast %38 : vector<4x256xf32> to vector<1x4x256xf32>
    tpu.vector_store %arg4[%c0_13, %c0_14, %c0_15], %41 {strides = array<i32>} : memref<2x49x256xf32, #tpu.memory_space<vmem>>, vector<1x4x256xf32>,
    %42 = tpu.concatenate %11, %19, %27, %35 in 0 : vector<1x256xf32>, vector<1x256xf32>, vector<1x256xf32>, vector<1x256xf32> -> vector<4x256xf32>
    %43 = arith.mulf %42, %36 : vector<4x256xf32>
    %c1 = arith.constant 1 : index
    %c0_16 = arith.constant 0 : index
    %c0_17 = arith.constant 0 : index
    %44 = vector.load %arg4[%c1, %c0_16, %c0_17] : memref<2x49x256xf32, #tpu.memory_space<vmem>>, vector<1x4x256xf32>
    %45 = vector.shape_cast %44 : vector<1x4x256xf32> to vector<4x256xf32>
    %46 = vector.shape_cast %43 : vector<4x256xf32> to vector<1x4x256xf32>
    tpu.vector_store %arg4[%c1, %c0_16, %c0_17], %46 {strides = array<i32>} : memref<2x49x256xf32, #tpu.memory_space<vmem>>, vector<1x4x256xf32>,
    %c47_i32 = arith.constant 47 : i32
    %47 = tpu.dynamic_rotate %3 by %c47_i32 dim 1 : vector<8x256xf32>, i32 -> vector<8x256xf32>
    %48 = arith.mulf %2, %47 : vector<8x256xf32>
    %49 = vector.extract_strided_slice %48 {offsets = [0, 0], sizes = [4, 256], strides = [1, 1]} : vector<8x256xf32> to vector<4x256xf32>
    %cst_18 = arith.constant dense<0.000000e+00> : vector<256xf32>
    %50 = vector.multi_reduction <add>, %49, %cst_18 [0] : vector<4x256xf32> to vector<256xf32>
    %51 = vector.shape_cast %50 : vector<256xf32> to vector<1x256xf32>
    %52 = vector.extract_strided_slice %48 {offsets = [4, 0], sizes = [4, 256], strides = [1, 1]} : vector<8x256xf32> to vector<4x256xf32>
    %cst_19 = arith.constant dense<0.000000e+00> : vector<256xf32>
    %53 = vector.multi_reduction <add>, %52, %cst_19 [0] : vector<4x256xf32> to vector<256xf32>
    %54 = vector.shape_cast %53 : vector<256xf32> to vector<1x256xf32>
    %c46_i32 = arith.constant 46 : i32
    %55 = tpu.dynamic_rotate %3 by %c46_i32 dim 1 : vector<8x256xf32>, i32 -> vector<8x256xf32>
    %56 = arith.mulf %2, %55 : vector<8x256xf32>
    %57 = vector.extract_strided_slice %56 {offsets = [0, 0], sizes = [4, 256], strides = [1, 1]} : vector<8x256xf32> to vector<4x256xf32>
    %cst_20 = arith.constant dense<0.000000e+00> : vector<256xf32>
    %58 = vector.multi_reduction <add>, %57, %cst_20 [0] : vector<4x256xf32> to vector<256xf32>
    %59 = vector.shape_cast %58 : vector<256xf32> to vector<1x256xf32>
    %60 = vector.extract_strided_slice %56 {offsets = [4, 0], sizes = [4, 256], strides = [1, 1]} : vector<8x256xf32> to vector<4x256xf32>
    %cst_21 = arith.constant dense<0.000000e+00> : vector<256xf32>
    %61 = vector.multi_reduction <add>, %60, %cst_21 [0] : vector<4x256xf32> to vector<256xf32>
    %62 = vector.shape_cast %61 : vector<256xf32> to vector<1x256xf32>
    %c45_i32 = arith.constant 45 : i32
    %63 = tpu.dynamic_rotate %3 by %c45_i32 dim 1 : vector<8x256xf32>, i32 -> vector<8x256xf32>
    %64 = arith.mulf %2, %63 : vector<8x256xf32>
    %65 = vector.extract_strided_slice %64 {offsets = [0, 0], sizes = [4, 256], strides = [1, 1]} : vector<8x256xf32> to vector<4x256xf32>
    %cst_22 = arith.constant dense<0.000000e+00> : vector<256xf32>
    %66 = vector.multi_reduction <add>, %65, %cst_22 [0] : vector<4x256xf32> to vector<256xf32>
    %67 = vector.shape_cast %66 : vector<256xf32> to vector<1x256xf32>
    %68 = vector.extract_strided_slice %64 {offsets = [4, 0], sizes = [4, 256], strides = [1, 1]} : vector<8x256xf32> to vector<4x256xf32>
    %cst_23 = arith.constant dense<0.000000e+00> : vector<256xf32>
    %69 = vector.multi_reduction <add>, %68, %cst_23 [0] : vector<4x256xf32> to vector<256xf32>
    %70 = vector.shape_cast %69 : vector<256xf32> to vector<1x256xf32>
    %c35_i32 = arith.constant 35 : i32
    %71 = tpu.dynamic_rotate %3 by %c35_i32 dim 1 : vector<8x256xf32>, i32 -> vector<8x256xf32>
    %72 = arith.mulf %2, %71 : vector<8x256xf32>
    %73 = vector.extract_strided_slice %72 {offsets = [0, 0], sizes = [4, 256], strides = [1, 1]} : vector<8x256xf32> to vector<4x256xf32>
    %cst_24 = arith.constant dense<0.000000e+00> : vector<256xf32>
    %74 = vector.multi_reduction <add>, %73, %cst_24 [0] : vector<4x256xf32> to vector<256xf32>
    %75 = vector.shape_cast %74 : vector<256xf32> to vector<1x256xf32>
    %76 = vector.extract_strided_slice %72 {offsets = [4, 0], sizes = [4, 256], strides = [1, 1]} : vector<8x256xf32> to vector<4x256xf32>
    %cst_25 = arith.constant dense<0.000000e+00> : vector<256xf32>
    %77 = vector.multi_reduction <add>, %76, %cst_25 [0] : vector<4x256xf32> to vector<256xf32>
    %78 = vector.shape_cast %77 : vector<256xf32> to vector<1x256xf32>
    %c4 = arith.constant 4 : index
    %c0_26 = arith.constant 0 : index
    %79 = vector.load %arg3[%c4, %c0_26] : memref<49x256xf32, #tpu.memory_space<vmem>>, vector<4x256xf32>
    %80 = tpu.concatenate %51, %59, %67, %75 in 0 : vector<1x256xf32>, vector<1x256xf32>, vector<1x256xf32>, vector<1x256xf32> -> vector<4x256xf32>
    %81 = arith.mulf %80, %79 : vector<4x256xf32>
    %c0_27 = arith.constant 0 : index
    %c4_28 = arith.constant 4 : index
    %c0_29 = arith.constant 0 : index
    %82 = vector.load %arg4[%c0_27, %c4_28, %c0_29] : memref<2x49x256xf32, #tpu.memory_space<vmem>>, vector<1x4x256xf32>
    %83 = vector.shape_cast %82 : vector<1x4x256xf32> to vector<4x256xf32>
    %84 = vector.shape_cast %81 : vector<4x256xf32> to vector<1x4x256xf32>
    tpu.vector_store %arg4[%c0_27, %c4_28, %c0_29], %84 {strides = array<i32>} : memref<2x49x256xf32, #tpu.memory_space<vmem>>, vector<1x4x256xf32>,
    %85 = tpu.concatenate %54, %62, %70, %78 in 0 : vector<1x256xf32>, vector<1x256xf32>, vector<1x256xf32>, vector<1x256xf32> -> vector<4x256xf32>
    %86 = arith.mulf %85, %79 : vector<4x256xf32>
    %c1_30 = arith.constant 1 : index
    %c4_31 = arith.constant 4 : index
    %c0_32 = arith.constant 0 : index
    %87 = vector.load %arg4[%c1_30, %c4_31, %c0_32] : memref<2x49x256xf32, #tpu.memory_space<vmem>>, vector<1x4x256xf32>
    %88 = vector.shape_cast %87 : vector<1x4x256xf32> to vector<4x256xf32>
    %89 = vector.shape_cast %86 : vector<4x256xf32> to vector<1x4x256xf32>
    tpu.vector_store %arg4[%c1_30, %c4_31, %c0_32], %89 {strides = array<i32>} : memref<2x49x256xf32, #tpu.memory_space<vmem>>, vector<1x4x256xf32>,
    %c34_i32 = arith.constant 34 : i32
    %90 = tpu.dynamic_rotate %3 by %c34_i32 dim 1 : vector<8x256xf32>, i32 -> vector<8x256xf32>
    %91 = arith.mulf %2, %90 : vector<8x256xf32>
    %92 = vector.extract_strided_slice %91 {offsets = [0, 0], sizes = [4, 256], strides = [1, 1]} : vector<8x256xf32> to vector<4x256xf32>
    %cst_33 = arith.constant dense<0.000000e+00> : vector<256xf32>
    %93 = vector.multi_reduction <add>, %92, %cst_33 [0] : vector<4x256xf32> to vector<256xf32>
    %94 = vector.shape_cast %93 : vector<256xf32> to vector<1x256xf32>
    %95 = vector.extract_strided_slice %91 {offsets = [4, 0], sizes = [4, 256], strides = [1, 1]} : vector<8x256xf32> to vector<4x256xf32>
    %cst_34 = arith.constant dense<0.000000e+00> : vector<256xf32>
    %96 = vector.multi_reduction <add>, %95, %cst_34 [0] : vector<4x256xf32> to vector<256xf32>
    %97 = vector.shape_cast %96 : vector<256xf32> to vector<1x256xf32>
    %c33_i32 = arith.constant 33 : i32
    %98 = tpu.dynamic_rotate %3 by %c33_i32 dim 1 : vector<8x256xf32>, i32 -> vector<8x256xf32>
    %99 = arith.mulf %2, %98 : vector<8x256xf32>
    %100 = vector.extract_strided_slice %99 {offsets = [0, 0], sizes = [4, 256], strides = [1, 1]} : vector<8x256xf32> to vector<4x256xf32>
    %cst_35 = arith.constant dense<0.000000e+00> : vector<256xf32>
    %101 = vector.multi_reduction <add>, %100, %cst_35 [0] : vector<4x256xf32> to vector<256xf32>
    %102 = vector.shape_cast %101 : vector<256xf32> to vector<1x256xf32>
    %103 = vector.extract_strided_slice %99 {offsets = [4, 0], sizes = [4, 256], strides = [1, 1]} : vector<8x256xf32> to vector<4x256xf32>
    %cst_36 = arith.constant dense<0.000000e+00> : vector<256xf32>
    %104 = vector.multi_reduction <add>, %103, %cst_36 [0] : vector<4x256xf32> to vector<256xf32>
    %105 = vector.shape_cast %104 : vector<256xf32> to vector<1x256xf32>
    %c32_i32 = arith.constant 32 : i32
    %106 = tpu.dynamic_rotate %3 by %c32_i32 dim 1 : vector<8x256xf32>, i32 -> vector<8x256xf32>
    %107 = arith.mulf %2, %106 : vector<8x256xf32>
    %108 = vector.extract_strided_slice %107 {offsets = [0, 0], sizes = [4, 256], strides = [1, 1]} : vector<8x256xf32> to vector<4x256xf32>
    %cst_37 = arith.constant dense<0.000000e+00> : vector<256xf32>
    %109 = vector.multi_reduction <add>, %108, %cst_37 [0] : vector<4x256xf32> to vector<256xf32>
    %110 = vector.shape_cast %109 : vector<256xf32> to vector<1x256xf32>
    %111 = vector.extract_strided_slice %107 {offsets = [4, 0], sizes = [4, 256], strides = [1, 1]} : vector<8x256xf32> to vector<4x256xf32>
    %cst_38 = arith.constant dense<0.000000e+00> : vector<256xf32>
    %112 = vector.multi_reduction <add>, %111, %cst_38 [0] : vector<4x256xf32> to vector<256xf32>
    %113 = vector.shape_cast %112 : vector<256xf32> to vector<1x256xf32>
    %c31_i32 = arith.constant 31 : i32
    %114 = tpu.dynamic_rotate %3 by %c31_i32 dim 1 : vector<8x256xf32>, i32 -> vector<8x256xf32>
    %115 = arith.mulf %2, %114 : vector<8x256xf32>
    %116 = vector.extract_strided_slice %115 {offsets = [0, 0], sizes = [4, 256], strides = [1, 1]} : vector<8x256xf32> to vector<4x256xf32>
    %cst_39 = arith.constant dense<0.000000e+00> : vector<256xf32>
    %117 = vector.multi_reduction <add>, %116, %cst_39 [0] : vector<4x256xf32> to vector<256xf32>
    %118 = vector.shape_cast %117 : vector<256xf32> to vector<1x256xf32>
    %119 = vector.extract_strided_slice %115 {offsets = [4, 0], sizes = [4, 256], strides = [1, 1]} : vector<8x256xf32> to vector<4x256xf32>
    %cst_40 = arith.constant dense<0.000000e+00> : vector<256xf32>
    %120 = vector.multi_reduction <add>, %119, %cst_40 [0] : vector<4x256xf32> to vector<256xf32>
    %121 = vector.shape_cast %120 : vector<256xf32> to vector<1x256xf32>
    %c8 = arith.constant 8 : index
    %c0_41 = arith.constant 0 : index
    %122 = vector.load %arg3[%c8, %c0_41] : memref<49x256xf32, #tpu.memory_space<vmem>>, vector<4x256xf32>
    %123 = tpu.concatenate %94, %102, %110, %118 in 0 : vector<1x256xf32>, vector<1x256xf32>, vector<1x256xf32>, vector<1x256xf32> -> vector<4x256xf32>
    %124 = arith.mulf %123, %122 : vector<4x256xf32>
    %c0_42 = arith.constant 0 : index
    %c8_43 = arith.constant 8 : index
    %c0_44 = arith.constant 0 : index
    %125 = vector.load %arg4[%c0_42, %c8_43, %c0_44] : memref<2x49x256xf32, #tpu.memory_space<vmem>>, vector<1x4x256xf32>
    %126 = vector.shape_cast %125 : vector<1x4x256xf32> to vector<4x256xf32>
    %127 = vector.shape_cast %124 : vector<4x256xf32> to vector<1x4x256xf32>
    tpu.vector_store %arg4[%c0_42, %c8_43, %c0_44], %127 {strides = array<i32>} : memref<2x49x256xf32, #tpu.memory_space<vmem>>, vector<1x4x256xf32>,
    %128 = tpu.concatenate %97, %105, %113, %121 in 0 : vector<1x256xf32>, vector<1x256xf32>, vector<1x256xf32>, vector<1x256xf32> -> vector<4x256xf32>
    %129 = arith.mulf %128, %122 : vector<4x256xf32>
    %c1_45 = arith.constant 1 : index
    %c8_46 = arith.constant 8 : index
    %c0_47 = arith.constant 0 : index
    %130 = vector.load %arg4[%c1_45, %c8_46, %c0_47] : memref<2x49x256xf32, #tpu.memory_space<vmem>>, vector<1x4x256xf32>
    %131 = vector.shape_cast %130 : vector<1x4x256xf32> to vector<4x256xf32>
    %132 = vector.shape_cast %129 : vector<4x256xf32> to vector<1x4x256xf32>
    tpu.vector_store %arg4[%c1_45, %c8_46, %c0_47], %132 {strides = array<i32>} : memref<2x49x256xf32, #tpu.memory_space<vmem>>, vector<1x4x256xf32>,
    %c30_i32 = arith.constant 30 : i32
    %133 = tpu.dynamic_rotate %3 by %c30_i32 dim 1 : vector<8x256xf32>, i32 -> vector<8x256xf32>
    %134 = arith.mulf %2, %133 : vector<8x256xf32>
    %135 = vector.extract_strided_slice %134 {offsets = [0, 0], sizes = [4, 256], strides = [1, 1]} : vector<8x256xf32> to vector<4x256xf32>
    %cst_48 = arith.constant dense<0.000000e+00> : vector<256xf32>
    %136 = vector.multi_reduction <add>, %135, %cst_48 [0] : vector<4x256xf32> to vector<256xf32>
    %137 = vector.shape_cast %136 : vector<256xf32> to vector<1x256xf32>
    %138 = vector.extract_strided_slice %134 {offsets = [4, 0], sizes = [4, 256], strides = [1, 1]} : vector<8x256xf32> to vector<4x256xf32>
    %cst_49 = arith.constant dense<0.000000e+00> : vector<256xf32>
    %139 = vector.multi_reduction <add>, %138, %cst_49 [0] : vector<4x256xf32> to vector<256xf32>
    %140 = vector.shape_cast %139 : vector<256xf32> to vector<1x256xf32>
    %c29_i32 = arith.constant 29 : i32
    %141 = tpu.dynamic_rotate %3 by %c29_i32 dim 1 : vector<8x256xf32>, i32 -> vector<8x256xf32>
    %142 = arith.mulf %2, %141 : vector<8x256xf32>
    %143 = vector.extract_strided_slice %142 {offsets = [0, 0], sizes = [4, 256], strides = [1, 1]} : vector<8x256xf32> to vector<4x256xf32>
    %cst_50 = arith.constant dense<0.000000e+00> : vector<256xf32>
    %144 = vector.multi_reduction <add>, %143, %cst_50 [0] : vector<4x256xf32> to vector<256xf32>
    %145 = vector.shape_cast %144 : vector<256xf32> to vector<1x256xf32>
    %146 = vector.extract_strided_slice %142 {offsets = [4, 0], sizes = [4, 256], strides = [1, 1]} : vector<8x256xf32> to vector<4x256xf32>
    %cst_51 = arith.constant dense<0.000000e+00> : vector<256xf32>
    %147 = vector.multi_reduction <add>, %146, %cst_51 [0] : vector<4x256xf32> to vector<256xf32>
    %148 = vector.shape_cast %147 : vector<256xf32> to vector<1x256xf32>
    %c19_i32 = arith.constant 19 : i32
    %149 = tpu.dynamic_rotate %3 by %c19_i32 dim 1 : vector<8x256xf32>, i32 -> vector<8x256xf32>
    %150 = arith.mulf %2, %149 : vector<8x256xf32>
    %151 = vector.extract_strided_slice %150 {offsets = [0, 0], sizes = [4, 256], strides = [1, 1]} : vector<8x256xf32> to vector<4x256xf32>
    %cst_52 = arith.constant dense<0.000000e+00> : vector<256xf32>
    %152 = vector.multi_reduction <add>, %151, %cst_52 [0] : vector<4x256xf32> to vector<256xf32>
    %153 = vector.shape_cast %152 : vector<256xf32> to vector<1x256xf32>
    %154 = vector.extract_strided_slice %150 {offsets = [4, 0], sizes = [4, 256], strides = [1, 1]} : vector<8x256xf32> to vector<4x256xf32>
    %cst_53 = arith.constant dense<0.000000e+00> : vector<256xf32>
    %155 = vector.multi_reduction <add>, %154, %cst_53 [0] : vector<4x256xf32> to vector<256xf32>
    %156 = vector.shape_cast %155 : vector<256xf32> to vector<1x256xf32>
    %c18_i32 = arith.constant 18 : i32
    %157 = tpu.dynamic_rotate %3 by %c18_i32 dim 1 : vector<8x256xf32>, i32 -> vector<8x256xf32>
    %158 = arith.mulf %2, %157 : vector<8x256xf32>
    %159 = vector.extract_strided_slice %158 {offsets = [0, 0], sizes = [4, 256], strides = [1, 1]} : vector<8x256xf32> to vector<4x256xf32>
    %cst_54 = arith.constant dense<0.000000e+00> : vector<256xf32>
    %160 = vector.multi_reduction <add>, %159, %cst_54 [0] : vector<4x256xf32> to vector<256xf32>
    %161 = vector.shape_cast %160 : vector<256xf32> to vector<1x256xf32>
    %162 = vector.extract_strided_slice %158 {offsets = [4, 0], sizes = [4, 256], strides = [1, 1]} : vector<8x256xf32> to vector<4x256xf32>
    %cst_55 = arith.constant dense<0.000000e+00> : vector<256xf32>
    %163 = vector.multi_reduction <add>, %162, %cst_55 [0] : vector<4x256xf32> to vector<256xf32>
    %164 = vector.shape_cast %163 : vector<256xf32> to vector<1x256xf32>
    %c12 = arith.constant 12 : index
    %c0_56 = arith.constant 0 : index
    %165 = vector.load %arg3[%c12, %c0_56] : memref<49x256xf32, #tpu.memory_space<vmem>>, vector<4x256xf32>
    %166 = tpu.concatenate %137, %145, %153, %161 in 0 : vector<1x256xf32>, vector<1x256xf32>, vector<1x256xf32>, vector<1x256xf32> -> vector<4x256xf32>
    %167 = arith.mulf %166, %165 : vector<4x256xf32>
    %c0_57 = arith.constant 0 : index
    %c12_58 = arith.constant 12 : index
    %c0_59 = arith.constant 0 : index
    %168 = vector.load %arg4[%c0_57, %c12_58, %c0_59] : memref<2x49x256xf32, #tpu.memory_space<vmem>>, vector<1x4x256xf32>
    %169 = vector.shape_cast %168 : vector<1x4x256xf32> to vector<4x256xf32>
    %170 = vector.shape_cast %167 : vector<4x256xf32> to vector<1x4x256xf32>
    tpu.vector_store %arg4[%c0_57, %c12_58, %c0_59], %170 {strides = array<i32>} : memref<2x49x256xf32, #tpu.memory_space<vmem>>, vector<1x4x256xf32>,
    %171 = tpu.concatenate %140, %148, %156, %164 in 0 : vector<1x256xf32>, vector<1x256xf32>, vector<1x256xf32>, vector<1x256xf32> -> vector<4x256xf32>
    %172 = arith.mulf %171, %165 : vector<4x256xf32>
    %c1_60 = arith.constant 1 : index
    %c12_61 = arith.constant 12 : index
    %c0_62 = arith.constant 0 : index
    %173 = vector.load %arg4[%c1_60, %c12_61, %c0_62] : memref<2x49x256xf32, #tpu.memory_space<vmem>>, vector<1x4x256xf32>
    %174 = vector.shape_cast %173 : vector<1x4x256xf32> to vector<4x256xf32>
    %175 = vector.shape_cast %172 : vector<4x256xf32> to vector<1x4x256xf32>
    tpu.vector_store %arg4[%c1_60, %c12_61, %c0_62], %175 {strides = array<i32>} : memref<2x49x256xf32, #tpu.memory_space<vmem>>, vector<1x4x256xf32>,
    %c17_i32 = arith.constant 17 : i32
    %176 = tpu.dynamic_rotate %3 by %c17_i32 dim 1 : vector<8x256xf32>, i32 -> vector<8x256xf32>
    %177 = arith.mulf %2, %176 : vector<8x256xf32>
    %178 = vector.extract_strided_slice %177 {offsets = [0, 0], sizes = [4, 256], strides = [1, 1]} : vector<8x256xf32> to vector<4x256xf32>
    %cst_63 = arith.constant dense<0.000000e+00> : vector<256xf32>
    %179 = vector.multi_reduction <add>, %178, %cst_63 [0] : vector<4x256xf32> to vector<256xf32>
    %180 = vector.shape_cast %179 : vector<256xf32> to vector<1x256xf32>
    %181 = vector.extract_strided_slice %177 {offsets = [4, 0], sizes = [4, 256], strides = [1, 1]} : vector<8x256xf32> to vector<4x256xf32>
    %cst_64 = arith.constant dense<0.000000e+00> : vector<256xf32>
    %182 = vector.multi_reduction <add>, %181, %cst_64 [0] : vector<4x256xf32> to vector<256xf32>
    %183 = vector.shape_cast %182 : vector<256xf32> to vector<1x256xf32>
    %c16_i32 = arith.constant 16 : i32
    %184 = tpu.dynamic_rotate %3 by %c16_i32 dim 1 : vector<8x256xf32>, i32 -> vector<8x256xf32>
    %185 = arith.mulf %2, %184 : vector<8x256xf32>
    %186 = vector.extract_strided_slice %185 {offsets = [0, 0], sizes = [4, 256], strides = [1, 1]} : vector<8x256xf32> to vector<4x256xf32>
    %cst_65 = arith.constant dense<0.000000e+00> : vector<256xf32>
    %187 = vector.multi_reduction <add>, %186, %cst_65 [0] : vector<4x256xf32> to vector<256xf32>
    %188 = vector.shape_cast %187 : vector<256xf32> to vector<1x256xf32>
    %189 = vector.extract_strided_slice %185 {offsets = [4, 0], sizes = [4, 256], strides = [1, 1]} : vector<8x256xf32> to vector<4x256xf32>
    %cst_66 = arith.constant dense<0.000000e+00> : vector<256xf32>
    %190 = vector.multi_reduction <add>, %189, %cst_66 [0] : vector<4x256xf32> to vector<256xf32>
    %191 = vector.shape_cast %190 : vector<256xf32> to vector<1x256xf32>
    %c15_i32 = arith.constant 15 : i32
    %192 = tpu.dynamic_rotate %3 by %c15_i32 dim 1 : vector<8x256xf32>, i32 -> vector<8x256xf32>
    %193 = arith.mulf %2, %192 : vector<8x256xf32>
    %194 = vector.extract_strided_slice %193 {offsets = [0, 0], sizes = [4, 256], strides = [1, 1]} : vector<8x256xf32> to vector<4x256xf32>
    %cst_67 = arith.constant dense<0.000000e+00> : vector<256xf32>
    %195 = vector.multi_reduction <add>, %194, %cst_67 [0] : vector<4x256xf32> to vector<256xf32>
    %196 = vector.shape_cast %195 : vector<256xf32> to vector<1x256xf32>
    %197 = vector.extract_strided_slice %193 {offsets = [4, 0], sizes = [4, 256], strides = [1, 1]} : vector<8x256xf32> to vector<4x256xf32>
    %cst_68 = arith.constant dense<0.000000e+00> : vector<256xf32>
    %198 = vector.multi_reduction <add>, %197, %cst_68 [0] : vector<4x256xf32> to vector<256xf32>
    %199 = vector.shape_cast %198 : vector<256xf32> to vector<1x256xf32>
    %c14_i32 = arith.constant 14 : i32
    %200 = tpu.dynamic_rotate %3 by %c14_i32 dim 1 : vector<8x256xf32>, i32 -> vector<8x256xf32>
    %201 = arith.mulf %2, %200 : vector<8x256xf32>
    %202 = vector.extract_strided_slice %201 {offsets = [0, 0], sizes = [4, 256], strides = [1, 1]} : vector<8x256xf32> to vector<4x256xf32>
    %cst_69 = arith.constant dense<0.000000e+00> : vector<256xf32>
    %203 = vector.multi_reduction <add>, %202, %cst_69 [0] : vector<4x256xf32> to vector<256xf32>
    %204 = vector.shape_cast %203 : vector<256xf32> to vector<1x256xf32>
    %205 = vector.extract_strided_slice %201 {offsets = [4, 0], sizes = [4, 256], strides = [1, 1]} : vector<8x256xf32> to vector<4x256xf32>
    %cst_70 = arith.constant dense<0.000000e+00> : vector<256xf32>
    %206 = vector.multi_reduction <add>, %205, %cst_70 [0] : vector<4x256xf32> to vector<256xf32>
    %207 = vector.shape_cast %206 : vector<256xf32> to vector<1x256xf32>
    %c16 = arith.constant 16 : index
    %c0_71 = arith.constant 0 : index
    %208 = vector.load %arg3[%c16, %c0_71] : memref<49x256xf32, #tpu.memory_space<vmem>>, vector<4x256xf32>
    %209 = tpu.concatenate %180, %188, %196, %204 in 0 : vector<1x256xf32>, vector<1x256xf32>, vector<1x256xf32>, vector<1x256xf32> -> vector<4x256xf32>
    %210 = arith.mulf %209, %208 : vector<4x256xf32>
    %c0_72 = arith.constant 0 : index
    %c16_73 = arith.constant 16 : index
    %c0_74 = arith.constant 0 : index
    %211 = vector.load %arg4[%c0_72, %c16_73, %c0_74] : memref<2x49x256xf32, #tpu.memory_space<vmem>>, vector<1x4x256xf32>
    %212 = vector.shape_cast %211 : vector<1x4x256xf32> to vector<4x256xf32>
    %213 = vector.shape_cast %210 : vector<4x256xf32> to vector<1x4x256xf32>
    tpu.vector_store %arg4[%c0_72, %c16_73, %c0_74], %213 {strides = array<i32>} : memref<2x49x256xf32, #tpu.memory_space<vmem>>, vector<1x4x256xf32>,
    %214 = tpu.concatenate %183, %191, %199, %207 in 0 : vector<1x256xf32>, vector<1x256xf32>, vector<1x256xf32>, vector<1x256xf32> -> vector<4x256xf32>
    %215 = arith.mulf %214, %208 : vector<4x256xf32>
    %c1_75 = arith.constant 1 : index
    %c16_76 = arith.constant 16 : index
    %c0_77 = arith.constant 0 : index
    %216 = vector.load %arg4[%c1_75, %c16_76, %c0_77] : memref<2x49x256xf32, #tpu.memory_space<vmem>>, vector<1x4x256xf32>
    %217 = vector.shape_cast %216 : vector<1x4x256xf32> to vector<4x256xf32>
    %218 = vector.shape_cast %215 : vector<4x256xf32> to vector<1x4x256xf32>
    tpu.vector_store %arg4[%c1_75, %c16_76, %c0_77], %218 {strides = array<i32>} : memref<2x49x256xf32, #tpu.memory_space<vmem>>, vector<1x4x256xf32>,
    %c13_i32 = arith.constant 13 : i32
    %219 = tpu.dynamic_rotate %3 by %c13_i32 dim 1 : vector<8x256xf32>, i32 -> vector<8x256xf32>
    %220 = arith.mulf %2, %219 : vector<8x256xf32>
    %221 = vector.extract_strided_slice %220 {offsets = [0, 0], sizes = [4, 256], strides = [1, 1]} : vector<8x256xf32> to vector<4x256xf32>
    %cst_78 = arith.constant dense<0.000000e+00> : vector<256xf32>
    %222 = vector.multi_reduction <add>, %221, %cst_78 [0] : vector<4x256xf32> to vector<256xf32>
    %223 = vector.shape_cast %222 : vector<256xf32> to vector<1x256xf32>
    %224 = vector.extract_strided_slice %220 {offsets = [4, 0], sizes = [4, 256], strides = [1, 1]} : vector<8x256xf32> to vector<4x256xf32>
    %cst_79 = arith.constant dense<0.000000e+00> : vector<256xf32>
    %225 = vector.multi_reduction <add>, %224, %cst_79 [0] : vector<4x256xf32> to vector<256xf32>
    %226 = vector.shape_cast %225 : vector<256xf32> to vector<1x256xf32>
    %c3_i32 = arith.constant 3 : i32
    %227 = tpu.dynamic_rotate %3 by %c3_i32 dim 1 : vector<8x256xf32>, i32 -> vector<8x256xf32>
    %228 = arith.mulf %2, %227 : vector<8x256xf32>
    %229 = vector.extract_strided_slice %228 {offsets = [0, 0], sizes = [4, 256], strides = [1, 1]} : vector<8x256xf32> to vector<4x256xf32>
    %cst_80 = arith.constant dense<0.000000e+00> : vector<256xf32>
    %230 = vector.multi_reduction <add>, %229, %cst_80 [0] : vector<4x256xf32> to vector<256xf32>
    %231 = vector.shape_cast %230 : vector<256xf32> to vector<1x256xf32>
    %232 = vector.extract_strided_slice %228 {offsets = [4, 0], sizes = [4, 256], strides = [1, 1]} : vector<8x256xf32> to vector<4x256xf32>
    %cst_81 = arith.constant dense<0.000000e+00> : vector<256xf32>
    %233 = vector.multi_reduction <add>, %232, %cst_81 [0] : vector<4x256xf32> to vector<256xf32>
    %234 = vector.shape_cast %233 : vector<256xf32> to vector<1x256xf32>
    %c2_i32 = arith.constant 2 : i32
    %235 = tpu.dynamic_rotate %3 by %c2_i32 dim 1 : vector<8x256xf32>, i32 -> vector<8x256xf32>
    %236 = arith.mulf %2, %235 : vector<8x256xf32>
    %237 = vector.extract_strided_slice %236 {offsets = [0, 0], sizes = [4, 256], strides = [1, 1]} : vector<8x256xf32> to vector<4x256xf32>
    %cst_82 = arith.constant dense<0.000000e+00> : vector<256xf32>
    %238 = vector.multi_reduction <add>, %237, %cst_82 [0] : vector<4x256xf32> to vector<256xf32>
    %239 = vector.shape_cast %238 : vector<256xf32> to vector<1x256xf32>
    %240 = vector.extract_strided_slice %236 {offsets = [4, 0], sizes = [4, 256], strides = [1, 1]} : vector<8x256xf32> to vector<4x256xf32>
    %cst_83 = arith.constant dense<0.000000e+00> : vector<256xf32>
    %241 = vector.multi_reduction <add>, %240, %cst_83 [0] : vector<4x256xf32> to vector<256xf32>
    %242 = vector.shape_cast %241 : vector<256xf32> to vector<1x256xf32>
    %c1_i32 = arith.constant 1 : i32
    %243 = tpu.dynamic_rotate %3 by %c1_i32 dim 1 : vector<8x256xf32>, i32 -> vector<8x256xf32>
    %244 = arith.mulf %2, %243 : vector<8x256xf32>
    %245 = vector.extract_strided_slice %244 {offsets = [0, 0], sizes = [4, 256], strides = [1, 1]} : vector<8x256xf32> to vector<4x256xf32>
    %cst_84 = arith.constant dense<0.000000e+00> : vector<256xf32>
    %246 = vector.multi_reduction <add>, %245, %cst_84 [0] : vector<4x256xf32> to vector<256xf32>
    %247 = vector.shape_cast %246 : vector<256xf32> to vector<1x256xf32>
    %248 = vector.extract_strided_slice %244 {offsets = [4, 0], sizes = [4, 256], strides = [1, 1]} : vector<8x256xf32> to vector<4x256xf32>
    %cst_85 = arith.constant dense<0.000000e+00> : vector<256xf32>
    %249 = vector.multi_reduction <add>, %248, %cst_85 [0] : vector<4x256xf32> to vector<256xf32>
    %250 = vector.shape_cast %249 : vector<256xf32> to vector<1x256xf32>
    %c20 = arith.constant 20 : index
    %c0_86 = arith.constant 0 : index
    %251 = vector.load %arg3[%c20, %c0_86] : memref<49x256xf32, #tpu.memory_space<vmem>>, vector<4x256xf32>
    %252 = tpu.concatenate %223, %231, %239, %247 in 0 : vector<1x256xf32>, vector<1x256xf32>, vector<1x256xf32>, vector<1x256xf32> -> vector<4x256xf32>
    %253 = arith.mulf %252, %251 : vector<4x256xf32>
    %c0_87 = arith.constant 0 : index
    %c20_88 = arith.constant 20 : index
    %c0_89 = arith.constant 0 : index
    %254 = vector.load %arg4[%c0_87, %c20_88, %c0_89] : memref<2x49x256xf32, #tpu.memory_space<vmem>>, vector<1x4x256xf32>
    %255 = vector.shape_cast %254 : vector<1x4x256xf32> to vector<4x256xf32>
    %256 = vector.shape_cast %253 : vector<4x256xf32> to vector<1x4x256xf32>
    tpu.vector_store %arg4[%c0_87, %c20_88, %c0_89], %256 {strides = array<i32>} : memref<2x49x256xf32, #tpu.memory_space<vmem>>, vector<1x4x256xf32>,
    %257 = tpu.concatenate %226, %234, %242, %250 in 0 : vector<1x256xf32>, vector<1x256xf32>, vector<1x256xf32>, vector<1x256xf32> -> vector<4x256xf32>
    %258 = arith.mulf %257, %251 : vector<4x256xf32>
    %c1_90 = arith.constant 1 : index
    %c20_91 = arith.constant 20 : index
    %c0_92 = arith.constant 0 : index
    %259 = vector.load %arg4[%c1_90, %c20_91, %c0_92] : memref<2x49x256xf32, #tpu.memory_space<vmem>>, vector<1x4x256xf32>
    %260 = vector.shape_cast %259 : vector<1x4x256xf32> to vector<4x256xf32>
    %261 = vector.shape_cast %258 : vector<4x256xf32> to vector<1x4x256xf32>
    tpu.vector_store %arg4[%c1_90, %c20_91, %c0_92], %261 {strides = array<i32>} : memref<2x49x256xf32, #tpu.memory_space<vmem>>, vector<1x4x256xf32>,
    %262 = arith.mulf %2, %3 : vector<8x256xf32>
    %263 = vector.extract_strided_slice %262 {offsets = [0, 0], sizes = [4, 256], strides = [1, 1]} : vector<8x256xf32> to vector<4x256xf32>
    %cst_93 = arith.constant dense<0.000000e+00> : vector<256xf32>
    %264 = vector.multi_reduction <add>, %263, %cst_93 [0] : vector<4x256xf32> to vector<256xf32>
    %265 = vector.shape_cast %264 : vector<256xf32> to vector<1x256xf32>
    %266 = vector.extract_strided_slice %262 {offsets = [4, 0], sizes = [4, 256], strides = [1, 1]} : vector<8x256xf32> to vector<4x256xf32>
    %cst_94 = arith.constant dense<0.000000e+00> : vector<256xf32>
    %267 = vector.multi_reduction <add>, %266, %cst_94 [0] : vector<4x256xf32> to vector<256xf32>
    %268 = vector.shape_cast %267 : vector<256xf32> to vector<1x256xf32>
    %c255_i32 = arith.constant 255 : i32
    %269 = tpu.dynamic_rotate %3 by %c255_i32 dim 1 : vector<8x256xf32>, i32 -> vector<8x256xf32>
    %270 = arith.mulf %2, %269 : vector<8x256xf32>
    %271 = vector.extract_strided_slice %270 {offsets = [0, 0], sizes = [4, 256], strides = [1, 1]} : vector<8x256xf32> to vector<4x256xf32>
    %cst_95 = arith.constant dense<0.000000e+00> : vector<256xf32>
    %272 = vector.multi_reduction <add>, %271, %cst_95 [0] : vector<4x256xf32> to vector<256xf32>
    %273 = vector.shape_cast %272 : vector<256xf32> to vector<1x256xf32>
    %274 = vector.extract_strided_slice %270 {offsets = [4, 0], sizes = [4, 256], strides = [1, 1]} : vector<8x256xf32> to vector<4x256xf32>
    %cst_96 = arith.constant dense<0.000000e+00> : vector<256xf32>
    %275 = vector.multi_reduction <add>, %274, %cst_96 [0] : vector<4x256xf32> to vector<256xf32>
    %276 = vector.shape_cast %275 : vector<256xf32> to vector<1x256xf32>
    %c254_i32 = arith.constant 254 : i32
    %277 = tpu.dynamic_rotate %3 by %c254_i32 dim 1 : vector<8x256xf32>, i32 -> vector<8x256xf32>
    %278 = arith.mulf %2, %277 : vector<8x256xf32>
    %279 = vector.extract_strided_slice %278 {offsets = [0, 0], sizes = [4, 256], strides = [1, 1]} : vector<8x256xf32> to vector<4x256xf32>
    %cst_97 = arith.constant dense<0.000000e+00> : vector<256xf32>
    %280 = vector.multi_reduction <add>, %279, %cst_97 [0] : vector<4x256xf32> to vector<256xf32>
    %281 = vector.shape_cast %280 : vector<256xf32> to vector<1x256xf32>
    %282 = vector.extract_strided_slice %278 {offsets = [4, 0], sizes = [4, 256], strides = [1, 1]} : vector<8x256xf32> to vector<4x256xf32>
    %cst_98 = arith.constant dense<0.000000e+00> : vector<256xf32>
    %283 = vector.multi_reduction <add>, %282, %cst_98 [0] : vector<4x256xf32> to vector<256xf32>
    %284 = vector.shape_cast %283 : vector<256xf32> to vector<1x256xf32>
    %c253_i32 = arith.constant 253 : i32
    %285 = tpu.dynamic_rotate %3 by %c253_i32 dim 1 : vector<8x256xf32>, i32 -> vector<8x256xf32>
    %286 = arith.mulf %2, %285 : vector<8x256xf32>
    %287 = vector.extract_strided_slice %286 {offsets = [0, 0], sizes = [4, 256], strides = [1, 1]} : vector<8x256xf32> to vector<4x256xf32>
    %cst_99 = arith.constant dense<0.000000e+00> : vector<256xf32>
    %288 = vector.multi_reduction <add>, %287, %cst_99 [0] : vector<4x256xf32> to vector<256xf32>
    %289 = vector.shape_cast %288 : vector<256xf32> to vector<1x256xf32>
    %290 = vector.extract_strided_slice %286 {offsets = [4, 0], sizes = [4, 256], strides = [1, 1]} : vector<8x256xf32> to vector<4x256xf32>
    %cst_100 = arith.constant dense<0.000000e+00> : vector<256xf32>
    %291 = vector.multi_reduction <add>, %290, %cst_100 [0] : vector<4x256xf32> to vector<256xf32>
    %292 = vector.shape_cast %291 : vector<256xf32> to vector<1x256xf32>
    %c24 = arith.constant 24 : index
    %c0_101 = arith.constant 0 : index
    %293 = vector.load %arg3[%c24, %c0_101] : memref<49x256xf32, #tpu.memory_space<vmem>>, vector<4x256xf32>
    %294 = tpu.concatenate %265, %273, %281, %289 in 0 : vector<1x256xf32>, vector<1x256xf32>, vector<1x256xf32>, vector<1x256xf32> -> vector<4x256xf32>
    %295 = arith.mulf %294, %293 : vector<4x256xf32>
    %c0_102 = arith.constant 0 : index
    %c24_103 = arith.constant 24 : index
    %c0_104 = arith.constant 0 : index
    %296 = vector.load %arg4[%c0_102, %c24_103, %c0_104] : memref<2x49x256xf32, #tpu.memory_space<vmem>>, vector<1x4x256xf32>
    %297 = vector.shape_cast %296 : vector<1x4x256xf32> to vector<4x256xf32>
    %298 = vector.shape_cast %295 : vector<4x256xf32> to vector<1x4x256xf32>
    tpu.vector_store %arg4[%c0_102, %c24_103, %c0_104], %298 {strides = array<i32>} : memref<2x49x256xf32, #tpu.memory_space<vmem>>, vector<1x4x256xf32>,
    %299 = tpu.concatenate %268, %276, %284, %292 in 0 : vector<1x256xf32>, vector<1x256xf32>, vector<1x256xf32>, vector<1x256xf32> -> vector<4x256xf32>
    %300 = arith.mulf %299, %293 : vector<4x256xf32>
    %c1_105 = arith.constant 1 : index
    %c24_106 = arith.constant 24 : index
    %c0_107 = arith.constant 0 : index
    %301 = vector.load %arg4[%c1_105, %c24_106, %c0_107] : memref<2x49x256xf32, #tpu.memory_space<vmem>>, vector<1x4x256xf32>
    %302 = vector.shape_cast %301 : vector<1x4x256xf32> to vector<4x256xf32>
    %303 = vector.shape_cast %300 : vector<4x256xf32> to vector<1x4x256xf32>
    tpu.vector_store %arg4[%c1_105, %c24_106, %c0_107], %303 {strides = array<i32>} : memref<2x49x256xf32, #tpu.memory_space<vmem>>, vector<1x4x256xf32>,
    %c243_i32 = arith.constant 243 : i32
    %304 = tpu.dynamic_rotate %3 by %c243_i32 dim 1 : vector<8x256xf32>, i32 -> vector<8x256xf32>
    %305 = arith.mulf %2, %304 : vector<8x256xf32>
    %306 = vector.extract_strided_slice %305 {offsets = [0, 0], sizes = [4, 256], strides = [1, 1]} : vector<8x256xf32> to vector<4x256xf32>
    %cst_108 = arith.constant dense<0.000000e+00> : vector<256xf32>
    %307 = vector.multi_reduction <add>, %306, %cst_108 [0] : vector<4x256xf32> to vector<256xf32>
    %308 = vector.shape_cast %307 : vector<256xf32> to vector<1x256xf32>
    %309 = vector.extract_strided_slice %305 {offsets = [4, 0], sizes = [4, 256], strides = [1, 1]} : vector<8x256xf32> to vector<4x256xf32>
    %cst_109 = arith.constant dense<0.000000e+00> : vector<256xf32>
    %310 = vector.multi_reduction <add>, %309, %cst_109 [0] : vector<4x256xf32> to vector<256xf32>
    %311 = vector.shape_cast %310 : vector<256xf32> to vector<1x256xf32>
    %c242_i32 = arith.constant 242 : i32
    %312 = tpu.dynamic_rotate %3 by %c242_i32 dim 1 : vector<8x256xf32>, i32 -> vector<8x256xf32>
    %313 = arith.mulf %2, %312 : vector<8x256xf32>
    %314 = vector.extract_strided_slice %313 {offsets = [0, 0], sizes = [4, 256], strides = [1, 1]} : vector<8x256xf32> to vector<4x256xf32>
    %cst_110 = arith.constant dense<0.000000e+00> : vector<256xf32>
    %315 = vector.multi_reduction <add>, %314, %cst_110 [0] : vector<4x256xf32> to vector<256xf32>
    %316 = vector.shape_cast %315 : vector<256xf32> to vector<1x256xf32>
    %317 = vector.extract_strided_slice %313 {offsets = [4, 0], sizes = [4, 256], strides = [1, 1]} : vector<8x256xf32> to vector<4x256xf32>
    %cst_111 = arith.constant dense<0.000000e+00> : vector<256xf32>
    %318 = vector.multi_reduction <add>, %317, %cst_111 [0] : vector<4x256xf32> to vector<256xf32>
    %319 = vector.shape_cast %318 : vector<256xf32> to vector<1x256xf32>
    %c241_i32 = arith.constant 241 : i32
    %320 = tpu.dynamic_rotate %3 by %c241_i32 dim 1 : vector<8x256xf32>, i32 -> vector<8x256xf32>
    %321 = arith.mulf %2, %320 : vector<8x256xf32>
    %322 = vector.extract_strided_slice %321 {offsets = [0, 0], sizes = [4, 256], strides = [1, 1]} : vector<8x256xf32> to vector<4x256xf32>
    %cst_112 = arith.constant dense<0.000000e+00> : vector<256xf32>
    %323 = vector.multi_reduction <add>, %322, %cst_112 [0] : vector<4x256xf32> to vector<256xf32>
    %324 = vector.shape_cast %323 : vector<256xf32> to vector<1x256xf32>
    %325 = vector.extract_strided_slice %321 {offsets = [4, 0], sizes = [4, 256], strides = [1, 1]} : vector<8x256xf32> to vector<4x256xf32>
    %cst_113 = arith.constant dense<0.000000e+00> : vector<256xf32>
    %326 = vector.multi_reduction <add>, %325, %cst_113 [0] : vector<4x256xf32> to vector<256xf32>
    %327 = vector.shape_cast %326 : vector<256xf32> to vector<1x256xf32>
    %c240_i32 = arith.constant 240 : i32
    %328 = tpu.dynamic_rotate %3 by %c240_i32 dim 1 : vector<8x256xf32>, i32 -> vector<8x256xf32>
    %329 = arith.mulf %2, %328 : vector<8x256xf32>
    %330 = vector.extract_strided_slice %329 {offsets = [0, 0], sizes = [4, 256], strides = [1, 1]} : vector<8x256xf32> to vector<4x256xf32>
    %cst_114 = arith.constant dense<0.000000e+00> : vector<256xf32>
    %331 = vector.multi_reduction <add>, %330, %cst_114 [0] : vector<4x256xf32> to vector<256xf32>
    %332 = vector.shape_cast %331 : vector<256xf32> to vector<1x256xf32>
    %333 = vector.extract_strided_slice %329 {offsets = [4, 0], sizes = [4, 256], strides = [1, 1]} : vector<8x256xf32> to vector<4x256xf32>
    %cst_115 = arith.constant dense<0.000000e+00> : vector<256xf32>
    %334 = vector.multi_reduction <add>, %333, %cst_115 [0] : vector<4x256xf32> to vector<256xf32>
    %335 = vector.shape_cast %334 : vector<256xf32> to vector<1x256xf32>
    %c28 = arith.constant 28 : index
    %c0_116 = arith.constant 0 : index
    %336 = vector.load %arg3[%c28, %c0_116] : memref<49x256xf32, #tpu.memory_space<vmem>>, vector<4x256xf32>
    %337 = tpu.concatenate %308, %316, %324, %332 in 0 : vector<1x256xf32>, vector<1x256xf32>, vector<1x256xf32>, vector<1x256xf32> -> vector<4x256xf32>
    %338 = arith.mulf %337, %336 : vector<4x256xf32>
    %c0_117 = arith.constant 0 : index
    %c28_118 = arith.constant 28 : index
    %c0_119 = arith.constant 0 : index
    %339 = vector.load %arg4[%c0_117, %c28_118, %c0_119] : memref<2x49x256xf32, #tpu.memory_space<vmem>>, vector<1x4x256xf32>
    %340 = vector.shape_cast %339 : vector<1x4x256xf32> to vector<4x256xf32>
    %341 = vector.shape_cast %338 : vector<4x256xf32> to vector<1x4x256xf32>
    tpu.vector_store %arg4[%c0_117, %c28_118, %c0_119], %341 {strides = array<i32>} : memref<2x49x256xf32, #tpu.memory_space<vmem>>, vector<1x4x256xf32>,
    %342 = tpu.concatenate %311, %319, %327, %335 in 0 : vector<1x256xf32>, vector<1x256xf32>, vector<1x256xf32>, vector<1x256xf32> -> vector<4x256xf32>
    %343 = arith.mulf %342, %336 : vector<4x256xf32>
    %c1_120 = arith.constant 1 : index
    %c28_121 = arith.constant 28 : index
    %c0_122 = arith.constant 0 : index
    %344 = vector.load %arg4[%c1_120, %c28_121, %c0_122] : memref<2x49x256xf32, #tpu.memory_space<vmem>>, vector<1x4x256xf32>
    %345 = vector.shape_cast %344 : vector<1x4x256xf32> to vector<4x256xf32>
    %346 = vector.shape_cast %343 : vector<4x256xf32> to vector<1x4x256xf32>
    tpu.vector_store %arg4[%c1_120, %c28_121, %c0_122], %346 {strides = array<i32>} : memref<2x49x256xf32, #tpu.memory_space<vmem>>, vector<1x4x256xf32>,
    %c239_i32 = arith.constant 239 : i32
    %347 = tpu.dynamic_rotate %3 by %c239_i32 dim 1 : vector<8x256xf32>, i32 -> vector<8x256xf32>
    %348 = arith.mulf %2, %347 : vector<8x256xf32>
    %349 = vector.extract_strided_slice %348 {offsets = [0, 0], sizes = [4, 256], strides = [1, 1]} : vector<8x256xf32> to vector<4x256xf32>
    %cst_123 = arith.constant dense<0.000000e+00> : vector<256xf32>
    %350 = vector.multi_reduction <add>, %349, %cst_123 [0] : vector<4x256xf32> to vector<256xf32>
    %351 = vector.shape_cast %350 : vector<256xf32> to vector<1x256xf32>
    %352 = vector.extract_strided_slice %348 {offsets = [4, 0], sizes = [4, 256], strides = [1, 1]} : vector<8x256xf32> to vector<4x256xf32>
    %cst_124 = arith.constant dense<0.000000e+00> : vector<256xf32>
    %353 = vector.multi_reduction <add>, %352, %cst_124 [0] : vector<4x256xf32> to vector<256xf32>
    %354 = vector.shape_cast %353 : vector<256xf32> to vector<1x256xf32>
    %c238_i32 = arith.constant 238 : i32
    %355 = tpu.dynamic_rotate %3 by %c238_i32 dim 1 : vector<8x256xf32>, i32 -> vector<8x256xf32>
    %356 = arith.mulf %2, %355 : vector<8x256xf32>
    %357 = vector.extract_strided_slice %356 {offsets = [0, 0], sizes = [4, 256], strides = [1, 1]} : vector<8x256xf32> to vector<4x256xf32>
    %cst_125 = arith.constant dense<0.000000e+00> : vector<256xf32>
    %358 = vector.multi_reduction <add>, %357, %cst_125 [0] : vector<4x256xf32> to vector<256xf32>
    %359 = vector.shape_cast %358 : vector<256xf32> to vector<1x256xf32>
    %360 = vector.extract_strided_slice %356 {offsets = [4, 0], sizes = [4, 256], strides = [1, 1]} : vector<8x256xf32> to vector<4x256xf32>
    %cst_126 = arith.constant dense<0.000000e+00> : vector<256xf32>
    %361 = vector.multi_reduction <add>, %360, %cst_126 [0] : vector<4x256xf32> to vector<256xf32>
    %362 = vector.shape_cast %361 : vector<256xf32> to vector<1x256xf32>
    %c237_i32 = arith.constant 237 : i32
    %363 = tpu.dynamic_rotate %3 by %c237_i32 dim 1 : vector<8x256xf32>, i32 -> vector<8x256xf32>
    %364 = arith.mulf %2, %363 : vector<8x256xf32>
    %365 = vector.extract_strided_slice %364 {offsets = [0, 0], sizes = [4, 256], strides = [1, 1]} : vector<8x256xf32> to vector<4x256xf32>
    %cst_127 = arith.constant dense<0.000000e+00> : vector<256xf32>
    %366 = vector.multi_reduction <add>, %365, %cst_127 [0] : vector<4x256xf32> to vector<256xf32>
    %367 = vector.shape_cast %366 : vector<256xf32> to vector<1x256xf32>
    %368 = vector.extract_strided_slice %364 {offsets = [4, 0], sizes = [4, 256], strides = [1, 1]} : vector<8x256xf32> to vector<4x256xf32>
    %cst_128 = arith.constant dense<0.000000e+00> : vector<256xf32>
    %369 = vector.multi_reduction <add>, %368, %cst_128 [0] : vector<4x256xf32> to vector<256xf32>
    %370 = vector.shape_cast %369 : vector<256xf32> to vector<1x256xf32>
    %c227_i32 = arith.constant 227 : i32
    %371 = tpu.dynamic_rotate %3 by %c227_i32 dim 1 : vector<8x256xf32>, i32 -> vector<8x256xf32>
    %372 = arith.mulf %2, %371 : vector<8x256xf32>
    %373 = vector.extract_strided_slice %372 {offsets = [0, 0], sizes = [4, 256], strides = [1, 1]} : vector<8x256xf32> to vector<4x256xf32>
    %cst_129 = arith.constant dense<0.000000e+00> : vector<256xf32>
    %374 = vector.multi_reduction <add>, %373, %cst_129 [0] : vector<4x256xf32> to vector<256xf32>
    %375 = vector.shape_cast %374 : vector<256xf32> to vector<1x256xf32>
    %376 = vector.extract_strided_slice %372 {offsets = [4, 0], sizes = [4, 256], strides = [1, 1]} : vector<8x256xf32> to vector<4x256xf32>
    %cst_130 = arith.constant dense<0.000000e+00> : vector<256xf32>
    %377 = vector.multi_reduction <add>, %376, %cst_130 [0] : vector<4x256xf32> to vector<256xf32>
    %378 = vector.shape_cast %377 : vector<256xf32> to vector<1x256xf32>
    %c32 = arith.constant 32 : index
    %c0_131 = arith.constant 0 : index
    %379 = vector.load %arg3[%c32, %c0_131] : memref<49x256xf32, #tpu.memory_space<vmem>>, vector<4x256xf32>
    %380 = tpu.concatenate %351, %359, %367, %375 in 0 : vector<1x256xf32>, vector<1x256xf32>, vector<1x256xf32>, vector<1x256xf32> -> vector<4x256xf32>
    %381 = arith.mulf %380, %379 : vector<4x256xf32>
    %c0_132 = arith.constant 0 : index
    %c32_133 = arith.constant 32 : index
    %c0_134 = arith.constant 0 : index
    %382 = vector.load %arg4[%c0_132, %c32_133, %c0_134] : memref<2x49x256xf32, #tpu.memory_space<vmem>>, vector<1x4x256xf32>
    %383 = vector.shape_cast %382 : vector<1x4x256xf32> to vector<4x256xf32>
    %384 = vector.shape_cast %381 : vector<4x256xf32> to vector<1x4x256xf32>
    tpu.vector_store %arg4[%c0_132, %c32_133, %c0_134], %384 {strides = array<i32>} : memref<2x49x256xf32, #tpu.memory_space<vmem>>, vector<1x4x256xf32>,
    %385 = tpu.concatenate %354, %362, %370, %378 in 0 : vector<1x256xf32>, vector<1x256xf32>, vector<1x256xf32>, vector<1x256xf32> -> vector<4x256xf32>
    %386 = arith.mulf %385, %379 : vector<4x256xf32>
    %c1_135 = arith.constant 1 : index
    %c32_136 = arith.constant 32 : index
    %c0_137 = arith.constant 0 : index
    %387 = vector.load %arg4[%c1_135, %c32_136, %c0_137] : memref<2x49x256xf32, #tpu.memory_space<vmem>>, vector<1x4x256xf32>
    %388 = vector.shape_cast %387 : vector<1x4x256xf32> to vector<4x256xf32>
    %389 = vector.shape_cast %386 : vector<4x256xf32> to vector<1x4x256xf32>
    tpu.vector_store %arg4[%c1_135, %c32_136, %c0_137], %389 {strides = array<i32>} : memref<2x49x256xf32, #tpu.memory_space<vmem>>, vector<1x4x256xf32>,
    %c226_i32 = arith.constant 226 : i32
    %390 = tpu.dynamic_rotate %3 by %c226_i32 dim 1 : vector<8x256xf32>, i32 -> vector<8x256xf32>
    %391 = arith.mulf %2, %390 : vector<8x256xf32>
    %392 = vector.extract_strided_slice %391 {offsets = [0, 0], sizes = [4, 256], strides = [1, 1]} : vector<8x256xf32> to vector<4x256xf32>
    %cst_138 = arith.constant dense<0.000000e+00> : vector<256xf32>
    %393 = vector.multi_reduction <add>, %392, %cst_138 [0] : vector<4x256xf32> to vector<256xf32>
    %394 = vector.shape_cast %393 : vector<256xf32> to vector<1x256xf32>
    %395 = vector.extract_strided_slice %391 {offsets = [4, 0], sizes = [4, 256], strides = [1, 1]} : vector<8x256xf32> to vector<4x256xf32>
    %cst_139 = arith.constant dense<0.000000e+00> : vector<256xf32>
    %396 = vector.multi_reduction <add>, %395, %cst_139 [0] : vector<4x256xf32> to vector<256xf32>
    %397 = vector.shape_cast %396 : vector<256xf32> to vector<1x256xf32>
    %c225_i32 = arith.constant 225 : i32
    %398 = tpu.dynamic_rotate %3 by %c225_i32 dim 1 : vector<8x256xf32>, i32 -> vector<8x256xf32>
    %399 = arith.mulf %2, %398 : vector<8x256xf32>
    %400 = vector.extract_strided_slice %399 {offsets = [0, 0], sizes = [4, 256], strides = [1, 1]} : vector<8x256xf32> to vector<4x256xf32>
    %cst_140 = arith.constant dense<0.000000e+00> : vector<256xf32>
    %401 = vector.multi_reduction <add>, %400, %cst_140 [0] : vector<4x256xf32> to vector<256xf32>
    %402 = vector.shape_cast %401 : vector<256xf32> to vector<1x256xf32>
    %403 = vector.extract_strided_slice %399 {offsets = [4, 0], sizes = [4, 256], strides = [1, 1]} : vector<8x256xf32> to vector<4x256xf32>
    %cst_141 = arith.constant dense<0.000000e+00> : vector<256xf32>
    %404 = vector.multi_reduction <add>, %403, %cst_141 [0] : vector<4x256xf32> to vector<256xf32>
    %405 = vector.shape_cast %404 : vector<256xf32> to vector<1x256xf32>
    %c224_i32 = arith.constant 224 : i32
    %406 = tpu.dynamic_rotate %3 by %c224_i32 dim 1 : vector<8x256xf32>, i32 -> vector<8x256xf32>
    %407 = arith.mulf %2, %406 : vector<8x256xf32>
    %408 = vector.extract_strided_slice %407 {offsets = [0, 0], sizes = [4, 256], strides = [1, 1]} : vector<8x256xf32> to vector<4x256xf32>
    %cst_142 = arith.constant dense<0.000000e+00> : vector<256xf32>
    %409 = vector.multi_reduction <add>, %408, %cst_142 [0] : vector<4x256xf32> to vector<256xf32>
    %410 = vector.shape_cast %409 : vector<256xf32> to vector<1x256xf32>
    %411 = vector.extract_strided_slice %407 {offsets = [4, 0], sizes = [4, 256], strides = [1, 1]} : vector<8x256xf32> to vector<4x256xf32>
    %cst_143 = arith.constant dense<0.000000e+00> : vector<256xf32>
    %412 = vector.multi_reduction <add>, %411, %cst_143 [0] : vector<4x256xf32> to vector<256xf32>
    %413 = vector.shape_cast %412 : vector<256xf32> to vector<1x256xf32>
    %c223_i32 = arith.constant 223 : i32
    %414 = tpu.dynamic_rotate %3 by %c223_i32 dim 1 : vector<8x256xf32>, i32 -> vector<8x256xf32>
    %415 = arith.mulf %2, %414 : vector<8x256xf32>
    %416 = vector.extract_strided_slice %415 {offsets = [0, 0], sizes = [4, 256], strides = [1, 1]} : vector<8x256xf32> to vector<4x256xf32>
    %cst_144 = arith.constant dense<0.000000e+00> : vector<256xf32>
    %417 = vector.multi_reduction <add>, %416, %cst_144 [0] : vector<4x256xf32> to vector<256xf32>
    %418 = vector.shape_cast %417 : vector<256xf32> to vector<1x256xf32>
    %419 = vector.extract_strided_slice %415 {offsets = [4, 0], sizes = [4, 256], strides = [1, 1]} : vector<8x256xf32> to vector<4x256xf32>
    %cst_145 = arith.constant dense<0.000000e+00> : vector<256xf32>
    %420 = vector.multi_reduction <add>, %419, %cst_145 [0] : vector<4x256xf32> to vector<256xf32>
    %421 = vector.shape_cast %420 : vector<256xf32> to vector<1x256xf32>
    %c36 = arith.constant 36 : index
    %c0_146 = arith.constant 0 : index
    %422 = vector.load %arg3[%c36, %c0_146] : memref<49x256xf32, #tpu.memory_space<vmem>>, vector<4x256xf32>
    %423 = tpu.concatenate %394, %402, %410, %418 in 0 : vector<1x256xf32>, vector<1x256xf32>, vector<1x256xf32>, vector<1x256xf32> -> vector<4x256xf32>
    %424 = arith.mulf %423, %422 : vector<4x256xf32>
    %c0_147 = arith.constant 0 : index
    %c36_148 = arith.constant 36 : index
    %c0_149 = arith.constant 0 : index
    %425 = vector.load %arg4[%c0_147, %c36_148, %c0_149] : memref<2x49x256xf32, #tpu.memory_space<vmem>>, vector<1x4x256xf32>
    %426 = vector.shape_cast %425 : vector<1x4x256xf32> to vector<4x256xf32>
    %427 = vector.shape_cast %424 : vector<4x256xf32> to vector<1x4x256xf32>
    tpu.vector_store %arg4[%c0_147, %c36_148, %c0_149], %427 {strides = array<i32>} : memref<2x49x256xf32, #tpu.memory_space<vmem>>, vector<1x4x256xf32>,
    %428 = tpu.concatenate %397, %405, %413, %421 in 0 : vector<1x256xf32>, vector<1x256xf32>, vector<1x256xf32>, vector<1x256xf32> -> vector<4x256xf32>
    %429 = arith.mulf %428, %422 : vector<4x256xf32>
    %c1_150 = arith.constant 1 : index
    %c36_151 = arith.constant 36 : index
    %c0_152 = arith.constant 0 : index
    %430 = vector.load %arg4[%c1_150, %c36_151, %c0_152] : memref<2x49x256xf32, #tpu.memory_space<vmem>>, vector<1x4x256xf32>
    %431 = vector.shape_cast %430 : vector<1x4x256xf32> to vector<4x256xf32>
    %432 = vector.shape_cast %429 : vector<4x256xf32> to vector<1x4x256xf32>
    tpu.vector_store %arg4[%c1_150, %c36_151, %c0_152], %432 {strides = array<i32>} : memref<2x49x256xf32, #tpu.memory_space<vmem>>, vector<1x4x256xf32>,
    %c222_i32 = arith.constant 222 : i32
    %433 = tpu.dynamic_rotate %3 by %c222_i32 dim 1 : vector<8x256xf32>, i32 -> vector<8x256xf32>
    %434 = arith.mulf %2, %433 : vector<8x256xf32>
    %435 = vector.extract_strided_slice %434 {offsets = [0, 0], sizes = [4, 256], strides = [1, 1]} : vector<8x256xf32> to vector<4x256xf32>
    %cst_153 = arith.constant dense<0.000000e+00> : vector<256xf32>
    %436 = vector.multi_reduction <add>, %435, %cst_153 [0] : vector<4x256xf32> to vector<256xf32>
    %437 = vector.shape_cast %436 : vector<256xf32> to vector<1x256xf32>
    %438 = vector.extract_strided_slice %434 {offsets = [4, 0], sizes = [4, 256], strides = [1, 1]} : vector<8x256xf32> to vector<4x256xf32>
    %cst_154 = arith.constant dense<0.000000e+00> : vector<256xf32>
    %439 = vector.multi_reduction <add>, %438, %cst_154 [0] : vector<4x256xf32> to vector<256xf32>
    %440 = vector.shape_cast %439 : vector<256xf32> to vector<1x256xf32>
    %c221_i32 = arith.constant 221 : i32
    %441 = tpu.dynamic_rotate %3 by %c221_i32 dim 1 : vector<8x256xf32>, i32 -> vector<8x256xf32>
    %442 = arith.mulf %2, %441 : vector<8x256xf32>
    %443 = vector.extract_strided_slice %442 {offsets = [0, 0], sizes = [4, 256], strides = [1, 1]} : vector<8x256xf32> to vector<4x256xf32>
    %cst_155 = arith.constant dense<0.000000e+00> : vector<256xf32>
    %444 = vector.multi_reduction <add>, %443, %cst_155 [0] : vector<4x256xf32> to vector<256xf32>
    %445 = vector.shape_cast %444 : vector<256xf32> to vector<1x256xf32>
    %446 = vector.extract_strided_slice %442 {offsets = [4, 0], sizes = [4, 256], strides = [1, 1]} : vector<8x256xf32> to vector<4x256xf32>
    %cst_156 = arith.constant dense<0.000000e+00> : vector<256xf32>
    %447 = vector.multi_reduction <add>, %446, %cst_156 [0] : vector<4x256xf32> to vector<256xf32>
    %448 = vector.shape_cast %447 : vector<256xf32> to vector<1x256xf32>
    %c211_i32 = arith.constant 211 : i32
    %449 = tpu.dynamic_rotate %3 by %c211_i32 dim 1 : vector<8x256xf32>, i32 -> vector<8x256xf32>
    %450 = arith.mulf %2, %449 : vector<8x256xf32>
    %451 = vector.extract_strided_slice %450 {offsets = [0, 0], sizes = [4, 256], strides = [1, 1]} : vector<8x256xf32> to vector<4x256xf32>
    %cst_157 = arith.constant dense<0.000000e+00> : vector<256xf32>
    %452 = vector.multi_reduction <add>, %451, %cst_157 [0] : vector<4x256xf32> to vector<256xf32>
    %453 = vector.shape_cast %452 : vector<256xf32> to vector<1x256xf32>
    %454 = vector.extract_strided_slice %450 {offsets = [4, 0], sizes = [4, 256], strides = [1, 1]} : vector<8x256xf32> to vector<4x256xf32>
    %cst_158 = arith.constant dense<0.000000e+00> : vector<256xf32>
    %455 = vector.multi_reduction <add>, %454, %cst_158 [0] : vector<4x256xf32> to vector<256xf32>
    %456 = vector.shape_cast %455 : vector<256xf32> to vector<1x256xf32>
    %c210_i32 = arith.constant 210 : i32
    %457 = tpu.dynamic_rotate %3 by %c210_i32 dim 1 : vector<8x256xf32>, i32 -> vector<8x256xf32>
    %458 = arith.mulf %2, %457 : vector<8x256xf32>
    %459 = vector.extract_strided_slice %458 {offsets = [0, 0], sizes = [4, 256], strides = [1, 1]} : vector<8x256xf32> to vector<4x256xf32>
    %cst_159 = arith.constant dense<0.000000e+00> : vector<256xf32>
    %460 = vector.multi_reduction <add>, %459, %cst_159 [0] : vector<4x256xf32> to vector<256xf32>
    %461 = vector.shape_cast %460 : vector<256xf32> to vector<1x256xf32>
    %462 = vector.extract_strided_slice %458 {offsets = [4, 0], sizes = [4, 256], strides = [1, 1]} : vector<8x256xf32> to vector<4x256xf32>
    %cst_160 = arith.constant dense<0.000000e+00> : vector<256xf32>
    %463 = vector.multi_reduction <add>, %462, %cst_160 [0] : vector<4x256xf32> to vector<256xf32>
    %464 = vector.shape_cast %463 : vector<256xf32> to vector<1x256xf32>
    %c40 = arith.constant 40 : index
    %c0_161 = arith.constant 0 : index
    %465 = vector.load %arg3[%c40, %c0_161] : memref<49x256xf32, #tpu.memory_space<vmem>>, vector<4x256xf32>
    %466 = tpu.concatenate %437, %445, %453, %461 in 0 : vector<1x256xf32>, vector<1x256xf32>, vector<1x256xf32>, vector<1x256xf32> -> vector<4x256xf32>
    %467 = arith.mulf %466, %465 : vector<4x256xf32>
    %c0_162 = arith.constant 0 : index
    %c40_163 = arith.constant 40 : index
    %c0_164 = arith.constant 0 : index
    %468 = vector.load %arg4[%c0_162, %c40_163, %c0_164] : memref<2x49x256xf32, #tpu.memory_space<vmem>>, vector<1x4x256xf32>
    %469 = vector.shape_cast %468 : vector<1x4x256xf32> to vector<4x256xf32>
    %470 = vector.shape_cast %467 : vector<4x256xf32> to vector<1x4x256xf32>
    tpu.vector_store %arg4[%c0_162, %c40_163, %c0_164], %470 {strides = array<i32>} : memref<2x49x256xf32, #tpu.memory_space<vmem>>, vector<1x4x256xf32>,
    %471 = tpu.concatenate %440, %448, %456, %464 in 0 : vector<1x256xf32>, vector<1x256xf32>, vector<1x256xf32>, vector<1x256xf32> -> vector<4x256xf32>
    %472 = arith.mulf %471, %465 : vector<4x256xf32>
    %c1_165 = arith.constant 1 : index
    %c40_166 = arith.constant 40 : index
    %c0_167 = arith.constant 0 : index
    %473 = vector.load %arg4[%c1_165, %c40_166, %c0_167] : memref<2x49x256xf32, #tpu.memory_space<vmem>>, vector<1x4x256xf32>
    %474 = vector.shape_cast %473 : vector<1x4x256xf32> to vector<4x256xf32>
    %475 = vector.shape_cast %472 : vector<4x256xf32> to vector<1x4x256xf32>
    tpu.vector_store %arg4[%c1_165, %c40_166, %c0_167], %475 {strides = array<i32>} : memref<2x49x256xf32, #tpu.memory_space<vmem>>, vector<1x4x256xf32>,
    %c209_i32 = arith.constant 209 : i32
    %476 = tpu.dynamic_rotate %3 by %c209_i32 dim 1 : vector<8x256xf32>, i32 -> vector<8x256xf32>
    %477 = arith.mulf %2, %476 : vector<8x256xf32>
    %478 = vector.extract_strided_slice %477 {offsets = [0, 0], sizes = [4, 256], strides = [1, 1]} : vector<8x256xf32> to vector<4x256xf32>
    %cst_168 = arith.constant dense<0.000000e+00> : vector<256xf32>
    %479 = vector.multi_reduction <add>, %478, %cst_168 [0] : vector<4x256xf32> to vector<256xf32>
    %480 = vector.shape_cast %479 : vector<256xf32> to vector<1x256xf32>
    %481 = vector.extract_strided_slice %477 {offsets = [4, 0], sizes = [4, 256], strides = [1, 1]} : vector<8x256xf32> to vector<4x256xf32>
    %cst_169 = arith.constant dense<0.000000e+00> : vector<256xf32>
    %482 = vector.multi_reduction <add>, %481, %cst_169 [0] : vector<4x256xf32> to vector<256xf32>
    %483 = vector.shape_cast %482 : vector<256xf32> to vector<1x256xf32>
    %c208_i32 = arith.constant 208 : i32
    %484 = tpu.dynamic_rotate %3 by %c208_i32 dim 1 : vector<8x256xf32>, i32 -> vector<8x256xf32>
    %485 = arith.mulf %2, %484 : vector<8x256xf32>
    %486 = vector.extract_strided_slice %485 {offsets = [0, 0], sizes = [4, 256], strides = [1, 1]} : vector<8x256xf32> to vector<4x256xf32>
    %cst_170 = arith.constant dense<0.000000e+00> : vector<256xf32>
    %487 = vector.multi_reduction <add>, %486, %cst_170 [0] : vector<4x256xf32> to vector<256xf32>
    %488 = vector.shape_cast %487 : vector<256xf32> to vector<1x256xf32>
    %489 = vector.extract_strided_slice %485 {offsets = [4, 0], sizes = [4, 256], strides = [1, 1]} : vector<8x256xf32> to vector<4x256xf32>
    %cst_171 = arith.constant dense<0.000000e+00> : vector<256xf32>
    %490 = vector.multi_reduction <add>, %489, %cst_171 [0] : vector<4x256xf32> to vector<256xf32>
    %491 = vector.shape_cast %490 : vector<256xf32> to vector<1x256xf32>
    %c207_i32 = arith.constant 207 : i32
    %492 = tpu.dynamic_rotate %3 by %c207_i32 dim 1 : vector<8x256xf32>, i32 -> vector<8x256xf32>
    %493 = arith.mulf %2, %492 : vector<8x256xf32>
    %494 = vector.extract_strided_slice %493 {offsets = [0, 0], sizes = [4, 256], strides = [1, 1]} : vector<8x256xf32> to vector<4x256xf32>
    %cst_172 = arith.constant dense<0.000000e+00> : vector<256xf32>
    %495 = vector.multi_reduction <add>, %494, %cst_172 [0] : vector<4x256xf32> to vector<256xf32>
    %496 = vector.shape_cast %495 : vector<256xf32> to vector<1x256xf32>
    %497 = vector.extract_strided_slice %493 {offsets = [4, 0], sizes = [4, 256], strides = [1, 1]} : vector<8x256xf32> to vector<4x256xf32>
    %cst_173 = arith.constant dense<0.000000e+00> : vector<256xf32>
    %498 = vector.multi_reduction <add>, %497, %cst_173 [0] : vector<4x256xf32> to vector<256xf32>
    %499 = vector.shape_cast %498 : vector<256xf32> to vector<1x256xf32>
    %c206_i32 = arith.constant 206 : i32
    %500 = tpu.dynamic_rotate %3 by %c206_i32 dim 1 : vector<8x256xf32>, i32 -> vector<8x256xf32>
    %501 = arith.mulf %2, %500 : vector<8x256xf32>
    %502 = vector.extract_strided_slice %501 {offsets = [0, 0], sizes = [4, 256], strides = [1, 1]} : vector<8x256xf32> to vector<4x256xf32>
    %cst_174 = arith.constant dense<0.000000e+00> : vector<256xf32>
    %503 = vector.multi_reduction <add>, %502, %cst_174 [0] : vector<4x256xf32> to vector<256xf32>
    %504 = vector.shape_cast %503 : vector<256xf32> to vector<1x256xf32>
    %505 = vector.extract_strided_slice %501 {offsets = [4, 0], sizes = [4, 256], strides = [1, 1]} : vector<8x256xf32> to vector<4x256xf32>
    %cst_175 = arith.constant dense<0.000000e+00> : vector<256xf32>
    %506 = vector.multi_reduction <add>, %505, %cst_175 [0] : vector<4x256xf32> to vector<256xf32>
    %507 = vector.shape_cast %506 : vector<256xf32> to vector<1x256xf32>
    %c44 = arith.constant 44 : index
    %c0_176 = arith.constant 0 : index
    %508 = vector.load %arg3[%c44, %c0_176] : memref<49x256xf32, #tpu.memory_space<vmem>>, vector<4x256xf32>
    %509 = tpu.concatenate %480, %488, %496, %504 in 0 : vector<1x256xf32>, vector<1x256xf32>, vector<1x256xf32>, vector<1x256xf32> -> vector<4x256xf32>
    %510 = arith.mulf %509, %508 : vector<4x256xf32>
    %c0_177 = arith.constant 0 : index
    %c44_178 = arith.constant 44 : index
    %c0_179 = arith.constant 0 : index
    %511 = vector.load %arg4[%c0_177, %c44_178, %c0_179] : memref<2x49x256xf32, #tpu.memory_space<vmem>>, vector<1x4x256xf32>
    %512 = vector.shape_cast %511 : vector<1x4x256xf32> to vector<4x256xf32>
    %513 = vector.shape_cast %510 : vector<4x256xf32> to vector<1x4x256xf32>
    tpu.vector_store %arg4[%c0_177, %c44_178, %c0_179], %513 {strides = array<i32>} : memref<2x49x256xf32, #tpu.memory_space<vmem>>, vector<1x4x256xf32>,
    %514 = tpu.concatenate %483, %491, %499, %507 in 0 : vector<1x256xf32>, vector<1x256xf32>, vector<1x256xf32>, vector<1x256xf32> -> vector<4x256xf32>
    %515 = arith.mulf %514, %508 : vector<4x256xf32>
    %c1_180 = arith.constant 1 : index
    %c44_181 = arith.constant 44 : index
    %c0_182 = arith.constant 0 : index
    %516 = vector.load %arg4[%c1_180, %c44_181, %c0_182] : memref<2x49x256xf32, #tpu.memory_space<vmem>>, vector<1x4x256xf32>
    %517 = vector.shape_cast %516 : vector<1x4x256xf32> to vector<4x256xf32>
    %518 = vector.shape_cast %515 : vector<4x256xf32> to vector<1x4x256xf32>
    tpu.vector_store %arg4[%c1_180, %c44_181, %c0_182], %518 {strides = array<i32>} : memref<2x49x256xf32, #tpu.memory_space<vmem>>, vector<1x4x256xf32>,
    %c205_i32 = arith.constant 205 : i32
    %519 = tpu.dynamic_rotate %3 by %c205_i32 dim 1 : vector<8x256xf32>, i32 -> vector<8x256xf32>
    %520 = arith.mulf %2, %519 : vector<8x256xf32>
    %521 = vector.extract_strided_slice %520 {offsets = [0, 0], sizes = [4, 256], strides = [1, 1]} : vector<8x256xf32> to vector<4x256xf32>
    %cst_183 = arith.constant dense<0.000000e+00> : vector<256xf32>
    %522 = vector.multi_reduction <add>, %521, %cst_183 [0] : vector<4x256xf32> to vector<256xf32>
    %523 = vector.shape_cast %522 : vector<256xf32> to vector<1x256xf32>
    %524 = vector.extract_strided_slice %520 {offsets = [4, 0], sizes = [4, 256], strides = [1, 1]} : vector<8x256xf32> to vector<4x256xf32>
    %cst_184 = arith.constant dense<0.000000e+00> : vector<256xf32>
    %525 = vector.multi_reduction <add>, %524, %cst_184 [0] : vector<4x256xf32> to vector<256xf32>
    %526 = vector.shape_cast %525 : vector<256xf32> to vector<1x256xf32>
    %c48 = arith.constant 48 : index
    %c0_185 = arith.constant 0 : index
    %527 = vector.load %arg3[%c48, %c0_185] : memref<49x256xf32, #tpu.memory_space<vmem>>, vector<1x256xf32>
    %528 = arith.mulf %523, %527 : vector<1x256xf32>
    %c0_186 = arith.constant 0 : index
    %c48_187 = arith.constant 48 : index
    %c0_188 = arith.constant 0 : index
    %529 = vector.load %arg4[%c0_186, %c48_187, %c0_188] : memref<2x49x256xf32, #tpu.memory_space<vmem>>, vector<1x1x256xf32>
    %530 = vector.shape_cast %529 : vector<1x1x256xf32> to vector<1x256xf32>
    %531 = vector.shape_cast %528 : vector<1x256xf32> to vector<1x1x256xf32>
    tpu.vector_store %arg4[%c0_186, %c48_187, %c0_188], %531 {strides = array<i32>} : memref<2x49x256xf32, #tpu.memory_space<vmem>>, vector<1x1x256xf32>,
    %532 = arith.mulf %526, %527 : vector<1x256xf32>
    %c1_189 = arith.constant 1 : index
    %c48_190 = arith.constant 48 : index
    %c0_191 = arith.constant 0 : index
    %533 = vector.load %arg4[%c1_189, %c48_190, %c0_191] : memref<2x49x256xf32, #tpu.memory_space<vmem>>, vector<1x1x256xf32>
    %534 = vector.shape_cast %533 : vector<1x1x256xf32> to vector<1x256xf32>
    %535 = vector.shape_cast %532 : vector<1x256xf32> to vector<1x1x256xf32>
    tpu.vector_store %arg4[%c1_189, %c48_190, %c0_191], %535 {strides = array<i32>} : memref<2x49x256xf32, #tpu.memory_space<vmem>>, vector<1x1x256xf32>,
    return
  }
  func.func @transform_0(%arg0: i32) -> (i32, i32) {
    %c0_i32 = arith.constant 0 : i32
    %c0_i32_0 = arith.constant 0 : i32
    %c0_i32_1 = arith.constant 0 : i32
    return %c0_i32, %c0_i32_0 : i32, i32
  }
  func.func @transform_1(%arg0: i32) -> (i32, i32) {
    %c0_i32 = arith.constant 0 : i32
    %c0_i32_0 = arith.constant 0 : i32
    %c0_i32_1 = arith.constant 0 : i32
    return %c0_i32, %c0_i32_0 : i32, i32
  }
  func.func @transform_2(%arg0: i32) -> (i32, i32) {
    %c0_i32 = arith.constant 0 : i32
    %c0_i32_0 = arith.constant 0 : i32
    %c0_i32_1 = arith.constant 0 : i32
    return %c0_i32, %c0_i32_0 : i32, i32
  }
  func.func @transform_3(%arg0: i32) -> (i32, i32, i32) {
    %c0_i32 = arith.constant 0 : i32
    %c0_i32_0 = arith.constant 0 : i32
    %c0_i32_1 = arith.constant 0 : i32
    %c0_i32_2 = arith.constant 0 : i32
    return %c0_i32, %c0_i32_0, %c0_i32_1 : i32, i32, i32
  }
}

</mosaic_0001>

<bundles_post_ra>
// kernel: tpu_custom_call.1
= control target key start
LH: loop header
LB: loop body
LE: loop exit
PB: predicated region body
PF: predicated region fallthrough
CT: control target
= control target key end

     0   :  { %8 = vsyncpa [#allocation3], 0  ;;  %s4083_s0 = inlined_call_operand.hbm [shape: f32[8,256], index: 0, kind: input, shape index: {}]   ;;  %s4084_s1 = inlined_call_operand.hbm [shape: f32[8,256], index: 1, kind: input, shape index: {}]   ;;  %s4085_s2 = inlined_call_operand.hbm [shape: f32[49,256], index: 2, kind: input, shape index: {}]   ;;  %s4086_s3 = inlined_call_operand.vmem [shape: f32[2,49,256], index: 3, kind: output, shape index: {}]  }
   0x1   :  { %9 = vsyncpa [#allocation5], 0  ;;  %s26_s14 = sshll.u32 %s4084_s1, 4  ;;  %s2738_s15 = smov [#allocation4]   ;;  %s27_s14 = int_to_ptr.hbm [resolvable:$true] %s26_s14 }
   0x2   :  { %s28_s16 = sshll.u32 %s2738_s15, 4  ;;  %s15_s19 = sshll.u32 %s4083_s0, 4  ;;  %s29_s16 = int_to_ptr.vmem [resolvable:$true] %s28_s16  ;;  %s16_s19 = int_to_ptr.hbm [resolvable:$true] %s15_s19 }
   0x3   :  { %31 = dma.hbm_to_vmem [thread:$0]  %s27_s14, 256, %s29_s16, [#allocation5]  }
   0x4   :  { %s2739_s20 = smov [#allocation2]   ;;  %s36_s24 = sshll.u32 %s4085_s2, 4  ;;  %s37_s24 = int_to_ptr.hbm [resolvable:$true] %s36_s24 }
   0x5   :  { %s17_s21 = sshll.u32 %s2739_s20, 4  ;;  %s2740_s1 = smov [#allocation6]   ;;  %s18_s21 = int_to_ptr.vmem [resolvable:$true] %s17_s21 }
   0x6   :  { %20 = dma.hbm_to_vmem [thread:$0]  %s16_s19, 256, %s18_s21, [#allocation3]  }
   0x7   :  { %s38_s25 = sshll.u32 %s2740_s1, 4  ;;  %s2741_s26 = smov 256   ;;  %s39_s25 = int_to_ptr.vmem [resolvable:$true] %s38_s25 }
   0x8   :  { %s2742_s27 = smov 16  }
   0x9   :  { %44 = dma.hbm_to_vmem [thread:$0]  %s37_s24, 1792, %s39_s25, [#allocation5], %s2741_s26, %s2741_s26, %s2742_s27  }
   0xa   :  { %2734 = dma.done.wait [#allocation3], 256  }
   0xb   :  { %2735 = vsyncadd [#allocation3], 4294967040 }
   0xc   :  { %2736 = dma.done.wait [#allocation5], 2048  }
   0xd   :  { %2737 = vsyncadd [#allocation5], 4294965248  ;;  %v2820_v0 = vld [vmem:[#allocation4] sm:$0xff]  ;;  %s2743_s0 = smov 50   ;;  %s2744_s2 = smov 51   ;;  %v2825_v1 = vld [vmem:[#allocation4 + $0x8] sm:$0xff]  ;;  %v67_v2 = vlaneseq }
   0xe   :  { %109 = vrot.lane.b32.xlu1 %v2820_v0, %s2743_s0  ;;  %63 = vrot.lane.b32.xlu0 %v2820_v0, %s2744_s2  ;;  %s2745_s28 = smov 49   ;;  %s2746_s29 = smov 48   ;;  %v57_v5 = vld [vmem:[#allocation2] sm:$0xff]  ;;  %v58_v6 = vld [vmem:[#allocation2 + $0x8] sm:$0xff]  ;;  %vm74_vm1 = vcmask 1043456   ;;  %vm240_vm5 = vcmask 1040384  }
   0xf   :  { %152 = vrot.lane.b32.xlu2 %v2820_v0, %s2745_s28  ;;  %s2747_s30 = smov 47   ;;  %s2748_s4 = smov 46   ;;  %v2863_v4 = vand.u32 127, %v67_v2  ;;  %v2868_v7 = vmul.f32 0.25, %v57_v5  ;;  %v2870_v8 = vmul.f32 0.25, %v58_v6  ;;  %vm243_vm6 = vcmask 1041408  }
  0x10   :  { %s2749_s5 = smov 45   ;;  %s2750_s6 = smov 35   ;;  %vm246_vm8 = vcmask 1042432  }
  0x11   :  { %s2751_s7 = smov 34   ;;  %s2752_s8 = smov 33   ;;  %vm156_vm0 = vcmp.lt.s32.totalorder %v2863_v4, 49  ;;  %vm113_vm2 = vcmp.lt.s32.totalorder %v2863_v4, 50  ;;  %vm69_vm3 = vcmp.lt.s32.totalorder %v2863_v4, 51  ;;  %vm199_vm4 = vcmp.lt.s32.totalorder %v2863_v4, 48 }
  0x12   :  { %s2753_s9 = smov 32   ;;  %s2754_s10 = smov 31   ;;  %vm311_vm7 = vcmp.lt.s32.totalorder %v2863_v4, 46  ;;  %vm268_vm9 = vcmp.lt.s32.totalorder %v2863_v4, 47  ;;  %vm354_vm10 = vcmp.lt.s32.totalorder %v2863_v4, 45  ;;  %vm480_vm11 = vcmp.lt.s32.totalorder %v2863_v4, 34 }
  0x13   :  { %s2755_s11 = smov 30   ;;  %s2756_s12 = smov 29   ;;  %vm397_vm12 = vcmp.lt.s32.totalorder %v2863_v4, 35  ;;  %vm523_vm13 = vcmp.lt.s32.totalorder %v2863_v4, 33  ;;  %vm609_vm14 = vcmp.lt.s32.totalorder %v2863_v4, 31  ;;  %vm566_vm15 = vcmp.lt.s32.totalorder %v2863_v4, 32 }
  0x14   :  { %s2757_s13 = smov 19   ;;  %s2758_s14 = smov 18  }
  0x15   :  { %s2759_s15 = smov 17   ;;  %s2760_s16 = smov 15  }
  0x16   :  { %111 = vrot.lane.b32.xlu1 %v2825_v1, %s2743_s0  ;;  %65 = vrot.lane.b32.xlu0 %v2825_v1, %s2744_s2  ;;  %s2761_s17 = smov 14   ;;  %s2762_s18 = smov 13  }
  0x17   :  { %154 = vrot.lane.b32.xlu2 %v2825_v1, %s2745_s28  ;;  %s2763_s19 = smov 3   ;;  %s2764_s20 = smov 2  }
  0x18   :  { %s2765_s21 = smov 1   ;;  %s2766_s22 = smov 127  }
  0x19   :  { %s2767_s23 = smov 126   ;;  %s2768_s24 = smov 125  }
  0x1a   :  { %s2769_s1 = smov 115   ;;  %s2770_s25 = smov 114  }
  0x1b   :  { %s2771_s26 = smov 113  }
  0x1e   :  { %197 = vrot.lane.b32.xlu1 %v2825_v1, %s2746_s29  ;;  %195 = vrot.lane.b32.xlu0 %v2820_v0, %s2746_s29  ;;  %s2772_s29 = smov 112  }
  0x1f   :  { %264 = vrot.lane.b32.xlu2 %v2820_v0, %s2747_s30 }
  0x26   :  { %307 = vrot.lane.b32.xlu1 %v2820_v0, %s2748_s4  ;;  %266 = vrot.lane.b32.xlu0 %v2825_v1, %s2747_s30 }
  0x27   :  { %309 = vrot.lane.b32.xlu2 %v2825_v1, %s2748_s4 }
  0x2e   :  { %352 = vrot.lane.b32.xlu1 %v2825_v1, %s2749_s5  ;;  %350 = vrot.lane.b32.xlu0 %v2820_v0, %s2749_s5  ;;  %s2773_s5 = smov 111  }
  0x2f   :  { %393 = vrot.lane.b32.xlu2 %v2820_v0, %s2750_s6 }
  0x36   :  { %476 = vrot.lane.b32.xlu1 %v2820_v0, %s2751_s7  ;;  %395 = vrot.lane.b32.xlu0 %v2825_v1, %s2750_s6 }
  0x37   :  { %478 = vrot.lane.b32.xlu2 %v2825_v1, %s2751_s7  ;;  %s2787_s7 = smov 77  }
  0x3e   :  { %521 = vrot.lane.b32.xlu1 %v2825_v1, %s2752_s8  ;;  %519 = vrot.lane.b32.xlu0 %v2820_v0, %s2752_s8  ;;  %s2774_s8 = smov 110  }
  0x3f   :  { %562 = vrot.lane.b32.xlu2 %v2820_v0, %s2753_s9 }
  0x46   :  { %605 = vrot.lane.b32.xlu1 %v2820_v0, %s2754_s10  ;;  %564 = vrot.lane.b32.xlu0 %v2825_v1, %s2753_s9  ;;  %s2775_s9 = smov 109  }
  0x47   :  { %607 = vrot.lane.b32.xlu2 %v2825_v1, %s2754_s10  ;;  %s2776_s10 = smov 99  }
  0x4e   :  { %672 = vrot.lane.b32.xlu1 %v2825_v1, %s2755_s11  ;;  %670 = vrot.lane.b32.xlu0 %v2820_v0, %s2755_s11  ;;  %s2777_s11 = smov 98  }
  0x4f   :  { %713 = vrot.lane.b32.xlu2 %v2820_v0, %s2756_s12 }
  0x56   :  { %756 = vrot.lane.b32.xlu1 %v2820_v0, %s2757_s13  ;;  %715 = vrot.lane.b32.xlu0 %v2825_v1, %s2756_s12  ;;  %s2778_s12 = smov 97  }
  0x57   :  { %758 = vrot.lane.b32.xlu2 %v2825_v1, %s2757_s13  ;;  %s2779_s13 = smov 96  }
  0x5e   :  { %801 = vrot.lane.b32.xlu1 %v2825_v1, %s2758_s14  ;;  %799 = vrot.lane.b32.xlu0 %v2820_v0, %s2758_s14  ;;  %s2780_s14 = smov 81  }
  0x5f   :  { %882 = vrot.lane.b32.xlu2 %v2820_v0, %s2759_s15 }
  0x66   :  { %925 = vrot.lane.b32.xlu1 %v2820_v0, %s2742_s27  ;;  %884 = vrot.lane.b32.xlu0 %v2825_v1, %s2759_s15  ;;  %s2781_s15 = smov 80  }
  0x67   :  { %927 = vrot.lane.b32.xlu2 %v2825_v1, %s2742_s27  ;;  %s2786_s27 = smov 78  }
  0x69   :  { %v153_v3 = vpop.permute.xlu2 %152 }
  0x6e   :  { %970 = vrot.lane.b32.xlu1 %v2825_v1, %s2760_s16  ;;  %968 = vrot.lane.b32.xlu0 %v2820_v0, %s2760_s16 }
  0x6f   :  { %1011 = vrot.lane.b32.xlu2 %v2820_v0, %s2761_s17 }
  0x71   :  { %v155_v9 = vpop.permute.xlu2 %154 }
  0x72   :  { %v157_v10 = vsel %vm156_vm0, %v153_v3, %v155_v9  ;;  %v158_v11 = vsel %vm156_vm0, %v155_v9, %v153_v3  ;;  %vm674_vm0 = vcmp.lt.s32.totalorder %v2863_v4, 30 }
  0x73   :  { %v159_v12 = vmul.f32 %v158_v11, %v2868_v7  ;;  %v160_v13 = vmul.f32 %v157_v10, %v2870_v8 }
  0x75   :  { %v161_v14 = vsel %vm74_vm1, %v159_v12, 0.0  ;;  %v168_v15 = vsel %vm74_vm1, %v160_v13, 0.0  ;;  %v177_v16 = vrot.slane %v159_v12, 4  ;;  %v178_v17 = vrot.slane %v160_v13, 4 }
  0x76   :  { %1076 = vrot.lane.b32.xlu1 %v2820_v0, %s2762_s18  ;;  %1013 = vrot.lane.b32.xlu0 %v2825_v1, %s2761_s17  ;;  %v162_v18 = vrot.slane %v161_v14, 4  ;;  %v169_v19 = vrot.slane %v168_v15, 4 }
  0x77   :  { %v181_v20 = vsel %vm74_vm1, %v177_v16, 0.0  ;;  %v188_v21 = vsel %vm74_vm1, %v178_v17, 0.0  ;;  %1078 = vrot.lane.b32.xlu2 %v2825_v1, %s2762_s18 }
  0x78   :  { %v182_v22 = vrot.slane %v181_v20, 4  ;;  %v189_v23 = vrot.slane %v188_v21, 4  ;;  %v163_v24 = vadd.f32 %v162_v18, %v161_v14  ;;  %v170_v25 = vadd.f32 %v169_v19, %v168_v15 }
  0x79   :  { %v2911_v14 = vpop.permute.xlu2 %264 }
  0x7a   :  { %v183_v26 = vadd.f32 %v182_v22, %v181_v20  ;;  %v190_v27 = vadd.f32 %v189_v23, %v188_v21  ;;  %v164_v28 = vrot.slane %v163_v24, 2  ;;  %v171_v29 = vrot.slane %v170_v25, 2 }
  0x7c   :  { %v184_v30 = vrot.slane %v183_v26, 2  ;;  %v191_v31 = vrot.slane %v190_v27, 2  ;;  %v165_v34 = vadd.f32 %v164_v28, %v163_v24  ;;  %v172_v35 = vadd.f32 %v171_v29, %v170_v25 }
  0x7e   :  { %1121 = vrot.lane.b32.xlu1 %v2825_v1, %s2763_s19  ;;  %1119 = vrot.lane.b32.xlu0 %v2820_v0, %s2763_s19  ;;  %v185_v36 = vadd.f32 %v184_v30, %v183_v26  ;;  %v192_v37 = vadd.f32 %v191_v31, %v190_v27  ;;  %v166_v38 = vrot.slane %v165_v34, 1  ;;  %v173_v39 = vrot.slane %v172_v35, 1 }
  0x7f   :  { %1162 = vrot.lane.b32.xlu2 %v2820_v0, %s2764_s20 }
  0x80   :  { %v110_v32 = vpop.permute.xlu1 %109  ;;  %v64_v33 = vpop.permute.xlu0 %63  ;;  %v186_v40 = vrot.slane %v185_v36, 1  ;;  %v193_v41 = vrot.slane %v192_v37, 1  ;;  %v2894_v52 = vadd.f32 %v166_v38, %v165_v34  ;;  %v2896_v53 = vadd.f32 %v173_v39, %v172_v35 }
  0x82   :  { %v2898_v54 = vadd.f32 %v186_v40, %v185_v36  ;;  %v2900_v55 = vadd.f32 %v193_v41, %v192_v37 }
  0x86   :  { %1205 = vrot.lane.b32.xlu1 %v2820_v0, %s2765_s21  ;;  %1164 = vrot.lane.b32.xlu0 %v2825_v1, %s2764_s20  ;;  %s2782_s20 = smov 79  }
  0x87   :  { %1207 = vrot.lane.b32.xlu2 %v2825_v1, %s2765_s21 }
  0x88   :  { %v112_v42 = vpop.permute.xlu1 %111  ;;  %v66_v43 = vpop.permute.xlu0 %65 }
  0x89   :  { %v114_v44 = vsel %vm113_vm2, %v110_v32, %v112_v42  ;;  %v115_v45 = vsel %vm113_vm2, %v112_v42, %v110_v32  ;;  %v70_v46 = vsel %vm69_vm3, %v64_v33, %v66_v43  ;;  %v71_v47 = vsel %vm69_vm3, %v66_v43, %v64_v33 }
  0x8a   :  { %v116_v48 = vmul.f32 %v115_v45, %v2868_v7  ;;  %v117_v49 = vmul.f32 %v114_v44, %v2870_v8  ;;  %v72_v50 = vmul.f32 %v71_v47, %v2868_v7  ;;  %v73_v51 = vmul.f32 %v70_v46, %v2870_v8 }
  0x8b   :  { %vm760_vm2 = vcmp.lt.s32.totalorder %v2863_v4, 19  ;;  %vm717_vm3 = vcmp.lt.s32.totalorder %v2863_v4, 29 }
  0x8c   :  { %v118_v56 = vsel %vm74_vm1, %v116_v48, 0.0  ;;  %v125_v57 = vsel %vm74_vm1, %v117_v49, 0.0  ;;  %v134_v58 = vrot.slane %v116_v48, 4  ;;  %v135_v59 = vrot.slane %v117_v49, 4 }
  0x8d   :  { %v119_v60 = vrot.slane %v118_v56, 4  ;;  %v126_v61 = vrot.slane %v125_v57, 4  ;;  %v75_v62 = vsel %vm74_vm1, %v72_v50, 0.0  ;;  %v82_v63 = vsel %vm74_vm1, %v73_v51, 0.0 }
  0x8e   :  { %v138_v3 = vsel %vm74_vm1, %v134_v58, 0.0  ;;  %v145_v5 = vsel %vm74_vm1, %v135_v59, 0.0  ;;  %v76_v6 = vrot.slane %v75_v62, 4  ;;  %v83_v9 = vrot.slane %v82_v63, 4  ;;  %1326 = vrot.lane.b32.xlu1 %v2825_v1, %s2766_s22  ;;  %1324 = vrot.lane.b32.xlu0 %v2820_v0, %s2766_s22 }
  0x8f   :  { %v120_v10 = vadd.f32 %v119_v60, %v118_v56  ;;  %v127_v11 = vadd.f32 %v126_v61, %v125_v57  ;;  %v139_v12 = vrot.slane %v138_v3, 4  ;;  %v146_v13 = vrot.slane %v145_v5, 4  ;;  %1367 = vrot.lane.b32.xlu2 %v2820_v0, %s2767_s23  ;;  %v310_v61 = vpop.permute.xlu2 %309 }
  0x90   :  { %v77_v15 = vadd.f32 %v76_v6, %v75_v62  ;;  %v84_v16 = vadd.f32 %v83_v9, %v82_v63  ;;  %v91_v17 = vrot.slane %v72_v50, 4  ;;  %v92_v18 = vrot.slane %v73_v51, 4  ;;  %v198_v19 = vpop.permute.xlu1 %197  ;;  %v196_v44 = vpop.permute.xlu0 %195 }
  0x91   :  { %v121_v20 = vrot.slane %v120_v10, 2  ;;  %v128_v21 = vrot.slane %v127_v11, 2  ;;  %v140_v22 = vadd.f32 %v139_v12, %v138_v3  ;;  %v147_v23 = vadd.f32 %v146_v13, %v145_v5 }
  0x92   :  { %v78_v24 = vrot.slane %v77_v15, 2  ;;  %v85_v25 = vrot.slane %v84_v16, 2  ;;  %v95_v26 = vsel %vm74_vm1, %v91_v17, 0.0  ;;  %v102_v27 = vsel %vm74_vm1, %v92_v18, 0.0 }
  0x93   :  { %v122_v28 = vadd.f32 %v121_v20, %v120_v10  ;;  %v129_v29 = vadd.f32 %v128_v21, %v127_v11  ;;  %v141_v30 = vrot.slane %v140_v22, 2  ;;  %v148_v31 = vrot.slane %v147_v23, 2 }
  0x94   :  { %v79_v32 = vadd.f32 %v78_v24, %v77_v15  ;;  %v86_v33 = vadd.f32 %v85_v25, %v84_v16  ;;  %v96_v34 = vrot.slane %v95_v26, 4  ;;  %v103_v35 = vrot.slane %v102_v27, 4 }
  0x95   :  { %v123_v36 = vrot.slane %v122_v28, 1  ;;  %v130_v37 = vrot.slane %v129_v29, 1  ;;  %v142_v38 = vadd.f32 %v141_v30, %v140_v22  ;;  %v149_v39 = vadd.f32 %v148_v31, %v147_v23 }
  0x96   :  { %v80_v40 = vrot.slane %v79_v32, 1  ;;  %v87_v41 = vrot.slane %v86_v33, 1  ;;  %v97_v42 = vadd.f32 %v96_v34, %v95_v26  ;;  %v104_v43 = vadd.f32 %v103_v35, %v102_v27  ;;  %1410 = vrot.lane.b32.xlu1 %v2820_v0, %s2768_s24  ;;  %1369 = vrot.lane.b32.xlu0 %v2825_v1, %s2767_s23 }
  0x97   :  { %v124_v45 = vadd.f32 %v123_v36, %v122_v28  ;;  %v131_v46 = vadd.f32 %v130_v37, %v129_v29  ;;  %v143_v47 = vrot.slane %v142_v38, 1  ;;  %v150_v48 = vrot.slane %v149_v39, 1  ;;  %1412 = vrot.lane.b32.xlu2 %v2825_v1, %s2768_s24 }
  0x98   :  { %v81_v49 = vadd.f32 %v80_v40, %v79_v32  ;;  %v88_v50 = vadd.f32 %v87_v41, %v86_v33  ;;  %v98_v51 = vrot.slane %v97_v42, 2  ;;  %v105_v56 = vrot.slane %v104_v43, 2  ;;  %v308_v62 = vpop.permute.xlu1 %307 }
  0x99   :  { %v144_v57 = vadd.f32 %v143_v47, %v142_v38  ;;  %v151_v58 = vadd.f32 %v150_v48, %v149_v39  ;;  %v200_v59 = vsel %vm199_vm4, %v196_v44, %v198_v19  ;;  %v201_v60 = vsel %vm199_vm4, %v198_v19, %v196_v44 }
  0x9a   :  { %v99_v63 = vadd.f32 %v98_v51, %v97_v42  ;;  %v106_v3 = vadd.f32 %v105_v56, %v104_v43  ;;  %v241_v5 = vsel %vm240_vm5, %v81_v49, %v124_v45  ;;  %v242_v6 = vsel %vm240_vm5, %v88_v50, %v131_v46 }
  0x9b   :  { %v202_v9 = vmul.f32 %v201_v60, %v2868_v7  ;;  %v203_v10 = vmul.f32 %v200_v59, %v2870_v8  ;;  %v2932_v11 = vsel %vm243_vm6, %v241_v5, %v2894_v52  ;;  %v2936_v12 = vsel %vm243_vm6, %v242_v6, %v2896_v53 }
  0x9c   :  { %v100_v13 = vrot.slane %v99_v63, 1  ;;  %v107_v15 = vrot.slane %v106_v3, 1  ;;  %v312_v16 = vsel %vm311_vm7, %v308_v62, %v310_v61  ;;  %v313_v17 = vsel %vm311_vm7, %v310_v61, %v308_v62 }
  0x9d   :  { %v204_v18 = vsel %vm74_vm1, %v202_v9, 0.0  ;;  %v211_v19 = vsel %vm74_vm1, %v203_v10, 0.0  ;;  %v220_v20 = vrot.slane %v202_v9, 4  ;;  %v221_v21 = vrot.slane %v203_v10, 4 }
  0x9e   :  { %v101_v52 = vadd.f32 %v100_v13, %v99_v63  ;;  %v108_v22 = vadd.f32 %v107_v15, %v106_v3  ;;  %v205_v23 = vrot.slane %v204_v18, 4  ;;  %v212_v24 = vrot.slane %v211_v19, 4  ;;  %1477 = vrot.lane.b32.xlu1 %v2825_v1, %s2769_s1  ;;  %1475 = vrot.lane.b32.xlu0 %v2820_v0, %s2769_s1  ;;  %v238_v63 = vld [vmem:[#allocation6] sm:$0xf]  ;;  %v239_v3 = vld [vmem:[#allocation6 + $0x8] sm:$0xf] }
  0x9f   :  { %v224_v53 = vsel %vm74_vm1, %v220_v20, 0.0  ;;  %v231_v25 = vsel %vm74_vm1, %v221_v21, 0.0  ;;  %v314_v26 = vmul.f32 %v313_v17, %v2868_v7  ;;  %v315_v27 = vmul.f32 %v312_v16, %v2870_v8  ;;  %1518 = vrot.lane.b32.xlu2 %v2820_v0, %s2770_s25  ;;  %s2783_s1 = smov 95  }
  0xa0   :  { %v253_v28 = vsel %vm240_vm5, %v101_v52, %v144_v57  ;;  %v254_v29 = vsel %vm240_vm5, %v108_v22, %v151_v58  ;;  %v206_v30 = vadd.f32 %v205_v23, %v204_v18  ;;  %v213_v31 = vadd.f32 %v212_v24, %v211_v19  ;;  %v267_v58 = vpop.permute.xlu0 %266  ;;  %v2967_v18 = vpop.permute.xlu2 %393 }
  0xa1   :  { %v225_v32 = vrot.slane %v224_v53, 4  ;;  %v232_v33 = vrot.slane %v231_v25, 4  ;;  %v255_v34 = vsel %vm243_vm6, %v253_v28, %v2898_v54  ;;  %v256_v35 = vsel %vm243_vm6, %v254_v29, %v2900_v55  ;;  %v353_v19 = vpop.permute.xlu1 %352 }
  0xa2   :  { %v207_v36 = vrot.slane %v206_v30, 2  ;;  %v214_v37 = vrot.slane %v213_v31, 2  ;;  %v316_v38 = vsel %vm74_vm1, %v314_v26, 0.0  ;;  %v323_v39 = vsel %vm74_vm1, %v315_v27, 0.0 }
  0xa3   :  { %v226_v40 = vadd.f32 %v225_v32, %v224_v53  ;;  %v233_v41 = vadd.f32 %v232_v33, %v231_v25  ;;  %v317_v42 = vrot.slane %v316_v38, 4  ;;  %v324_v43 = vrot.slane %v323_v39, 4 }
  0xa4   :  { %v208_v44 = vadd.f32 %v207_v36, %v206_v30  ;;  %v215_v45 = vadd.f32 %v214_v37, %v213_v31  ;;  %v332_v46 = vrot.slane %v314_v26, 4  ;;  %v333_v47 = vrot.slane %v315_v27, 4 }
  0xa5   :  { %v227_v54 = vrot.slane %v226_v40, 2  ;;  %v234_v48 = vrot.slane %v233_v41, 2  ;;  %v318_v49 = vadd.f32 %v317_v42, %v316_v38  ;;  %v325_v55 = vadd.f32 %v324_v43, %v323_v39 }
  0xa6   :  { %v209_v50 = vrot.slane %v208_v44, 1  ;;  %v216_v51 = vrot.slane %v215_v45, 1  ;;  %v336_v56 = vsel %vm74_vm1, %v332_v46, 0.0  ;;  %v343_v57 = vsel %vm74_vm1, %v333_v47, 0.0  ;;  %1561 = vrot.lane.b32.xlu1 %v2820_v0, %s2771_s26  ;;  %1520 = vrot.lane.b32.xlu0 %v2825_v1, %s2770_s25  ;;  %s2784_s25 = smov 94  }
  0xa7   :  { %v228_v59 = vadd.f32 %v227_v54, %v226_v40  ;;  %v235_v60 = vadd.f32 %v234_v48, %v233_v41  ;;  %v319_v61 = vrot.slane %v318_v49, 2  ;;  %v326_v62 = vrot.slane %v325_v55, 2  ;;  %1563 = vrot.lane.b32.xlu2 %v2825_v1, %s2771_s26  ;;  %s2785_s26 = smov 93  }
  0xa8   :  { %v210_v5 = vadd.f32 %v209_v50, %v208_v44  ;;  %v217_v6 = vadd.f32 %v216_v51, %v215_v45  ;;  %v337_v9 = vrot.slane %v336_v56, 4  ;;  %v344_v10 = vrot.slane %v343_v57, 4  ;;  %v351_v39 = vpop.permute.xlu0 %350 }
  0xa9   :  { %v229_v13 = vrot.slane %v228_v59, 1  ;;  %v236_v15 = vrot.slane %v235_v60, 1  ;;  %v320_v16 = vadd.f32 %v319_v61, %v318_v49  ;;  %v327_v17 = vadd.f32 %v326_v62, %v325_v55  ;;  %v479_v55 = vpop.permute.xlu2 %478  ;;  %v477_v50 = vpop.permute.xlu1 %476 }
  0xaa   :  { %v247_v20 = vsel %vm246_vm8, %v2932_v11, %v210_v5  ;;  %v248_v21 = vsel %vm246_vm8, %v2936_v12, %v217_v6  ;;  %v338_v52 = vadd.f32 %v337_v9, %v336_v56  ;;  %v345_v22 = vadd.f32 %v344_v10, %v343_v57 }
  0xab   :  { %v230_v23 = vadd.f32 %v229_v13, %v228_v59  ;;  %v237_v24 = vadd.f32 %v236_v15, %v235_v60  ;;  %v249_v53 = vmul.f32 %v247_v20, %v238_v63  ;;  %v250_v25 = vmul.f32 %v248_v21, %v239_v3 }
  0xac   :  { %v321_v26 = vrot.slane %v320_v16, 1  ;;  %v328_v27 = vrot.slane %v327_v17, 1  ;;  %v339_v28 = vrot.slane %v338_v52, 2  ;;  %v346_v29 = vrot.slane %v345_v22, 2 }
  0xad   :  { %251 = vst [vmem:[%s4086_s3] sm:$0xf] %v249_v53  ;;  %v257_v30 = vsel %vm246_vm8, %v255_v34, %v230_v23  ;;  %v258_v11 = vsel %vm246_vm8, %v256_v35, %v237_v24  ;;  %v269_v12 = vsel %vm268_vm9, %v2911_v14, %v267_v58  ;;  %v270_v31 = vsel %vm268_vm9, %v267_v58, %v2911_v14 }
  0xae   :  { %252 = vst [vmem:[%s4086_s3 + $0x8] sm:$0xf] %v250_v25  ;;  %v259_v32 = vmul.f32 %v257_v30, %v238_v63  ;;  %v260_v33 = vmul.f32 %v258_v11, %v239_v3  ;;  %v340_v36 = vadd.f32 %v339_v28, %v338_v52  ;;  %v2987_v37 = vadd.f32 %v346_v29, %v345_v22 }
  0xaf   :  { %v271_v34 = vmul.f32 %v270_v31, %v2868_v7  ;;  %v272_v35 = vmul.f32 %v269_v12, %v2870_v8  ;;  %1606 = vrot.lane.b32.xlu1 %v2825_v1, %s2772_s29  ;;  %v2995_v14 = vadd.f32 %v321_v26, %v320_v16  ;;  %v2997_v38 = vadd.f32 %v328_v27, %v327_v17 }
  0xb0   :  { %2580 = vst [vmem:[%s4086_s3 + $0x70] sm:$0xf] %v259_v32  ;;  %1604 = vrot.lane.b32.xlu0 %v2820_v0, %s2772_s29  ;;  %1687 = vrot.lane.b32.xlu2 %v2820_v0, %s2773_s5  ;;  %v341_v40 = vrot.slane %v340_v36, 1  ;;  %v348_v54 = vrot.slane %v2987_v37, 1  ;;  %v355_v48 = vsel %vm354_vm10, %v351_v39, %v353_v19  ;;  %v356_v49 = vsel %vm354_vm10, %v353_v19, %v351_v39 }
  0xb1   :  { %2581 = vst [vmem:[%s4086_s3 + $0x78] sm:$0xf] %v260_v33  ;;  %v273_v41 = vsel %vm74_vm1, %v271_v34, 0.0  ;;  %v280_v42 = vsel %vm74_vm1, %v272_v35, 0.0  ;;  %v289_v45 = vrot.slane %v271_v34, 4  ;;  %v290_v46 = vrot.slane %v272_v35, 4 }
  0xb2   :  { %v274_v43 = vrot.slane %v273_v41, 4  ;;  %v281_v44 = vrot.slane %v280_v42, 4  ;;  %v3009_v47 = vadd.f32 %v341_v40, %v340_v36  ;;  %v357_v61 = vmul.f32 %v356_v49, %v2868_v7 }
  0xb3   :  { %v293_v57 = vsel %vm74_vm1, %v289_v45, 0.0  ;;  %v300_v58 = vsel %vm74_vm1, %v290_v46, 0.0  ;;  %v358_v62 = vmul.f32 %v355_v48, %v2870_v8  ;;  %v481_v5 = vsel %vm480_vm11, %v477_v50, %v479_v55 }
  0xb4   :  { %v275_v51 = vadd.f32 %v274_v43, %v273_v41  ;;  %v282_v56 = vadd.f32 %v281_v44, %v280_v42  ;;  %v294_v59 = vrot.slane %v293_v57, 4  ;;  %v301_v60 = vrot.slane %v300_v58, 4 }
  0xb5   :  { %v482_v6 = vsel %vm480_vm11, %v479_v55, %v477_v50  ;;  %v359_v13 = vsel %vm74_vm1, %v357_v61, 0.0  ;;  %v366_v15 = vsel %vm74_vm1, %v358_v62, 0.0  ;;  %v375_v22 = vrot.slane %v357_v61, 4 }
  0xb6   :  { %v276_v63 = vrot.slane %v275_v51, 2  ;;  %v283_v3 = vrot.slane %v282_v56, 2  ;;  %v295_v9 = vadd.f32 %v294_v59, %v293_v57  ;;  %v302_v10 = vadd.f32 %v301_v60, %v300_v58  ;;  %v396_v60 = vpop.permute.xlu0 %395 }
  0xb7   :  { %1730 = vrot.lane.b32.xlu1 %v2820_v0, %s2774_s8  ;;  %v360_v19 = vrot.slane %v359_v13, 4  ;;  %v367_v20 = vrot.slane %v366_v15, 4  ;;  %v376_v23 = vrot.slane %v358_v62, 4  ;;  %v379_v29 = vsel %vm74_vm1, %v375_v22, 0.0 }
  0xb8   :  { %v277_v16 = vadd.f32 %v276_v63, %v275_v51  ;;  %v284_v17 = vadd.f32 %v283_v3, %v282_v56  ;;  %1689 = vrot.lane.b32.xlu0 %v2825_v1, %s2773_s5  ;;  %1732 = vrot.lane.b32.xlu2 %v2825_v1, %s2774_s8  ;;  %v296_v21 = vrot.slane %v295_v9, 2  ;;  %v303_v52 = vrot.slane %v302_v10, 2  ;;  %s2788_s8 = smov 83  }
  0xb9   :  { %v361_v25 = vadd.f32 %v360_v19, %v359_v13  ;;  %v368_v26 = vadd.f32 %v367_v20, %v366_v15  ;;  %v386_v30 = vsel %vm74_vm1, %v376_v23, 0.0  ;;  %v380_v34 = vrot.slane %v379_v29, 4 }
  0xba   :  { %v278_v24 = vrot.slane %v277_v16, 1  ;;  %v285_v53 = vrot.slane %v284_v17, 1  ;;  %v297_v27 = vadd.f32 %v296_v21, %v295_v9  ;;  %v304_v28 = vadd.f32 %v303_v52, %v302_v10  ;;  %v3059_v21 = vld [vmem:[#allocation6 + $0x8] sm:$0xf0] }
  0xbb   :  { %v362_v31 = vrot.slane %v361_v25, 2  ;;  %v369_v32 = vrot.slane %v368_v26, 2  ;;  %v387_v35 = vrot.slane %v386_v30, 4  ;;  %v349_v39 = vadd.f32 %v348_v54, %v2987_v37 }
  0xbc   :  { %v279_v11 = vadd.f32 %v278_v24, %v277_v16  ;;  %v286_v12 = vadd.f32 %v285_v53, %v284_v17  ;;  %v298_v33 = vrot.slane %v297_v27, 1  ;;  %v305_v36 = vrot.slane %v304_v28, 1 }
  0xbd   :  { %v363_v41 = vadd.f32 %v362_v31, %v361_v25  ;;  %v370_v42 = vadd.f32 %v369_v32, %v368_v26  ;;  %v381_v45 = vadd.f32 %v380_v34, %v379_v29  ;;  %v388_v46 = vadd.f32 %v387_v35, %v386_v30 }
  0xbe   :  { %v438_v40 = vsel %vm240_vm5, %v279_v11, %v2995_v14  ;;  %v299_v43 = vadd.f32 %v298_v33, %v297_v27  ;;  %v306_v44 = vadd.f32 %v305_v36, %v304_v28  ;;  %v483_v55 = vmul.f32 %v482_v6, %v2868_v7 }
  0xbf   :  { %1775 = vrot.lane.b32.xlu1 %v2825_v1, %s2775_s9  ;;  %v364_v48 = vrot.slane %v363_v41, 1  ;;  %v371_v49 = vrot.slane %v370_v42, 1  ;;  %v484_v50 = vmul.f32 %v481_v5, %v2870_v8  ;;  %v439_v37 = vsel %vm240_vm5, %v286_v12, %v2997_v38  ;;  %v3048_v5 = vld [vmem:[#allocation6] sm:$0xf0] }
  0xc0   :  { %1773 = vrot.lane.b32.xlu0 %v2820_v0, %s2775_s9  ;;  %1816 = vrot.lane.b32.xlu2 %v2820_v0, %s2776_s10  ;;  %v460_v14 = vsel %vm240_vm5, %v299_v43, %v3009_v47  ;;  %v382_v54 = vrot.slane %v381_v45, 2  ;;  %v389_v51 = vrot.slane %v388_v46, 2  ;;  %v485_v58 = vsel %vm74_vm1, %v483_v55, 0.0  ;;  %v522_v43 = vpop.permute.xlu1 %521  ;;  %s2789_s9 = smov 82  }
  0xc1   :  { %v365_v56 = vadd.f32 %v364_v48, %v363_v41  ;;  %v372_v57 = vadd.f32 %v371_v49, %v370_v42  ;;  %v492_v59 = vsel %vm74_vm1, %v484_v50, 0.0  ;;  %v486_v63 = vrot.slane %v485_v58, 4 }
  0xc2   :  { %v383_v61 = vadd.f32 %v382_v54, %v381_v45  ;;  %v390_v62 = vadd.f32 %v389_v51, %v388_v46  ;;  %v493_v3 = vrot.slane %v492_v59, 4  ;;  %v461_v38 = vsel %vm240_vm5, %v306_v44, %v349_v39  ;;  %v520_v44 = vpop.permute.xlu0 %519 }
  0xc3   :  { %v3052_v6 = vsel %vm243_vm6, %v438_v40, %v365_v56  ;;  %v501_v47 = vrot.slane %v483_v55, 4  ;;  %v502_v9 = vrot.slane %v484_v50, 4  ;;  %v487_v15 = vadd.f32 %v486_v63, %v485_v58 }
  0xc4   :  { %v384_v10 = vrot.slane %v383_v61, 1  ;;  %v391_v13 = vrot.slane %v390_v62, 1  ;;  %v494_v16 = vadd.f32 %v493_v3, %v492_v59  ;;  %v3055_v17 = vsel %vm243_vm6, %v439_v37, %v372_v57 }
  0xc5   :  { %v505_v19 = vsel %vm74_vm1, %v501_v47, 0.0  ;;  %v512_v20 = vsel %vm74_vm1, %v502_v9, 0.0  ;;  %v446_v52 = vrot.slane %v3048_v5, 4  ;;  %v488_v24 = vrot.slane %v487_v15, 2 }
  0xc6   :  { %v385_v22 = vadd.f32 %v384_v10, %v383_v61  ;;  %v392_v23 = vadd.f32 %v391_v13, %v390_v62  ;;  %v495_v53 = vrot.slane %v494_v16, 2  ;;  %v506_v25 = vrot.slane %v505_v19, 4  ;;  %v3102_v10 = vpop.permute.xlu2 %562 }
  0xc7   :  { %1881 = vrot.lane.b32.xlu1 %v2820_v0, %s2777_s11  ;;  %v513_v26 = vrot.slane %v512_v20, 4  ;;  %v398_v27 = vsel %vm397_vm12, %v2967_v18, %v396_v60  ;;  %v399_v28 = vsel %vm397_vm12, %v396_v60, %v2967_v18  ;;  %v489_v30 = vadd.f32 %v488_v24, %v487_v15 }
  0xc8   :  { %1818 = vrot.lane.b32.xlu0 %v2825_v1, %s2776_s10  ;;  %1883 = vrot.lane.b32.xlu2 %v2825_v1, %s2777_s11  ;;  %v3073_v29 = vsel %vm243_vm6, %v460_v14, %v385_v22  ;;  %v496_v11 = vadd.f32 %v495_v53, %v494_v16  ;;  %v447_v12 = vrot.slane %v3059_v21, 4  ;;  %v507_v31 = vadd.f32 %v506_v25, %v505_v19  ;;  %v3141_v21 = vld [vmem:[#allocation4 + $0x8] sm:$0xff] }
  0xc9   :  { %v514_v32 = vadd.f32 %v513_v26, %v512_v20  ;;  %v400_v33 = vmul.f32 %v399_v28, %v2868_v7  ;;  %v401_v36 = vmul.f32 %v398_v27, %v2870_v8  ;;  %v3079_v18 = vsel %vm243_vm6, %v461_v38, %v392_v23 }
  0xca   :  { %v490_v34 = vrot.slane %v489_v30, 1  ;;  %v497_v35 = vrot.slane %v496_v11, 1  ;;  %v508_v39 = vrot.slane %v507_v31, 2  ;;  %v524_v56 = vsel %vm523_vm13, %v520_v44, %v522_v43 }
  0xcb   :  { %v515_v40 = vrot.slane %v514_v32, 2  ;;  %v402_v41 = vsel %vm74_vm1, %v400_v33, 0.0  ;;  %v409_v42 = vsel %vm74_vm1, %v401_v36, 0.0  ;;  %v418_v37 = vrot.slane %v400_v33, 4 }
  0xcc   :  { %v3084_v45 = vadd.f32 %v490_v34, %v489_v30  ;;  %v3086_v46 = vadd.f32 %v497_v35, %v496_v11  ;;  %v403_v48 = vrot.slane %v402_v41, 4  ;;  %v410_v49 = vrot.slane %v409_v42, 4 }
  0xcd   :  { %v509_v55 = vadd.f32 %v508_v39, %v507_v31  ;;  %v516_v50 = vadd.f32 %v515_v40, %v514_v32  ;;  %v419_v14 = vrot.slane %v401_v36, 4  ;;  %v525_v57 = vsel %vm523_vm13, %v522_v43, %v520_v44 }
  0xce   :  { %v404_v54 = vadd.f32 %v403_v48, %v402_v41  ;;  %v411_v51 = vadd.f32 %v410_v49, %v409_v42  ;;  %v422_v60 = vsel %vm74_vm1, %v418_v37, 0.0  ;;  %v526_v13 = vmul.f32 %v525_v57, %v2868_v7  ;;  %v606_v57 = vpop.permute.xlu1 %605 }
  0xcf   :  { %1926 = vrot.lane.b32.xlu1 %v2825_v1, %s2778_s12  ;;  %v510_v58 = vrot.slane %v509_v55, 1  ;;  %v517_v59 = vrot.slane %v516_v50, 1  ;;  %v429_v61 = vsel %vm74_vm1, %v419_v14, 0.0  ;;  %v423_v3 = vrot.slane %v422_v60, 4 }
  0xd0   :  { %1924 = vrot.lane.b32.xlu0 %v2820_v0, %s2778_s12  ;;  %1967 = vrot.lane.b32.xlu2 %v2820_v0, %s2779_s13  ;;  %v405_v62 = vrot.slane %v404_v54, 2  ;;  %v412_v63 = vrot.slane %v411_v51, 2  ;;  %v430_v38 = vrot.slane %v429_v61, 4  ;;  %v527_v15 = vmul.f32 %v524_v56, %v2870_v8 }
  0xd1   :  { %v3098_v47 = vadd.f32 %v510_v58, %v509_v55  ;;  %v3100_v9 = vadd.f32 %v517_v59, %v516_v50  ;;  %v424_v20 = vadd.f32 %v423_v3, %v422_v60  ;;  %v528_v23 = vsel %vm74_vm1, %v526_v13, 0.0  ;;  %v565_v58 = vpop.permute.xlu0 %564 }
  0xd2   :  { %v406_v16 = vadd.f32 %v405_v62, %v404_v54  ;;  %v413_v19 = vadd.f32 %v412_v63, %v411_v51  ;;  %v431_v22 = vadd.f32 %v430_v38, %v429_v61  ;;  %v535_v24 = vsel %vm74_vm1, %v527_v15, 0.0  ;;  %v608_v62 = vpop.permute.xlu2 %607 }
  0xd3   :  { %v544_v53 = vrot.slane %v526_v13, 4  ;;  %v545_v25 = vrot.slane %v527_v15, 4  ;;  %v425_v28 = vrot.slane %v424_v20, 2  ;;  %v529_v11 = vrot.slane %v528_v23, 4 }
  0xd4   :  { %v407_v26 = vrot.slane %v406_v16, 1  ;;  %v414_v27 = vrot.slane %v413_v19, 1  ;;  %v432_v30 = vrot.slane %v431_v22, 2  ;;  %v536_v31 = vrot.slane %v535_v24, 4 }
  0xd5   :  { %v548_v32 = vsel %vm74_vm1, %v544_v53, 0.0  ;;  %v555_v33 = vsel %vm74_vm1, %v545_v25, 0.0  ;;  %v426_v35 = vadd.f32 %v425_v28, %v424_v20  ;;  %v530_v40 = vadd.f32 %v529_v11, %v528_v23 }
  0xd6   :  { %v408_v36 = vadd.f32 %v407_v26, %v406_v16  ;;  %v415_v34 = vadd.f32 %v414_v27, %v413_v19  ;;  %v433_v39 = vadd.f32 %v432_v30, %v431_v22  ;;  %v537_v41 = vadd.f32 %v536_v31, %v535_v24  ;;  %v3149_v27 = vld [vmem:[#allocation4] sm:$0xff] }
  0xd7   :  { %2289 = vrot.lane.b32.xlu1 %v2825_v1, %s2780_s14  ;;  %v549_v42 = vrot.slane %v548_v32, 4  ;;  %v556_v43 = vrot.slane %v555_v33, 4  ;;  %v427_v44 = vrot.slane %v426_v35, 1  ;;  %v531_v37 = vrot.slane %v530_v40, 2 }
  0xd8   :  { %2287 = vrot.lane.b32.xlu0 %v2820_v0, %s2780_s14  ;;  %2330 = vrot.lane.b32.xlu2 %v2820_v0, %s2781_s15  ;;  %v434_v48 = vrot.slane %v433_v39, 1  ;;  %v442_v49 = vsel %vm246_vm8, %v3052_v6, %v408_v36  ;;  %v443_v55 = vsel %vm246_vm8, %v3055_v17, %v415_v34  ;;  %v538_v14 = vrot.slane %v537_v41, 2 }
  0xd9   :  { %v450_v1 = vmul.f32 %v446_v52, %v442_v49  ;;  %v451_v50 = vmul.f32 %v447_v12, %v443_v55  ;;  %v428_v54 = vadd.f32 %v427_v44, %v426_v35  ;;  %v550_v56 = vadd.f32 %v549_v42, %v548_v32  ;;  %v673_v42 = vpop.permute.xlu1 %672 }
  0xda   :  { %v435_v51 = vadd.f32 %v434_v48, %v433_v39  ;;  %v557_v0 = vadd.f32 %v556_v43, %v555_v33  ;;  %v532_v6 = vadd.f32 %v531_v37, %v530_v40  ;;  %v539_v61 = vadd.f32 %v538_v14, %v537_v41  ;;  %v671_v43 = vpop.permute.xlu0 %670 }
  0xdb   :  { %v454_v59 = vrot.slane %v450_v1, 4  ;;  %v455_v60 = vrot.slane %v451_v50, 4  ;;  %v464_v17 = vsel %vm246_vm8, %v3073_v29, %v428_v54  ;;  %v551_v3 = vrot.slane %v550_v56, 2 }
  0xdc   :  { %v465_v63 = vsel %vm246_vm8, %v3079_v18, %v435_v51  ;;  %v558_v38 = vrot.slane %v557_v0, 2  ;;  %v466_v13 = vmul.f32 %v464_v17, %v446_v52  ;;  %v533_v16 = vrot.slane %v532_v6, 1 }
  0xdd   :  { %458 = vst [vmem:[%s4086_s3] sm:$0xf0] %v454_v59  ;;  %v467_v15 = vmul.f32 %v465_v63, %v447_v12  ;;  %v540_v19 = vrot.slane %v539_v61, 1  ;;  %v552_v29 = vadd.f32 %v551_v3, %v550_v56  ;;  %v610_v20 = vsel %vm609_vm14, %v606_v57, %v608_v62 }
  0xde   :  { %459 = vst [vmem:[%s4086_s3 + $0x8] sm:$0xf0] %v455_v60  ;;  %v559_v18 = vadd.f32 %v558_v38, %v557_v0  ;;  %v611_v22 = vsel %vm609_vm14, %v608_v62, %v606_v57  ;;  %v470_v23 = vrot.slane %v466_v13, 4  ;;  %v534_v52 = vadd.f32 %v533_v16, %v532_v6 }
  0xdf   :  { %v471_v5 = vrot.slane %v467_v15, 4  ;;  %v541_v24 = vadd.f32 %v540_v19, %v539_v61  ;;  %1969 = vrot.lane.b32.xlu1 %v3141_v21, %s2779_s13  ;;  %v553_v12 = vrot.slane %v552_v29, 1  ;;  %v612_v25 = vmul.f32 %v611_v22, %v2868_v7 }
  0xe0   :  { %2332 = vrot.lane.b32.xlu0 %v3141_v21, %s2781_s15  ;;  %v560_v53 = vrot.slane %v559_v18, 1  ;;  %v613_v26 = vmul.f32 %v610_v20, %v2870_v8  ;;  %2373 = vrot.lane.b32.xlu2 %v3149_v27, %s2782_s20  ;;  %2582 = vst [vmem:[%s4086_s3 + $0x70] sm:$0xf0] %v470_v23  ;;  %v3158_v28 = vsel %vm240_vm5, %v3084_v45, %v534_v52  ;;  %vm803_vm4 = vcmp.lt.s32.totalorder %v2863_v4, 18 }
  0xe1   :  { %v3162_v30 = vsel %vm240_vm5, %v3086_v46, %v541_v24  ;;  %2583 = vst [vmem:[%s4086_s3 + $0x78] sm:$0xf0] %v471_v5  ;;  %v554_v11 = vadd.f32 %v553_v12, %v552_v29  ;;  %v614_v32 = vsel %vm74_vm1, %v612_v25, 0.0  ;;  %v630_v34 = vrot.slane %v612_v25, 4 }
  0xe2   :  { %v561_v31 = vadd.f32 %v560_v53, %v559_v18  ;;  %v621_v33 = vsel %vm74_vm1, %v613_v26, 0.0  ;;  %v615_v45 = vrot.slane %v614_v32, 4  ;;  %v631_v35 = vrot.slane %v613_v26, 4 }
  0xe3   :  { %v622_v36 = vrot.slane %v621_v33, 4  ;;  %v3173_v46 = vsel %vm240_vm5, %v3098_v47, %v554_v11  ;;  %v567_v40 = vsel %vm566_vm15, %v3102_v10, %v565_v58  ;;  %v568_v41 = vsel %vm566_vm15, %v565_v58, %v3102_v10 }
  0xe4   :  { %v3177_v39 = vsel %vm240_vm5, %v3100_v9, %v561_v31  ;;  %v616_v44 = vadd.f32 %v615_v45, %v614_v32  ;;  %v634_v49 = vsel %vm74_vm1, %v630_v34, 0.0  ;;  %v641_v55 = vsel %vm74_vm1, %v631_v35, 0.0  ;;  %v3200_v34 = vpop.permute.xlu2 %713 }
  0xe5   :  { %v623_v48 = vadd.f32 %v622_v36, %v621_v33  ;;  %v635_v1 = vrot.slane %v634_v49, 4  ;;  %v642_v50 = vrot.slane %v641_v55, 4  ;;  %v569_v47 = vmul.f32 %v568_v41, %v2868_v7 }
  0xe6   :  { %v570_v37 = vmul.f32 %v567_v40, %v2870_v8  ;;  %v617_v9 = vrot.slane %v616_v44, 2  ;;  %v675_v54 = vsel %vm674_vm0, %v671_v43, %v673_v42  ;;  %v676_v10 = vsel %vm674_vm0, %v673_v42, %v671_v43 }
  0xe7   :  { %v624_v14 = vrot.slane %v623_v48, 2  ;;  %2010 = vrot.lane.b32.xlu1 %v3149_v27, %s2783_s1  ;;  %v636_v51 = vadd.f32 %v635_v1, %v634_v49  ;;  %v643_v56 = vadd.f32 %v642_v50, %v641_v55  ;;  %v571_v0 = vsel %vm74_vm1, %v569_v47, 0.0 }
  0xe8   :  { %2375 = vrot.lane.b32.xlu0 %v3141_v21, %s2782_s20  ;;  %v578_v57 = vsel %vm74_vm1, %v570_v37, 0.0  ;;  %2012 = vrot.lane.b32.xlu2 %v3141_v21, %s2783_s1  ;;  %v618_v58 = vadd.f32 %v617_v9, %v616_v44  ;;  %v572_v60 = vrot.slane %v571_v0, 4  ;;  %v587_v17 = vrot.slane %v569_v47, 4  ;;  %v649_v9 = vld [vmem:[#allocation6 + $0x18] sm:$0xf] }
  0xe9   :  { %v625_v59 = vadd.f32 %v624_v14, %v623_v48  ;;  %v579_v6 = vrot.slane %v578_v57, 4  ;;  %v637_v61 = vrot.slane %v636_v51, 2  ;;  %v644_v62 = vrot.slane %v643_v56, 2 }
  0xea   :  { %v588_v63 = vrot.slane %v570_v37, 4  ;;  %v619_v3 = vrot.slane %v618_v58, 1  ;;  %v573_v13 = vadd.f32 %v572_v60, %v571_v0  ;;  %v591_v29 = vsel %vm74_vm1, %v587_v17, 0.0  ;;  %v648_v37 = vld [vmem:[#allocation6 + $0x10] sm:$0xf] }
  0xeb   :  { %v626_v38 = vrot.slane %v625_v59, 1  ;;  %v580_v15 = vadd.f32 %v579_v6, %v578_v57  ;;  %v638_v16 = vadd.f32 %v637_v61, %v636_v51  ;;  %v645_v19 = vadd.f32 %v644_v62, %v643_v56 }
  0xec   :  { %v598_v18 = vsel %vm74_vm1, %v588_v63, 0.0  ;;  %v620_v20 = vadd.f32 %v619_v3, %v618_v58  ;;  %v574_v23 = vrot.slane %v573_v13, 2  ;;  %v592_v12 = vrot.slane %v591_v29, 4 }
  0xed   :  { %v627_v22 = vadd.f32 %v626_v38, %v625_v59  ;;  %v581_v5 = vrot.slane %v580_v15, 2  ;;  %v639_v52 = vrot.slane %v638_v16, 1  ;;  %v646_v24 = vrot.slane %v645_v19, 1 }
  0xee   :  { %v599_v53 = vrot.slane %v598_v18, 4  ;;  %v575_v25 = vadd.f32 %v574_v23, %v573_v13  ;;  %v677_v11 = vmul.f32 %v676_v10, %v2868_v7  ;;  %v678_v31 = vmul.f32 %v675_v54, %v2870_v8  ;;  %v757_v23 = vpop.permute.xlu1 %756 }
  0xef   :  { %v582_v26 = vadd.f32 %v581_v5, %v580_v15  ;;  %2095 = vrot.lane.b32.xlu1 %v3141_v21, %s2784_s25  ;;  %v640_v32 = vadd.f32 %v639_v52, %v638_v16  ;;  %v647_v33 = vadd.f32 %v646_v24, %v645_v19  ;;  %v593_v45 = vadd.f32 %v592_v12, %v591_v29 }
  0xf0   :  { %v600_v36 = vadd.f32 %v599_v53, %v598_v18  ;;  %2093 = vrot.lane.b32.xlu0 %v3149_v27, %s2784_s25  ;;  %v576_v35 = vrot.slane %v575_v25, 1  ;;  %v679_v41 = vsel %vm74_vm1, %v677_v11, 0.0  ;;  %v686_v42 = vsel %vm74_vm1, %v678_v31, 0.0  ;;  %2136 = vrot.lane.b32.xlu2 %v3149_v27, %s2785_s26 }
  0xf1   :  { %v583_v40 = vrot.slane %v582_v26, 1  ;;  %v594_v43 = vrot.slane %v593_v45, 2  ;;  %v680_v48 = vrot.slane %v679_v41, 4  ;;  %v687_v49 = vrot.slane %v686_v42, 4 }
  0xf2   :  { %v601_v44 = vrot.slane %v600_v36, 2  ;;  %v577_v55 = vadd.f32 %v576_v35, %v575_v25  ;;  %v695_v50 = vrot.slane %v677_v11, 4  ;;  %v696_v47 = vrot.slane %v678_v31, 4  ;;  %v716_v31 = vpop.permute.xlu0 %715 }
  0xf3   :  { %v584_v1 = vadd.f32 %v583_v40, %v582_v26  ;;  %v595_v14 = vadd.f32 %v594_v43, %v593_v45  ;;  %v681_v10 = vadd.f32 %v680_v48, %v679_v41  ;;  %v688_v51 = vadd.f32 %v687_v49, %v686_v42 }
  0xf4   :  { %v602_v54 = vadd.f32 %v601_v44, %v600_v36  ;;  %v652_v56 = vsel %vm243_vm6, %v3158_v28, %v577_v55  ;;  %v699_v57 = vsel %vm74_vm1, %v695_v50, 0.0  ;;  %v706_v58 = vsel %vm74_vm1, %v696_v47, 0.0  ;;  %v3239_v36 = vld [vmem:[#allocation6 + $0x10] sm:$0xf0] }
  0xf5   :  { %v653_v0 = vsel %vm243_vm6, %v3162_v30, %v584_v1  ;;  %v596_v59 = vrot.slane %v595_v14, 1  ;;  %v654_v6 = vsel %vm246_vm8, %v652_v56, %v620_v20  ;;  %v682_v63 = vrot.slane %v681_v10, 2 }
  0xf6   :  { %v603_v60 = vrot.slane %v602_v54, 1  ;;  %v655_v61 = vsel %vm246_vm8, %v653_v0, %v627_v22  ;;  %v656_v62 = vmul.f32 %v654_v6, %v648_v37  ;;  %v689_v3 = vrot.slane %v688_v51, 2  ;;  %v759_v22 = vpop.permute.xlu2 %758 }
  0xf7   :  { %v657_v17 = vmul.f32 %v655_v61, %v649_v9  ;;  %2416 = vrot.lane.b32.xlu1 %v3149_v27, %s2786_s27  ;;  %v597_v28 = vadd.f32 %v596_v59, %v595_v14  ;;  %v700_v30 = vrot.slane %v699_v57, 4  ;;  %v707_v13 = vrot.slane %v706_v58, 4 }
  0xf8   :  { %v604_v38 = vadd.f32 %v603_v60, %v602_v54  ;;  %2138 = vrot.lane.b32.xlu0 %v3141_v21, %s2785_s26  ;;  %658 = vst [vmem:[%s4086_s3 + $0x10] sm:$0xf] %v656_v62  ;;  %v683_v15 = vadd.f32 %v682_v63, %v681_v10  ;;  %v690_v16 = vadd.f32 %v689_v3, %v688_v51  ;;  %v852_v55 = vrot.slane %v3239_v36, 4 }
  0xf9   :  { %2418 = vrot.lane.b32.xlu2 %v3141_v21, %s2786_s27  ;;  %659 = vst [vmem:[%s4086_s3 + $0x18] sm:$0xf] %v657_v17  ;;  %v662_v19 = vsel %vm243_vm6, %v3173_v46, %v597_v28  ;;  %v701_v18 = vadd.f32 %v700_v30, %v699_v57  ;;  %v708_v20 = vadd.f32 %v707_v13, %v706_v58  ;;  %vm929_vm7 = vcmp.lt.s32.totalorder %v2863_v4, 16 }
  0xfa   :  { %v663_v29 = vsel %vm243_vm6, %v3177_v39, %v604_v38  ;;  %v664_v5 = vsel %vm246_vm8, %v662_v19, %v640_v32  ;;  %v684_v24 = vrot.slane %v683_v15, 1  ;;  %v691_v12 = vrot.slane %v690_v16, 1 }
  0xfb   :  { %v665_v52 = vsel %vm246_vm8, %v663_v29, %v647_v33  ;;  %v666_v53 = vmul.f32 %v664_v5, %v648_v37  ;;  %v702_v26 = vrot.slane %v701_v18, 2  ;;  %v709_v11 = vrot.slane %v708_v20, 2 }
  0xfc   :  { %v667_v25 = vmul.f32 %v665_v52, %v649_v9  ;;  %v3233_v45 = vadd.f32 %v684_v24, %v683_v15  ;;  %v761_v46 = vsel %vm760_vm2, %v757_v23, %v759_v22  ;;  %v762_v39 = vsel %vm760_vm2, %v759_v22, %v757_v23  ;;  %v802_v23 = vpop.permute.xlu1 %801 }
  0xfd   :  { %2584 = vst [vmem:[%s4086_s3 + $0x80] sm:$0xf] %v666_v53  ;;  %v703_v32 = vadd.f32 %v702_v26, %v701_v18  ;;  %v3244_v33 = vadd.f32 %v709_v11, %v708_v20  ;;  %v763_v35 = vmul.f32 %v762_v39, %v2868_v7  ;;  %v764_v40 = vmul.f32 %v761_v46, %v2870_v8  ;;  %v800_v11 = vpop.permute.xlu0 %799 }
  0xfe   :  { %2585 = vst [vmem:[%s4086_s3 + $0x88] sm:$0xf] %v667_v25  ;;  %v3251_v41 = vadd.f32 %v691_v12, %v690_v16  ;;  %v718_v42 = vsel %vm717_vm3, %v3200_v34, %v716_v31  ;;  %v719_v43 = vsel %vm717_vm3, %v716_v31, %v3200_v34  ;;  %v3279_v22 = vpop.permute.xlu2 %882  ;;  %vm886_vm9 = vcmp.lt.s32.totalorder %v2863_v4, 17 }
  0xff   :  { %2501 = vrot.lane.b32.xlu1 %v3141_v21, %s2787_s7  ;;  %v704_v44 = vrot.slane %v703_v32, 1  ;;  %v765_v48 = vsel %vm74_vm1, %v763_v35, 0.0  ;;  %v772_v49 = vsel %vm74_vm1, %v764_v40, 0.0  ;;  %v781_v47 = vrot.slane %v763_v35, 4  ;;  %v3285_v35 = vld [vmem:[#allocation6 + $0x18] sm:$0xf0] }
 0x100   :  { %2499 = vrot.lane.b32.xlu0 %v3149_v27, %s2787_s7  ;;  %v766_v1 = vrot.slane %v765_v48, 4  ;;  %v773_v50 = vrot.slane %v772_v49, 4  ;;  %v782_v37 = vrot.slane %v764_v40, 4  ;;  %v711_v9 = vrot.slane %v3244_v33, 1 }
 0x101   :  { %2179 = vrot.lane.b32.xlu2 %v3149_v27, %s2788_s8  ;;  %v3266_v34 = vadd.f32 %v704_v44, %v703_v32  ;;  %v720_v14 = vmul.f32 %v719_v43, %v2868_v7  ;;  %v721_v54 = vmul.f32 %v718_v42, %v2870_v8  ;;  %v785_v56 = vsel %vm74_vm1, %v781_v47, 0.0 }
 0x102   :  { %v767_v10 = vadd.f32 %v766_v1, %v765_v48  ;;  %v774_v51 = vadd.f32 %v773_v50, %v772_v49  ;;  %v792_v0 = vsel %vm74_vm1, %v782_v37, 0.0  ;;  %v786_v57 = vrot.slane %v785_v56, 4 }
 0x103   :  { %v793_v58 = vrot.slane %v792_v0, 4  ;;  %v722_v59 = vsel %vm74_vm1, %v720_v14, 0.0  ;;  %v729_v60 = vsel %vm74_vm1, %v721_v54, 0.0  ;;  %v738_v28 = vrot.slane %v720_v14, 4 }
 0x104   :  { %v768_v6 = vrot.slane %v767_v10, 2  ;;  %v775_v61 = vrot.slane %v774_v51, 2  ;;  %v723_v62 = vrot.slane %v722_v59, 4  ;;  %v730_v17 = vrot.slane %v729_v60, 4 }
 0x105   :  { %v787_v63 = vadd.f32 %v786_v57, %v785_v56  ;;  %v794_v3 = vadd.f32 %v793_v58, %v792_v0  ;;  %v739_v38 = vrot.slane %v721_v54, 4  ;;  %v742_v18 = vsel %vm74_vm1, %v738_v28, 0.0 }
 0x106   :  { %v769_v30 = vadd.f32 %v768_v6, %v767_v10  ;;  %v776_v13 = vadd.f32 %v775_v61, %v774_v51  ;;  %v724_v15 = vadd.f32 %v723_v62, %v722_v59  ;;  %v731_v16 = vadd.f32 %v730_v17, %v729_v60 }
 0x107   :  { %2222 = vrot.lane.b32.xlu1 %v3149_v27, %s2789_s9  ;;  %v788_v19 = vrot.slane %v787_v63, 2  ;;  %v795_v29 = vrot.slane %v794_v3, 2  ;;  %v749_v20 = vsel %vm74_vm1, %v739_v38, 0.0  ;;  %v743_v25 = vrot.slane %v742_v18, 4 }
 0x108   :  { %2181 = vrot.lane.b32.xlu0 %v3141_v21, %s2788_s8  ;;  %v770_v5 = vrot.slane %v769_v30, 1  ;;  %v777_v52 = vrot.slane %v776_v13, 1  ;;  %v725_v24 = vrot.slane %v724_v15, 2  ;;  %v732_v12 = vrot.slane %v731_v16, 2 }
 0x109   :  { %2224 = vrot.lane.b32.xlu2 %v3141_v21, %s2789_s9  ;;  %v789_v53 = vadd.f32 %v788_v19, %v787_v63  ;;  %v796_v27 = vadd.f32 %v795_v29, %v794_v3  ;;  %v750_v26 = vrot.slane %v749_v20, 4  ;;  %v712_v31 = vadd.f32 %v711_v9, %v3244_v33  ;;  %v928_v63 = vpop.permute.xlu2 %927  ;;  %v926_v3 = vpop.permute.xlu1 %925 }
 0x10a   :  { %v771_v46 = vadd.f32 %v770_v5, %v769_v30  ;;  %v726_v39 = vadd.f32 %v725_v24, %v724_v15  ;;  %v733_v32 = vadd.f32 %v732_v12, %v731_v16  ;;  %v744_v43 = vadd.f32 %v743_v25, %v742_v18 }
 0x10b   :  { %v790_v40 = vrot.slane %v789_v53, 1  ;;  %v797_v42 = vrot.slane %v796_v27, 1  ;;  %v751_v44 = vadd.f32 %v750_v26, %v749_v20  ;;  %v778_v48 = vadd.f32 %v777_v52, %v776_v13 }
 0x10c   :  { %v727_v49 = vrot.slane %v726_v39, 1  ;;  %v734_v1 = vrot.slane %v733_v32, 1  ;;  %v804_v21 = vsel %vm803_vm4, %v800_v11, %v802_v23  ;;  %v745_v47 = vrot.slane %v744_v43, 2 }
 0x10d   :  { %v791_v50 = vadd.f32 %v790_v40, %v789_v53  ;;  %v752_v37 = vrot.slane %v751_v44, 2  ;;  %v853_v33 = vrot.slane %v3285_v35, 4  ;;  %v805_v54 = vsel %vm803_vm4, %v802_v23, %v800_v11 }
 0x10e   :  { %v728_v9 = vadd.f32 %v727_v49, %v726_v39  ;;  %v735_v14 = vadd.f32 %v734_v1, %v733_v32  ;;  %v807_v10 = vmul.f32 %v804_v21, %v2870_v8  ;;  %v798_v51 = vadd.f32 %v797_v42, %v796_v27  ;;  %v885_v49 = vpop.permute.xlu0 %884 }
 0x10f   :  { %v746_v56 = vadd.f32 %v745_v47, %v744_v43  ;;  %v753_v0 = vadd.f32 %v752_v37, %v751_v44  ;;  %v806_v57 = vmul.f32 %v805_v54, %v2868_v7  ;;  %v930_v23 = vsel %vm929_vm7, %v926_v3, %v928_v63 }
 0x110   :  { %v844_v58 = vsel %vm240_vm5, %v3233_v45, %v728_v9  ;;  %v815_v59 = vsel %vm74_vm1, %v807_v10, 0.0  ;;  %v825_v60 = vrot.slane %v807_v10, 4  ;;  %v845_v28 = vsel %vm240_vm5, %v3251_v41, %v735_v14 }
 0x111   :  { %v747_v6 = vrot.slane %v746_v56, 1  ;;  %v754_v61 = vrot.slane %v753_v0, 1  ;;  %v808_v62 = vsel %vm74_vm1, %v806_v57, 0.0  ;;  %v816_v17 = vrot.slane %v815_v59, 4 }
 0x112   :  { %v809_v38 = vrot.slane %v808_v62, 4  ;;  %v824_v30 = vrot.slane %v806_v57, 4  ;;  %v835_v13 = vsel %vm74_vm1, %v825_v60, 0.0  ;;  %v846_v20 = vsel %vm243_vm6, %v844_v58, %v771_v46 }
 0x113   :  { %v748_v45 = vadd.f32 %v747_v6, %v746_v56  ;;  %v755_v15 = vadd.f32 %v754_v61, %v753_v0  ;;  %v817_v16 = vadd.f32 %v816_v17, %v815_v59  ;;  %v836_v19 = vrot.slane %v835_v13, 4 }
 0x114   :  { %v810_v29 = vadd.f32 %v809_v38, %v808_v62  ;;  %v828_v18 = vsel %vm74_vm1, %v824_v30, 0.0  ;;  %v847_v27 = vsel %vm243_vm6, %v845_v28, %v778_v48  ;;  %v931_v46 = vsel %vm929_vm7, %v928_v63, %v926_v3 }
 0x115   :  { %v866_v5 = vsel %vm240_vm5, %v3266_v34, %v748_v45  ;;  %v867_v41 = vsel %vm240_vm5, %v712_v31, %v755_v15  ;;  %v818_v52 = vrot.slane %v817_v16, 2  ;;  %v829_v24 = vrot.slane %v828_v18, 4 }
 0x116   :  { %v811_v12 = vrot.slane %v810_v29, 2  ;;  %v837_v53 = vadd.f32 %v836_v19, %v835_v13  ;;  %v868_v25 = vsel %vm243_vm6, %v866_v5, %v791_v50  ;;  %v933_v39 = vmul.f32 %v930_v23, %v2870_v8  ;;  %v969_v36 = vpop.permute.xlu0 %968 }
 0x117   :  { %v819_v26 = vadd.f32 %v818_v52, %v817_v16  ;;  %v830_v11 = vadd.f32 %v829_v24, %v828_v18  ;;  %v869_v34 = vsel %vm243_vm6, %v867_v41, %v798_v51  ;;  %v932_v31 = vmul.f32 %v931_v46, %v2868_v7  ;;  %v971_v41 = vpop.permute.xlu1 %970 }
 0x118   :  { %v812_v32 = vadd.f32 %v811_v12, %v810_v29  ;;  %v838_v40 = vrot.slane %v837_v53, 2  ;;  %v941_v44 = vsel %vm74_vm1, %v933_v39, 0.0  ;;  %v951_v48 = vrot.slane %v933_v39, 4 }
 0x119   :  { %v820_v42 = vrot.slane %v819_v26, 1  ;;  %v831_v43 = vrot.slane %v830_v11, 2  ;;  %v934_v50 = vsel %vm74_vm1, %v932_v31, 0.0  ;;  %v942_v47 = vrot.slane %v941_v44, 4 }
 0x11a   :  { %v813_v1 = vrot.slane %v812_v32, 1  ;;  %v839_v21 = vadd.f32 %v838_v40, %v837_v53  ;;  %v935_v14 = vrot.slane %v934_v50, 4  ;;  %v950_v54 = vrot.slane %v932_v31, 4 }
 0x11b   :  { %v821_v37 = vadd.f32 %v820_v42, %v819_v26  ;;  %v832_v9 = vadd.f32 %v831_v43, %v830_v11  ;;  %v943_v51 = vadd.f32 %v942_v47, %v941_v44  ;;  %v961_v0 = vsel %vm74_vm1, %v951_v48, 0.0 }
 0x11c   :  { %v814_v10 = vadd.f32 %v813_v1, %v812_v32  ;;  %v840_v56 = vrot.slane %v839_v21, 1  ;;  %v936_v59 = vadd.f32 %v935_v14, %v934_v50  ;;  %v954_v60 = vsel %vm74_vm1, %v950_v54, 0.0 }
 0x11d   :  { %v833_v57 = vrot.slane %v832_v9, 1  ;;  %v849_v58 = vsel %vm246_vm8, %v847_v27, %v821_v37  ;;  %v944_v3 = vrot.slane %v943_v51, 2  ;;  %v955_v28 = vrot.slane %v954_v60, 4 }
 0x11e   :  { %v841_v6 = vadd.f32 %v840_v56, %v839_v21  ;;  %v848_v61 = vsel %vm246_vm8, %v846_v20, %v814_v10  ;;  %v857_v62 = vmul.f32 %v853_v33, %v849_v58  ;;  %v937_v13 = vrot.slane %v936_v59, 2 }
 0x11f   :  { %v834_v17 = vadd.f32 %v833_v57, %v832_v9  ;;  %v856_v63 = vmul.f32 %v852_v55, %v848_v61  ;;  %v962_v45 = vrot.slane %v961_v0, 4  ;;  %v956_v18 = vadd.f32 %v955_v28, %v954_v60  ;;  %v3369_v9 = vpop.permute.xlu2 %1011 }
 0x120   :  { %v861_v38 = vrot.slane %v857_v62, 4  ;;  %v871_v30 = vsel %vm246_vm8, %v869_v34, %v841_v6  ;;  %v3339_v5 = vadd.f32 %v944_v3, %v943_v51  ;;  %v887_v35 = vsel %vm886_vm9, %v3279_v22, %v885_v49 }
 0x121   :  { %v860_v15 = vrot.slane %v856_v63, 4  ;;  %v870_v16 = vsel %vm246_vm8, %v868_v25, %v834_v17  ;;  %v873_v19 = vmul.f32 %v871_v30, %v853_v33  ;;  %v963_v20 = vadd.f32 %v962_v45, %v961_v0 }
 0x122   :  { %865 = vst [vmem:[%s4086_s3 + $0x18] sm:$0xf0] %v861_v38  ;;  %v872_v29 = vmul.f32 %v870_v16, %v852_v55  ;;  %v888_v33 = vsel %vm886_vm9, %v885_v49, %v3279_v22  ;;  %v938_v52 = vadd.f32 %v937_v13, %v936_v59  ;;  %v957_v24 = vrot.slane %v956_v18, 2 }
 0x123   :  { %864 = vst [vmem:[%s4086_s3 + $0x10] sm:$0xf0] %v860_v15  ;;  %v877_v23 = vrot.slane %v873_v19, 4  ;;  %v964_v12 = vrot.slane %v963_v20, 2  ;;  %v889_v53 = vmul.f32 %v888_v33, %v2868_v7  ;;  %v890_v27 = vmul.f32 %v887_v35, %v2870_v8 }
 0x124   :  { %v876_v55 = vrot.slane %v872_v29, 4  ;;  %vm972_vm10 = vcmp.lt.s32.totalorder %v2863_v4, 15  ;;  %v3356_v22 = vadd.f32 %v957_v24, %v956_v18  ;;  %v939_v34 = vrot.slane %v938_v52, 1 }
 0x125   :  { %2587 = vst [vmem:[%s4086_s3 + $0x88] sm:$0xf0] %v877_v23  ;;  %v3358_v25 = vadd.f32 %v964_v12, %v963_v20  ;;  %v973_v26 = vsel %vm972_vm10, %v969_v36, %v971_v41  ;;  %v974_v11 = vsel %vm972_vm10, %v971_v41, %v969_v36  ;;  %v891_v46 = vsel %vm74_vm1, %v889_v53, 0.0 }
 0x126   :  { %2586 = vst [vmem:[%s4086_s3 + $0x80] sm:$0xf0] %v876_v55  ;;  %v898_v39 = vsel %vm74_vm1, %v890_v27, 0.0  ;;  %v907_v32 = vrot.slane %v889_v53, 4  ;;  %v908_v40 = vrot.slane %v890_v27, 4  ;;  %v946_v31 = vrot.slane %v3339_v5, 1 }
 0x127   :  { %v892_v42 = vrot.slane %v891_v46, 4  ;;  %v899_v43 = vrot.slane %v898_v39, 4  ;;  %v975_v49 = vmul.f32 %v974_v11, %v2868_v7  ;;  %v976_v1 = vmul.f32 %v973_v26, %v2870_v8 }
 0x128   :  { %v911_v44 = vsel %vm74_vm1, %v907_v32, 0.0  ;;  %v918_v48 = vsel %vm74_vm1, %v908_v40, 0.0  ;;  %v959_v21 = vrot.slane %v3356_v22, 1  ;;  %v966_v50 = vrot.slane %v3358_v25, 1  ;;  %v1077_v32 = vpop.permute.xlu1 %1076 }
 0x129   :  { %v893_v47 = vadd.f32 %v892_v42, %v891_v46  ;;  %v900_v37 = vadd.f32 %v899_v43, %v898_v39  ;;  %v912_v14 = vrot.slane %v911_v44, 4  ;;  %v919_v54 = vrot.slane %v918_v48, 4  ;;  %v1079_v39 = vpop.permute.xlu2 %1078 }
 0x12a   :  { %v977_v10 = vsel %vm74_vm1, %v975_v49, 0.0  ;;  %v984_v56 = vsel %vm74_vm1, %v976_v1, 0.0  ;;  %v993_v6 = vrot.slane %v975_v49, 4  ;;  %v994_v61 = vrot.slane %v976_v1, 4  ;;  %v1014_v1 = vpop.permute.xlu0 %1013 }
 0x12b   :  { %v894_v51 = vrot.slane %v893_v47, 2  ;;  %v901_v0 = vrot.slane %v900_v37, 2  ;;  %v978_v57 = vrot.slane %v977_v10, 4  ;;  %v985_v58 = vrot.slane %v984_v56, 4 }
 0x12c   :  { %v913_v59 = vadd.f32 %v912_v14, %v911_v44  ;;  %v920_v60 = vadd.f32 %v919_v54, %v918_v48  ;;  %v997_v30 = vsel %vm74_vm1, %v993_v6, 0.0  ;;  %v1004_v13 = vsel %vm74_vm1, %v994_v61, 0.0 }
 0x12d   :  { %v895_v62 = vadd.f32 %v894_v51, %v893_v47  ;;  %v902_v17 = vadd.f32 %v901_v0, %v900_v37  ;;  %v979_v63 = vadd.f32 %v978_v57, %v977_v10  ;;  %v986_v3 = vadd.f32 %v985_v58, %v984_v56 }
 0x12e   :  { %v914_v28 = vrot.slane %v913_v59, 2  ;;  %v921_v38 = vrot.slane %v920_v60, 2  ;;  %v998_v20 = vrot.slane %v997_v30, 4  ;;  %v1005_v23 = vrot.slane %v1004_v13, 4 }
 0x12f   :  { %v896_v45 = vrot.slane %v895_v62, 1  ;;  %v903_v15 = vrot.slane %v902_v17, 1  ;;  %v980_v16 = vrot.slane %v979_v63, 2  ;;  %v987_v19 = vrot.slane %v986_v3, 2 }
 0x130   :  { %v915_v29 = vadd.f32 %v914_v28, %v913_v59  ;;  %v922_v18 = vadd.f32 %v921_v38, %v920_v60  ;;  %v940_v35 = vadd.f32 %v939_v34, %v938_v52  ;;  %v947_v33 = vadd.f32 %v946_v31, %v3339_v5 }
 0x131   :  { %v981_v41 = vadd.f32 %v980_v16, %v979_v63  ;;  %v988_v36 = vadd.f32 %v987_v19, %v986_v3  ;;  %v999_v12 = vadd.f32 %v998_v20, %v997_v30  ;;  %v1006_v53 = vadd.f32 %v1005_v23, %v1004_v13  ;;  %v1122_v16 = vpop.permute.xlu1 %1121 }
 0x132   :  { %v916_v55 = vrot.slane %v915_v29, 1  ;;  %v923_v24 = vrot.slane %v922_v18, 1  ;;  %v897_v27 = vadd.f32 %v896_v45, %v895_v62  ;;  %v904_v26 = vadd.f32 %v903_v15, %v902_v17  ;;  %v3401_v15 = vpop.permute.xlu2 %1162 }
 0x133   :  { %v982_v11 = vrot.slane %v981_v41, 1  ;;  %v989_v46 = vrot.slane %v988_v36, 1  ;;  %v960_v40 = vadd.f32 %v959_v21, %v3356_v22  ;;  %v967_v42 = vadd.f32 %v966_v50, %v3358_v25 }
 0x134   :  { %v1000_v43 = vrot.slane %v999_v12, 2  ;;  %v1007_v52 = vrot.slane %v1006_v53, 2  ;;  %v917_v34 = vadd.f32 %v916_v55, %v915_v29  ;;  %v924_v5 = vadd.f32 %v923_v24, %v922_v18 }
 0x135   :  { %v983_v31 = vadd.f32 %v982_v11, %v981_v41  ;;  %vm1080_vm11 = vcmp.lt.s32.totalorder %v2863_v4, 13  ;;  %v990_v44 = vadd.f32 %v989_v46, %v988_v36  ;;  %vm1015_vm12 = vcmp.lt.s32.totalorder %v2863_v4, 14 }
 0x136   :  { %v1001_v48 = vadd.f32 %v1000_v43, %v999_v12  ;;  %v1008_v49 = vadd.f32 %v1007_v52, %v1006_v53  ;;  %v1056_v47 = vsel %vm240_vm5, %v897_v27, %v940_v35  ;;  %v1057_v37 = vsel %vm240_vm5, %v904_v26, %v947_v33 }
 0x137   :  { %v1081_v22 = vsel %vm1080_vm11, %v1077_v32, %v1079_v39  ;;  %v1082_v21 = vsel %vm1080_vm11, %v1079_v39, %v1077_v32  ;;  %v1066_v10 = vsel %vm240_vm5, %v917_v34, %v960_v40  ;;  %v1067_v56 = vsel %vm240_vm5, %v924_v5, %v967_v42 }
 0x138   :  { %v1002_v25 = vrot.slane %v1001_v48, 1  ;;  %v1009_v50 = vrot.slane %v1008_v49, 1  ;;  %v1083_v14 = vmul.f32 %v1082_v21, %v2868_v7  ;;  %v1084_v54 = vmul.f32 %v1081_v22, %v2870_v8 }
 0x139   :  { %v1016_v51 = vsel %vm1015_vm12, %v3369_v9, %v1014_v1  ;;  %v1017_v0 = vsel %vm1015_vm12, %v1014_v1, %v3369_v9  ;;  %v3389_v57 = vsel %vm243_vm6, %v1056_v47, %v983_v31  ;;  %v3392_v58 = vsel %vm243_vm6, %v1057_v37, %v990_v44 }
 0x13a   :  { %v1085_v59 = vsel %vm74_vm1, %v1083_v14, 0.0  ;;  %v1092_v60 = vsel %vm74_vm1, %v1084_v54, 0.0  ;;  %v1101_v62 = vrot.slane %v1083_v14, 4  ;;  %v1102_v17 = vrot.slane %v1084_v54, 4 }
 0x13b   :  { %v1086_v6 = vrot.slane %v1085_v59, 4  ;;  %v1093_v61 = vrot.slane %v1092_v60, 4  ;;  %v1003_v63 = vadd.f32 %v1002_v25, %v1001_v48  ;;  %v1010_v3 = vadd.f32 %v1009_v50, %v1008_v49  ;;  %v1120_v49 = vpop.permute.xlu0 %1119 }
 0x13c   :  { %v1018_v28 = vmul.f32 %v1017_v0, %v2868_v7  ;;  %v1019_v9 = vmul.f32 %v1016_v51, %v2870_v8  ;;  %vm1123_vm13 = vcmp.lt.s32.totalorder %v2863_v4, 3  ;;  %v1105_v13 = vsel %vm74_vm1, %v1101_v62, 0.0 }
 0x13d   :  { %v1087_v38 = vadd.f32 %v1086_v6, %v1085_v59  ;;  %v1094_v30 = vadd.f32 %v1093_v61, %v1092_v60  ;;  %v1112_v45 = vsel %vm74_vm1, %v1102_v17, 0.0  ;;  %v1106_v19 = vrot.slane %v1105_v13, 4  ;;  %v1208_v60 = vpop.permute.xlu2 %1207  ;;  %v1054_v17 = vld [vmem:[#allocation6 + $0x20] sm:$0xf] }
 0x13e   :  { %v1113_v29 = vrot.slane %v1112_v45, 4  ;;  %v1020_v18 = vsel %vm74_vm1, %v1018_v28, 0.0  ;;  %v1027_v20 = vsel %vm74_vm1, %v1019_v9, 0.0  ;;  %vm1209_vm14 = vcmp.lt.s32.totalorder %v2863_v4, 1 }
 0x13f   :  { %v1088_v23 = vrot.slane %v1087_v38, 2  ;;  %v1095_v35 = vrot.slane %v1094_v30, 2  ;;  %v1021_v33 = vrot.slane %v1020_v18, 4  ;;  %v1028_v41 = vrot.slane %v1027_v20, 4 }
 0x140   :  { %v1107_v36 = vadd.f32 %v1106_v19, %v1105_v13  ;;  %v1114_v55 = vadd.f32 %v1113_v29, %v1112_v45  ;;  %v1036_v24 = vrot.slane %v1018_v28, 4  ;;  %v1037_v12 = vrot.slane %v1019_v9, 4 }
 0x141   :  { %v1089_v53 = vadd.f32 %v1088_v23, %v1087_v38  ;;  %v1096_v27 = vadd.f32 %v1095_v35, %v1094_v30  ;;  %v1022_v26 = vadd.f32 %v1021_v33, %v1020_v18  ;;  %v1029_v11 = vadd.f32 %v1028_v41, %v1027_v20 }
 0x142   :  { %v1108_v46 = vrot.slane %v1107_v36, 2  ;;  %v1115_v39 = vrot.slane %v1114_v55, 2  ;;  %v1040_v32 = vsel %vm74_vm1, %v1036_v24, 0.0  ;;  %v1047_v40 = vsel %vm74_vm1, %v1037_v12, 0.0 }
 0x143   :  { %v1090_v42 = vrot.slane %v1089_v53, 1  ;;  %v1097_v43 = vrot.slane %v1096_v27, 1  ;;  %v1023_v52 = vrot.slane %v1022_v26, 2  ;;  %v1030_v34 = vrot.slane %v1029_v11, 2 }
 0x144   :  { %v3408_v5 = vadd.f32 %v1108_v46, %v1107_v36  ;;  %v3410_v31 = vadd.f32 %v1115_v39, %v1114_v55  ;;  %v1041_v44 = vrot.slane %v1040_v32, 4  ;;  %v1048_v48 = vrot.slane %v1047_v40, 4 }
 0x145   :  { %v1068_v1 = vsel %vm243_vm6, %v1066_v10, %v1003_v63  ;;  %v1069_v47 = vsel %vm243_vm6, %v1067_v56, %v1010_v3  ;;  %v1024_v37 = vadd.f32 %v1023_v52, %v1022_v26  ;;  %v1031_v22 = vadd.f32 %v1030_v34, %v1029_v11  ;;  %v1206_v10 = vpop.permute.xlu1 %1205  ;;  %v1055_v63 = vld [vmem:[#allocation6 + $0x28] sm:$0xf] }
 0x146   :  { %v3414_v21 = vadd.f32 %v1090_v42, %v1089_v53  ;;  %v3416_v25 = vadd.f32 %v1097_v43, %v1096_v27  ;;  %v1042_v50 = vadd.f32 %v1041_v44, %v1040_v32  ;;  %v1049_v14 = vadd.f32 %v1048_v48, %v1047_v40 }
 0x147   :  { %v1025_v54 = vrot.slane %v1024_v37, 1  ;;  %v1032_v51 = vrot.slane %v1031_v22, 1  ;;  %v1124_v0 = vsel %vm1123_vm13, %v1120_v49, %v1122_v16  ;;  %v1125_v59 = vsel %vm1123_vm13, %v1122_v16, %v1120_v49 }
 0x148   :  { %v1110_v56 = vrot.slane %v3408_v5, 1  ;;  %v1117_v6 = vrot.slane %v3410_v31, 1  ;;  %v1043_v61 = vrot.slane %v1042_v50, 2  ;;  %v1050_v62 = vrot.slane %v1049_v14, 2 }
 0x149   :  { %v1026_v3 = vadd.f32 %v1025_v54, %v1024_v37  ;;  %v1033_v28 = vadd.f32 %v1032_v51, %v1031_v22  ;;  %v1126_v9 = vmul.f32 %v1125_v59, %v2868_v7  ;;  %v1127_v38 = vmul.f32 %v1124_v0, %v2870_v8 }
 0x14a   :  { %v1044_v30 = vadd.f32 %v1043_v61, %v1042_v50  ;;  %v1051_v13 = vadd.f32 %v1050_v62, %v1049_v14  ;;  %v1210_v45 = vsel %vm1209_vm14, %v1206_v10, %v1208_v60  ;;  %v1211_v16 = vsel %vm1209_vm14, %v1208_v60, %v1206_v10 }
 0x14b   :  { %v1060_v19 = vsel %vm246_vm8, %v3389_v57, %v1026_v3  ;;  %v1061_v29 = vsel %vm246_vm8, %v3392_v58, %v1033_v28  ;;  %v1128_v18 = vsel %vm74_vm1, %v1126_v9, 0.0  ;;  %v1135_v20 = vsel %vm74_vm1, %v1127_v38, 0.0 }
 0x14c   :  { %v1045_v23 = vrot.slane %v1044_v30, 1  ;;  %v1052_v35 = vrot.slane %v1051_v13, 1  ;;  %v1062_v33 = vmul.f32 %v1060_v19, %v1054_v17  ;;  %v1063_v41 = vmul.f32 %v1061_v29, %v1055_v63 }
 0x14d   :  { %v1129_v36 = vrot.slane %v1128_v18, 4  ;;  %v1136_v55 = vrot.slane %v1135_v20, 4  ;;  %v1144_v24 = vrot.slane %v1126_v9, 4  ;;  %v1145_v12 = vrot.slane %v1127_v38, 4 }
 0x14e   :  { %v1046_v53 = vadd.f32 %v1045_v23, %v1044_v30  ;;  %v1053_v27 = vadd.f32 %v1052_v35, %v1051_v13  ;;  %1064 = vst [vmem:[%s4086_s3 + $0x20] sm:$0xf] %v1062_v33  ;;  %v1212_v57 = vmul.f32 %v1211_v16, %v2868_v7  ;;  %v1213_v58 = vmul.f32 %v1210_v45, %v2870_v8 }
 0x14f   :  { %1065 = vst [vmem:[%s4086_s3 + $0x28] sm:$0xf] %v1063_v41  ;;  %v1130_v26 = vadd.f32 %v1129_v36, %v1128_v18  ;;  %v1137_v11 = vadd.f32 %v1136_v55, %v1135_v20  ;;  %v1148_v46 = vsel %vm74_vm1, %v1144_v24, 0.0  ;;  %v1155_v39 = vsel %vm74_vm1, %v1145_v12, 0.0  ;;  %v3464_v41 = vld [vmem:[#allocation6 + $0x20] sm:$0xf0] }
 0x150   :  { %v1070_v32 = vsel %vm246_vm8, %v1068_v1, %v1046_v53  ;;  %v1071_v40 = vsel %vm246_vm8, %v1069_v47, %v1053_v27  ;;  %v1149_v42 = vrot.slane %v1148_v46, 4  ;;  %v1156_v43 = vrot.slane %v1155_v39, 4  ;;  %v1165_v53 = vpop.permute.xlu0 %1164 }
 0x151   :  { %v1072_v52 = vmul.f32 %v1070_v32, %v1054_v17  ;;  %v1073_v34 = vmul.f32 %v1071_v40, %v1055_v63  ;;  %v1131_v44 = vrot.slane %v1130_v26, 2  ;;  %v1138_v48 = vrot.slane %v1137_v11, 2 }
 0x152   :  { %v1150_v49 = vadd.f32 %v1149_v42, %v1148_v46  ;;  %v1157_v37 = vadd.f32 %v1156_v43, %v1155_v39  ;;  %v1214_v22 = vsel %vm74_vm1, %v1212_v57, 0.0  ;;  %v1221_v50 = vsel %vm74_vm1, %v1213_v58, 0.0 }
 0x153   :  { %2588 = vst [vmem:[%s4086_s3 + $0x90] sm:$0xf] %v1072_v52  ;;  %v1132_v14 = vadd.f32 %v1131_v44, %v1130_v26  ;;  %v1139_v1 = vadd.f32 %v1138_v48, %v1137_v11  ;;  %v1215_v54 = vrot.slane %v1214_v22, 4  ;;  %v1222_v47 = vrot.slane %v1221_v50, 4  ;;  %v2660_v44 = vld [vmem:[#allocation4] sm:$0xff] }
 0x154   :  { %2589 = vst [vmem:[%s4086_s3 + $0x98] sm:$0xf] %v1073_v34  ;;  %v1151_v51 = vrot.slane %v1150_v49, 2  ;;  %v1158_v0 = vrot.slane %v1157_v37, 2  ;;  %v1230_v59 = vrot.slane %v1212_v57, 4  ;;  %v1231_v60 = vrot.slane %v1213_v58, 4 }
 0x155   :  { %v1133_v10 = vrot.slane %v1132_v14, 1  ;;  %v1140_v61 = vrot.slane %v1139_v1, 1  ;;  %v1216_v62 = vadd.f32 %v1215_v54, %v1214_v22  ;;  %v1223_v17 = vadd.f32 %v1222_v47, %v1221_v50  ;;  %v2661_v50 = vld [vmem:[#allocation4 + $0x8] sm:$0xff] }
 0x156   :  { %v1152_v63 = vadd.f32 %v1151_v51, %v1150_v49  ;;  %v1159_v3 = vadd.f32 %v1158_v0, %v1157_v37  ;;  %v1234_v28 = vsel %vm74_vm1, %v1230_v59, 0.0  ;;  %v1241_v9 = vsel %vm74_vm1, %v1231_v60, 0.0 }
 0x157   :  { %v1134_v38 = vadd.f32 %v1133_v10, %v1132_v14  ;;  %v1141_v30 = vadd.f32 %v1140_v61, %v1139_v1  ;;  %v1217_v13 = vrot.slane %v1216_v62, 2  ;;  %v1224_v45 = vrot.slane %v1223_v17, 2 }
 0x158   :  { %v1153_v16 = vrot.slane %v1152_v63, 1  ;;  %v1160_v19 = vrot.slane %v1159_v3, 1  ;;  %v1235_v29 = vrot.slane %v1234_v28, 4  ;;  %v1242_v18 = vrot.slane %v1241_v9, 4 }
 0x159   :  { %v1111_v20 = vadd.f32 %v1110_v56, %v3408_v5  ;;  %v1118_v23 = vadd.f32 %v1117_v6, %v3410_v31  ;;  %v1218_v35 = vadd.f32 %v1217_v13, %v1216_v62  ;;  %v1225_v33 = vadd.f32 %v1224_v45, %v1223_v17  ;;  %v3475_v6 = vld [vmem:[#allocation6 + $0x28] sm:$0xf0] }
 0x15a   :  { %v1154_v36 = vadd.f32 %v1153_v16, %v1152_v63  ;;  %v1161_v55 = vadd.f32 %v1160_v19, %v1159_v3  ;;  %v1236_v24 = vadd.f32 %v1235_v29, %v1234_v28  ;;  %v1243_v12 = vadd.f32 %v1242_v18, %v1241_v9 }
 0x15b   :  { %v3468_v27 = vsel %vm240_vm5, %v3414_v21, %v1134_v38  ;;  %v1219_v57 = vrot.slane %v1218_v35, 1  ;;  %v1226_v58 = vrot.slane %v1225_v33, 1  ;;  %vm1166_vm15 = vcmp.lt.s32.totalorder %v2863_v4, 2 }
 0x15c   :  { %v3473_v5 = vsel %vm240_vm5, %v3416_v25, %v1141_v30  ;;  %v1237_v31 = vrot.slane %v1236_v24, 2  ;;  %v1244_v56 = vrot.slane %v1243_v12, 2  ;;  %v1258_v26 = vrot.slane %v3464_v41, 4 }
 0x15d   :  { %v3479_v11 = vsel %vm240_vm5, %v1111_v20, %v1154_v36  ;;  %v3482_v21 = vsel %vm240_vm5, %v1118_v23, %v1161_v55  ;;  %v3484_v46 = vadd.f32 %v1219_v57, %v1218_v35  ;;  %v1167_v39 = vsel %vm1166_vm15, %v3401_v15, %v1165_v53 }
 0x15e   :  { %v1238_v32 = vadd.f32 %v1237_v31, %v1236_v24  ;;  %v1245_v40 = vadd.f32 %v1244_v56, %v1243_v12  ;;  %v1168_v25 = vsel %vm1166_vm15, %v1165_v53, %v3401_v15  ;;  %v1170_v42 = vmul.f32 %v1167_v39, %v2870_v8  ;;  %v3505_v24 = vpop.permute.xlu2 %1367  ;;  %v1327_v12 = vpop.permute.xlu1 %1326 }
 0x15f   :  { %v3489_v43 = vadd.f32 %v1226_v58, %v1225_v33  ;;  %v1259_v52 = vrot.slane %v3475_v6, 4  ;;  %v1169_v34 = vmul.f32 %v1168_v25, %v2868_v7  ;;  %v1288_v48 = vmul.f32 %v2660_v44, %v2868_v7 }
 0x160   :  { %v1239_v49 = vrot.slane %v1238_v32, 1  ;;  %v1178_v37 = vsel %vm74_vm1, %v1170_v42, 0.0  ;;  %v1188_v22 = vrot.slane %v1170_v42, 4  ;;  %v1289_v14 = vmul.f32 %v2661_v50, %v2870_v8 }
 0x161   :  { %v1171_v15 = vsel %vm74_vm1, %v1169_v34, 0.0  ;;  %v1179_v1 = vrot.slane %v1178_v37, 4  ;;  %v1187_v54 = vrot.slane %v1169_v34, 4  ;;  %v1290_v47 = vsel %vm74_vm1, %v1288_v48, 0.0 }
 0x162   :  { %v3498_v51 = vadd.f32 %v1239_v49, %v1238_v32  ;;  %v1246_v0 = vrot.slane %v1245_v40, 1  ;;  %v1172_v59 = vrot.slane %v1171_v15, 4  ;;  %v1198_v60 = vsel %vm74_vm1, %v1188_v22, 0.0 }
 0x163   :  { %v1180_v10 = vadd.f32 %v1179_v1, %v1178_v37  ;;  %v1191_v61 = vsel %vm74_vm1, %v1187_v54, 0.0  ;;  %v1199_v62 = vrot.slane %v1198_v60, 4  ;;  %v1291_v17 = vrot.slane %v1290_v47, 4 }
 0x164   :  { %v1173_v63 = vadd.f32 %v1172_v59, %v1171_v15  ;;  %v1192_v3 = vrot.slane %v1191_v61, 4  ;;  %v1297_v28 = vsel %vm74_vm1, %v1289_v14, 0.0  ;;  %v1306_v9 = vrot.slane %v1288_v48, 4 }
 0x165   :  { %v1181_v38 = vrot.slane %v1180_v10, 2  ;;  %v1200_v30 = vadd.f32 %v1199_v62, %v1198_v60  ;;  %v1292_v13 = vadd.f32 %v1291_v17, %v1290_v47  ;;  %v1298_v45 = vrot.slane %v1297_v28, 4 }
 0x166   :  { %v1174_v16 = vrot.slane %v1173_v63, 2  ;;  %v1193_v19 = vadd.f32 %v1192_v3, %v1191_v61  ;;  %v1307_v29 = vrot.slane %v1289_v14, 4  ;;  %v1310_v18 = vsel %vm74_vm1, %v1306_v9, 0.0 }
 0x167   :  { %v1182_v20 = vadd.f32 %v1181_v38, %v1180_v10  ;;  %v1201_v23 = vrot.slane %v1200_v30, 2  ;;  %vm1328_vm0 = vcmp.lt.s32.totalorder %v2863_v4, 127  ;;  %v1293_v35 = vrot.slane %v1292_v13, 2 }
 0x168   :  { %v1299_v33 = vadd.f32 %v1298_v45, %v1297_v28  ;;  %v1175_v36 = vadd.f32 %v1174_v16, %v1173_v63  ;;  %v1194_v55 = vrot.slane %v1193_v19, 2  ;;  %v1311_v53 = vrot.slane %v1310_v18, 4  ;;  %v1413_v16 = vpop.permute.xlu2 %1412 }
 0x169   :  { %v1317_v57 = vsel %vm74_vm1, %v1307_v29, 0.0  ;;  %v1183_v58 = vrot.slane %v1182_v20, 1  ;;  %v1202_v31 = vadd.f32 %v1201_v23, %v1200_v30  ;;  %v1294_v56 = vadd.f32 %v1293_v35, %v1292_v13 }
 0x16a   :  { %v1300_v39 = vrot.slane %v1299_v33, 2  ;;  %v1176_v32 = vrot.slane %v1175_v36, 1  ;;  %v1195_v25 = vadd.f32 %v1194_v55, %v1193_v19  ;;  %v1312_v42 = vadd.f32 %v1311_v53, %v1310_v18  ;;  %v1411_v19 = vpop.permute.xlu1 %1410 }
 0x16b   :  { %v1318_v34 = vrot.slane %v1317_v57, 4  ;;  %v1184_v44 = vadd.f32 %v1183_v58, %v1182_v20  ;;  %v1203_v48 = vrot.slane %v1202_v31, 1  ;;  %v1295_v49 = vrot.slane %v1294_v56, 1 }
 0x16c   :  { %v1301_v37 = vadd.f32 %v1300_v39, %v1299_v33  ;;  %v1247_v22 = vadd.f32 %v1246_v0, %v1245_v40  ;;  %v1177_v50 = vadd.f32 %v1176_v32, %v1175_v36  ;;  %v1196_v14 = vrot.slane %v1195_v25, 1 }
 0x16d   :  { %v1313_v15 = vrot.slane %v1312_v42, 2  ;;  %v1204_v1 = vadd.f32 %v1203_v48, %v1202_v31  ;;  %v1253_v54 = vsel %vm243_vm6, %v3473_v5, %v1184_v44  ;;  %v1319_v59 = vadd.f32 %v1318_v34, %v1317_v57  ;;  %v1325_v5 = vpop.permute.xlu0 %1324 }
 0x16e   :  { %v1302_v47 = vrot.slane %v1301_v37, 1  ;;  %v1197_v60 = vadd.f32 %v1196_v14, %v1195_v25  ;;  %v1252_v10 = vsel %vm243_vm6, %v3468_v27, %v1177_v50  ;;  %v1255_v61 = vsel %vm246_vm8, %v1253_v54, %v3489_v43 }
 0x16f   :  { %v1314_v62 = vadd.f32 %v1313_v15, %v1312_v42  ;;  %v1254_v40 = vsel %vm246_vm8, %v1252_v10, %v3484_v46  ;;  %v1263_v0 = vmul.f32 %v1259_v52, %v1255_v61  ;;  %v1275_v17 = vsel %vm243_vm6, %v3482_v21, %v1204_v1 }
 0x170   :  { %v3520_v63 = vadd.f32 %v1295_v49, %v1294_v56  ;;  %v1262_v3 = vmul.f32 %v1258_v26, %v1254_v40  ;;  %v1274_v27 = vsel %vm243_vm6, %v3479_v11, %v1197_v60  ;;  %v1277_v43 = vsel %vm246_vm8, %v1275_v17, %v1247_v22 }
 0x171   :  { %v1315_v28 = vrot.slane %v1314_v62, 1  ;;  %v1267_v9 = vrot.slane %v1263_v0, 4  ;;  %v1276_v46 = vsel %vm246_vm8, %v1274_v27, %v3498_v51  ;;  %v1279_v38 = vmul.f32 %v1277_v43, %v1259_v52 }
 0x172   :  { %v1320_v21 = vrot.slane %v1319_v59, 2  ;;  %v1266_v30 = vrot.slane %v1262_v3, 4  ;;  %v1278_v13 = vmul.f32 %v1276_v46, %v1258_v26  ;;  %v3533_v45 = vadd.f32 %v1302_v47, %v1301_v37  ;;  %v3566_v3 = vpop.permute.xlu2 %1518  ;;  %v1478_v27 = vpop.permute.xlu1 %1477 }
 0x173   :  { %v1329_v11 = vsel %vm1328_vm0, %v1325_v5, %v1327_v12  ;;  %1271 = vst [vmem:[%s4086_s3 + $0x28] sm:$0xf0] %v1267_v9  ;;  %v1283_v51 = vrot.slane %v1279_v38, 4  ;;  %v1330_v6 = vsel %vm1328_vm0, %v1327_v12, %v1325_v5  ;;  %v3546_v26 = vadd.f32 %v1315_v28, %v1314_v62 }
 0x174   :  { %v1321_v29 = vadd.f32 %v1320_v21, %v1319_v59  ;;  %v1331_v52 = vmul.f32 %v1329_v11, %v2868_v7  ;;  %1270 = vst [vmem:[%s4086_s3 + $0x20] sm:$0xf0] %v1266_v30  ;;  %v1282_v41 = vrot.slane %v1278_v13, 4  ;;  %v1332_v18 = vmul.f32 %v1330_v6, %v2870_v8 }
 0x175   :  { %vm1414_vm2 = vcmp.lt.s32.totalorder %v2863_v4, 125  ;;  %2591 = vst [vmem:[%s4086_s3 + $0x98] sm:$0xf0] %v1283_v51  ;;  %vm1371_vm3 = vcmp.lt.s32.totalorder %v2863_v4, 126  ;;  %v1370_v15 = vpop.permute.xlu0 %1369  ;;  %vm1479_vm4 = vcmp.lt.s32.totalorder %v2863_v4, 115  ;;  %vm1565_vm7 = vcmp.lt.s32.totalorder %v2863_v4, 113 }
 0x176   :  { %v1322_v20 = vrot.slane %v1321_v29, 1  ;;  %v1333_v23 = vsel %vm74_vm1, %v1331_v52, 0.0  ;;  %v1349_v35 = vrot.slane %v1331_v52, 4  ;;  %v1415_v33 = vsel %vm1414_vm2, %v1411_v19, %v1413_v16  ;;  %2590 = vst [vmem:[%s4086_s3 + $0x90] sm:$0xf0] %v1282_v41 }
 0x177   :  { %v1334_v36 = vrot.slane %v1333_v23, 4  ;;  %v1340_v55 = vsel %vm74_vm1, %v1332_v18, 0.0  ;;  %v1350_v12 = vrot.slane %v1332_v18, 4  ;;  %v1416_v53 = vsel %vm1414_vm2, %v1413_v16, %v1411_v19 }
 0x178   :  { %v1323_v57 = vadd.f32 %v1322_v20, %v1321_v29  ;;  %v1341_v58 = vrot.slane %v1340_v55, 4  ;;  %v1353_v31 = vsel %vm74_vm1, %v1349_v35, 0.0  ;;  %v1417_v56 = vmul.f32 %v1415_v33, %v2868_v7 }
 0x179   :  { %v1335_v39 = vadd.f32 %v1334_v36, %v1333_v23  ;;  %v1354_v32 = vrot.slane %v1353_v31, 4  ;;  %v1360_v25 = vsel %vm74_vm1, %v1350_v12, 0.0  ;;  %v1418_v42 = vmul.f32 %v1416_v53, %v2870_v8 }
 0x17a   :  { %v1342_v34 = vadd.f32 %v1341_v58, %v1340_v55  ;;  %v1361_v44 = vrot.slane %v1360_v25, 4  ;;  %v1419_v48 = vsel %vm74_vm1, %v1417_v56, 0.0  ;;  %v1435_v49 = vrot.slane %v1417_v56, 4 }
 0x17b   :  { %v1336_v37 = vrot.slane %v1335_v39, 2  ;;  %v1355_v22 = vadd.f32 %v1354_v32, %v1353_v31  ;;  %v1420_v50 = vrot.slane %v1419_v48, 4  ;;  %v1426_v14 = vsel %vm74_vm1, %v1418_v42, 0.0 }
 0x17c   :  { %v1343_v1 = vrot.slane %v1342_v34, 2  ;;  %v1362_v54 = vadd.f32 %v1361_v44, %v1360_v25  ;;  %v1427_v47 = vrot.slane %v1426_v14, 4  ;;  %v1436_v59 = vrot.slane %v1418_v42, 4 }
 0x17d   :  { %v1337_v60 = vadd.f32 %v1336_v37, %v1335_v39  ;;  %v1356_v10 = vrot.slane %v1355_v22, 2  ;;  %v1421_v61 = vadd.f32 %v1420_v50, %v1419_v48  ;;  %v1439_v62 = vsel %vm74_vm1, %v1435_v49, 0.0  ;;  %v1476_v56 = vpop.permute.xlu0 %1475  ;;  %v3602_v37 = vpop.permute.xlu1 %1561 }
 0x17e   :  { %v1344_v40 = vadd.f32 %v1343_v1, %v1342_v34  ;;  %v1363_v0 = vrot.slane %v1362_v54, 2  ;;  %v1428_v17 = vadd.f32 %v1427_v47, %v1426_v14  ;;  %v1440_v5 = vrot.slane %v1439_v62, 4 }
 0x17f   :  { %v1338_v43 = vrot.slane %v1337_v60, 1  ;;  %v1357_v28 = vadd.f32 %v1356_v10, %v1355_v22  ;;  %v1422_v9 = vrot.slane %v1421_v61, 2  ;;  %v1446_v46 = vsel %vm74_vm1, %v1436_v59, 0.0 }
 0x180   :  { %v1345_v38 = vrot.slane %v1344_v40, 1  ;;  %v1364_v21 = vadd.f32 %v1363_v0, %v1362_v54  ;;  %v1429_v30 = vrot.slane %v1428_v17, 2  ;;  %v1441_v13 = vadd.f32 %v1440_v5, %v1439_v62 }
 0x181   :  { %v1339_v11 = vadd.f32 %v1338_v43, %v1337_v60  ;;  %v1358_v16 = vrot.slane %v1357_v28, 1  ;;  %v1423_v19 = vadd.f32 %v1422_v9, %v1421_v61  ;;  %v1447_v51 = vrot.slane %v1446_v46, 4 }
 0x182   :  { %v1346_v29 = vadd.f32 %v1345_v38, %v1344_v40  ;;  %v1365_v6 = vrot.slane %v1364_v21, 1  ;;  %v1430_v52 = vadd.f32 %v1429_v30, %v1428_v17  ;;  %v1442_v41 = vrot.slane %v1441_v13, 2 }
 0x183   :  { %v1359_v18 = vadd.f32 %v1358_v16, %v1357_v28  ;;  %v3571_v20 = vsel %vm240_vm5, %v3520_v63, %v1339_v11  ;;  %v1424_v23 = vrot.slane %v1423_v19, 1  ;;  %v1448_v35 = vadd.f32 %v1447_v51, %v1446_v46 }
 0x184   :  { %v1366_v33 = vadd.f32 %v1365_v6, %v1364_v21  ;;  %v3575_v36 = vsel %vm240_vm5, %v3533_v45, %v1346_v29  ;;  %v1431_v55 = vrot.slane %v1430_v52, 1  ;;  %v1443_v12 = vadd.f32 %v1442_v41, %v1441_v13 }
 0x185   :  { %v3579_v53 = vsel %vm240_vm5, %v3546_v26, %v1359_v18  ;;  %v3581_v58 = vadd.f32 %v1424_v23, %v1423_v19  ;;  %v1449_v31 = vrot.slane %v1448_v35, 2  ;;  %v1372_v63 = vsel %vm1371_vm3, %v3505_v24, %v1370_v15 }
 0x186   :  { %v3587_v39 = vsel %vm240_vm5, %v1323_v57, %v1366_v33  ;;  %v3589_v32 = vadd.f32 %v1431_v55, %v1430_v52  ;;  %v1444_v45 = vrot.slane %v1443_v12, 1  ;;  %v1373_v25 = vsel %vm1371_vm3, %v1370_v15, %v3505_v24  ;;  %v3599_v57 = vpop.permute.xlu2 %1563 }
 0x187   :  { %v1450_v26 = vadd.f32 %v1449_v31, %v1448_v35  ;;  %v1374_v42 = vmul.f32 %v1372_v63, %v2868_v7  ;;  %v1375_v34 = vmul.f32 %v1373_v25, %v2870_v8  ;;  %v1480_v48 = vsel %vm1479_vm4, %v1476_v56, %v1478_v27 }
 0x188   :  { %v3597_v44 = vadd.f32 %v1444_v45, %v1443_v12  ;;  %v1481_v49 = vsel %vm1479_vm4, %v1478_v27, %v1476_v56  ;;  %v1482_v47 = vmul.f32 %v1480_v48, %v2868_v7  ;;  %v3615_v61 = vsel %vm1565_vm7, %v3602_v37, %v3599_v57  ;;  %v1521_v48 = vpop.permute.xlu0 %1520 }
 0x189   :  { %v1451_v22 = vrot.slane %v1450_v26, 1  ;;  %v1376_v24 = vsel %vm74_vm1, %v1374_v42, 0.0  ;;  %v1383_v50 = vsel %vm74_vm1, %v1375_v34, 0.0  ;;  %v1392_v14 = vrot.slane %v1374_v42, 4 }
 0x18a   :  { %v1377_v15 = vrot.slane %v1376_v24, 4  ;;  %v1384_v1 = vrot.slane %v1383_v50, 4  ;;  %v1393_v54 = vrot.slane %v1375_v34, 4  ;;  %v1483_v10 = vmul.f32 %v1481_v49, %v2870_v8  ;;  %v1453_v49 = vld [vmem:[#allocation6 + $0x30] sm:$0xf] }
 0x18b   :  { %v3607_v59 = vadd.f32 %v1451_v22, %v1450_v26  ;;  %v1396_v60 = vsel %vm74_vm1, %v1392_v14, 0.0  ;;  %v1484_v27 = vsel %vm74_vm1, %v1482_v47, 0.0  ;;  %v1500_v28 = vrot.slane %v1482_v47, 4  ;;  %v1454_v22 = vld [vmem:[#allocation6 + $0x38] sm:$0xf] }
 0x18c   :  { %v1378_v62 = vadd.f32 %v1377_v15, %v1376_v24  ;;  %v1385_v40 = vadd.f32 %v1384_v1, %v1383_v50  ;;  %v1397_v0 = vrot.slane %v1396_v60, 4  ;;  %v1403_v17 = vsel %vm74_vm1, %v1393_v54, 0.0 }
 0x18d   :  { %v1404_v5 = vrot.slane %v1403_v17, 4  ;;  %v1491_v43 = vsel %vm74_vm1, %v1483_v10, 0.0  ;;  %v1485_v21 = vrot.slane %v1484_v27, 4  ;;  %v1501_v11 = vrot.slane %v1483_v10, 4 }
 0x18e   :  { %v1379_v9 = vrot.slane %v1378_v62, 2  ;;  %v1386_v46 = vrot.slane %v1385_v40, 2  ;;  %v1398_v38 = vadd.f32 %v1397_v0, %v1396_v60  ;;  %v1492_v13 = vrot.slane %v1491_v43, 4 }
 0x18f   :  { %v1405_v30 = vadd.f32 %v1404_v5, %v1403_v17  ;;  %v1504_v16 = vsel %vm74_vm1, %v1500_v28, 0.0  ;;  %v1486_v6 = vadd.f32 %v1485_v21, %v1484_v27  ;;  %v1511_v23 = vsel %vm74_vm1, %v1501_v11, 0.0 }
 0x190   :  { %v1380_v19 = vadd.f32 %v1379_v9, %v1378_v62  ;;  %v1387_v51 = vadd.f32 %v1386_v46, %v1385_v40  ;;  %v1399_v29 = vrot.slane %v1398_v38, 2  ;;  %v1493_v41 = vadd.f32 %v1492_v13, %v1491_v43  ;;  %v3640_v9 = vld [vmem:[#allocation6 + $0x30] sm:$0xf0]  ;;  %v3657_v13 = vld [vmem:[#allocation6 + $0x38] sm:$0xf0] }
 0x191   :  { %v1406_v52 = vrot.slane %v1405_v30, 2  ;;  %v1505_v18 = vrot.slane %v1504_v16, 4  ;;  %v1487_v12 = vrot.slane %v1486_v6, 2  ;;  %v1512_v45 = vrot.slane %v1511_v23, 4 }
 0x192   :  { %v1381_v35 = vrot.slane %v1380_v19, 1  ;;  %v1388_v33 = vrot.slane %v1387_v51, 1  ;;  %v1400_v55 = vadd.f32 %v1399_v29, %v1398_v38  ;;  %v1494_v63 = vrot.slane %v1493_v41, 2 }
 0x193   :  { %v1407_v31 = vadd.f32 %v1406_v52, %v1405_v30  ;;  %v1506_v56 = vadd.f32 %v1505_v18, %v1504_v16  ;;  %v1488_v34 = vadd.f32 %v1487_v12, %v1486_v6  ;;  %v1513_v15 = vadd.f32 %v1512_v45, %v1511_v23  ;;  %v1607_v52 = vpop.permute.xlu1 %1606 }
 0x194   :  { %v1382_v25 = vadd.f32 %v1381_v35, %v1380_v19  ;;  %v1389_v26 = vadd.f32 %v1388_v33, %v1387_v51  ;;  %v1401_v42 = vrot.slane %v1400_v55, 1  ;;  %v1495_v50 = vadd.f32 %v1494_v63, %v1493_v41  ;;  %v1605_v41 = vpop.permute.xlu0 %1604 }
 0x195   :  { %v1408_v24 = vrot.slane %v1407_v31, 1  ;;  %v1507_v14 = vrot.slane %v1506_v56, 2  ;;  %v1489_v60 = vrot.slane %v1488_v34, 1  ;;  %v1514_v46 = vrot.slane %v1513_v15, 2 }
 0x196   :  { %v1402_v1 = vadd.f32 %v1401_v42, %v1400_v55  ;;  %v1457_v54 = vsel %vm243_vm6, %v3571_v20, %v1382_v25  ;;  %v1458_v47 = vsel %vm243_vm6, %v3575_v36, %v1389_v26  ;;  %v1496_v0 = vrot.slane %v1495_v50, 1 }
 0x197   :  { %v1409_v10 = vadd.f32 %v1408_v24, %v1407_v31  ;;  %v1459_v62 = vsel %vm246_vm8, %v1457_v54, %v3581_v58  ;;  %v1460_v40 = vsel %vm246_vm8, %v1458_v47, %v3589_v32  ;;  %v3632_v43 = vadd.f32 %v1489_v60, %v1488_v34 }
 0x198   :  { %v1461_v17 = vmul.f32 %v1459_v62, %v1453_v49  ;;  %v1462_v5 = vmul.f32 %v1460_v40, %v1454_v22  ;;  %v1467_v27 = vsel %vm243_vm6, %v3579_v53, %v1402_v1  ;;  %v3638_v28 = vadd.f32 %v1496_v0, %v1495_v50 }
 0x199   :  { %v1468_v20 = vsel %vm243_vm6, %v3587_v39, %v1409_v10  ;;  %v1469_v36 = vsel %vm246_vm8, %v1467_v27, %v3597_v44  ;;  %v1508_v58 = vadd.f32 %v1507_v14, %v1506_v56  ;;  %v1567_v39 = vsel %vm1565_vm7, %v3599_v57, %v3602_v37 }
 0x19a   :  { %1463 = vst [vmem:[%s4086_s3 + $0x30] sm:$0xf] %v1461_v17  ;;  %v1470_v53 = vsel %vm246_vm8, %v1468_v20, %v3607_v59  ;;  %v1471_v32 = vmul.f32 %v1469_v36, %v1453_v49  ;;  %v1568_v21 = vmul.f32 %v3615_v61, %v2868_v7  ;;  %v1569_v30 = vmul.f32 %v1567_v39, %v2870_v8 }
 0x19b   :  { %1464 = vst [vmem:[%s4086_s3 + $0x38] sm:$0xf] %v1462_v5  ;;  %v1472_v44 = vmul.f32 %v1470_v53, %v1454_v22  ;;  %v1509_v38 = vrot.slane %v1508_v58, 1  ;;  %v1515_v59 = vadd.f32 %v1514_v46, %v1513_v15  ;;  %vm1522_vm9 = vcmp.lt.s32.totalorder %v2863_v4, 114 }
 0x19c   :  { %2592 = vst [vmem:[%s4086_s3 + $0xa0] sm:$0xf] %v1471_v32  ;;  %vm1608_vm10 = vcmp.lt.s32.totalorder %v2863_v4, 112  ;;  %v1657_v57 = vrot.slane %v3640_v9, 4  ;;  %v1570_v61 = vsel %vm74_vm1, %v1568_v21, 0.0  ;;  %v1577_v11 = vsel %vm74_vm1, %v1569_v30, 0.0 }
 0x19d   :  { %2593 = vst [vmem:[%s4086_s3 + $0xa8] sm:$0xf] %v1472_v44  ;;  %v3668_v37 = vadd.f32 %v1509_v38, %v1508_v58  ;;  %v1586_v16 = vrot.slane %v1568_v21, 4  ;;  %v1516_v19 = vrot.slane %v1515_v59, 1  ;;  %v1571_v51 = vrot.slane %v1570_v61, 4 }
 0x19e   :  { %v1578_v29 = vrot.slane %v1577_v11, 4  ;;  %v1587_v6 = vrot.slane %v1569_v30, 4  ;;  %v1523_v23 = vsel %vm1522_vm9, %v3566_v3, %v1521_v48  ;;  %v1524_v35 = vsel %vm1522_vm9, %v1521_v48, %v3566_v3 }
 0x19f   :  { %v1590_v18 = vsel %vm74_vm1, %v1586_v16, 0.0  ;;  %v1658_v33 = vrot.slane %v3657_v13, 4  ;;  %v3680_v55 = vadd.f32 %v1516_v19, %v1515_v59  ;;  %v1572_v12 = vadd.f32 %v1571_v51, %v1570_v61  ;;  %v1688_v59 = vpop.permute.xlu2 %1687 }
 0x1a0   :  { %v1579_v31 = vadd.f32 %v1578_v29, %v1577_v11  ;;  %v1591_v63 = vrot.slane %v1590_v18, 4  ;;  %v1597_v56 = vsel %vm74_vm1, %v1587_v6, 0.0  ;;  %v1525_v45 = vmul.f32 %v1523_v23, %v2868_v7 }
 0x1a1   :  { %v1526_v25 = vmul.f32 %v1524_v35, %v2870_v8  ;;  %v1609_v26 = vsel %vm1608_vm10, %v1605_v41, %v1607_v52  ;;  %v1573_v42 = vrot.slane %v1572_v12, 2  ;;  %v1598_v3 = vrot.slane %v1597_v56, 4 }
 0x1a2   :  { %v1580_v34 = vrot.slane %v1579_v31, 2  ;;  %v1592_v49 = vadd.f32 %v1591_v63, %v1590_v18  ;;  %v1527_v48 = vsel %vm74_vm1, %v1525_v45, 0.0  ;;  %v1543_v24 = vrot.slane %v1525_v45, 4 }
 0x1a3   :  { %v1534_v22 = vsel %vm74_vm1, %v1526_v25, 0.0  ;;  %v1544_v50 = vrot.slane %v1526_v25, 4  ;;  %v1574_v14 = vadd.f32 %v1573_v42, %v1572_v12  ;;  %v1599_v54 = vadd.f32 %v1598_v3, %v1597_v56 }
 0x1a4   :  { %v1581_v15 = vadd.f32 %v1580_v34, %v1579_v31  ;;  %v1593_v1 = vrot.slane %v1592_v49, 2  ;;  %v1528_v47 = vrot.slane %v1527_v48, 4  ;;  %v1535_v60 = vrot.slane %v1534_v22, 4 }
 0x1a5   :  { %v1547_v10 = vsel %vm74_vm1, %v1543_v24, 0.0  ;;  %v1554_v62 = vsel %vm74_vm1, %v1544_v50, 0.0  ;;  %v1575_v40 = vrot.slane %v1574_v14, 1  ;;  %v1600_v5 = vrot.slane %v1599_v54, 2 }
 0x1a6   :  { %v1582_v0 = vrot.slane %v1581_v15, 1  ;;  %v1594_v17 = vadd.f32 %v1593_v1, %v1592_v49  ;;  %v1529_v27 = vadd.f32 %v1528_v47, %v1527_v48  ;;  %v1536_v20 = vadd.f32 %v1535_v60, %v1534_v22 }
 0x1a7   :  { %v1548_v36 = vrot.slane %v1547_v10, 4  ;;  %v1555_v58 = vrot.slane %v1554_v62, 4  ;;  %v1576_v53 = vadd.f32 %v1575_v40, %v1574_v14  ;;  %v1601_v39 = vadd.f32 %v1600_v5, %v1599_v54 }
 0x1a8   :  { %v1583_v32 = vadd.f32 %v1582_v0, %v1581_v15  ;;  %v1595_v46 = vrot.slane %v1594_v17, 1  ;;  %v1530_v44 = vrot.slane %v1529_v27, 2  ;;  %v1537_v38 = vrot.slane %v1536_v20, 2 }
 0x1a9   :  { %v1549_v21 = vadd.f32 %v1548_v36, %v1547_v10  ;;  %v1556_v30 = vadd.f32 %v1555_v58, %v1554_v62  ;;  %v1602_v11 = vrot.slane %v1601_v39, 1  ;;  %v1610_v16 = vsel %vm1608_vm10, %v1607_v52, %v1605_v41 }
 0x1aa   :  { %v1596_v61 = vadd.f32 %v1595_v46, %v1594_v17  ;;  %v1611_v19 = vmul.f32 %v1609_v26, %v2868_v7  ;;  %v1531_v51 = vadd.f32 %v1530_v44, %v1529_v27  ;;  %v1538_v29 = vadd.f32 %v1537_v38, %v1536_v20  ;;  %v1733_v20 = vpop.permute.xlu2 %1732 }
 0x1ab   :  { %v1550_v6 = vrot.slane %v1549_v21, 2  ;;  %v1557_v18 = vrot.slane %v1556_v30, 2  ;;  %v1603_v23 = vadd.f32 %v1602_v11, %v1601_v39  ;;  %v1612_v35 = vmul.f32 %v1610_v16, %v2870_v8  ;;  %v1690_v39 = vpop.permute.xlu0 %1689 }
 0x1ac   :  { %v1613_v12 = vsel %vm74_vm1, %v1611_v19, 0.0  ;;  %v1629_v31 = vrot.slane %v1611_v19, 4  ;;  %v1532_v63 = vrot.slane %v1531_v51, 1  ;;  %v1539_v56 = vrot.slane %v1538_v29, 1 }
 0x1ad   :  { %v1551_v45 = vadd.f32 %v1550_v6, %v1549_v21  ;;  %v1558_v25 = vadd.f32 %v1557_v18, %v1556_v30  ;;  %v1614_v42 = vrot.slane %v1613_v12, 4  ;;  %v1620_v34 = vsel %vm74_vm1, %v1612_v35, 0.0 }
 0x1ae   :  { %v1630_v52 = vrot.slane %v1612_v35, 4  ;;  %v1633_v41 = vsel %vm74_vm1, %v1629_v31, 0.0  ;;  %v1533_v26 = vadd.f32 %v1532_v63, %v1531_v51  ;;  %v1540_v49 = vadd.f32 %v1539_v56, %v1538_v29 }
 0x1af   :  { %v1552_v3 = vrot.slane %v1551_v45, 1  ;;  %v1559_v48 = vrot.slane %v1558_v25, 1  ;;  %v1615_v22 = vadd.f32 %v1614_v42, %v1613_v12  ;;  %v1621_v24 = vrot.slane %v1620_v34, 4 }
 0x1b0   :  { %v1634_v50 = vrot.slane %v1633_v41, 4  ;;  %v1640_v14 = vsel %vm74_vm1, %v1630_v52, 0.0  ;;  %v1649_v54 = vsel %vm240_vm5, %v3632_v43, %v1533_v26  ;;  %v1650_v47 = vsel %vm240_vm5, %v3638_v28, %v1540_v49  ;;  %v1731_v28 = vpop.permute.xlu1 %1730 }
 0x1b1   :  { %v1553_v15 = vadd.f32 %v1552_v3, %v1551_v45  ;;  %v1560_v1 = vadd.f32 %v1559_v48, %v1558_v25  ;;  %v1616_v60 = vrot.slane %v1615_v22, 2  ;;  %v1622_v10 = vadd.f32 %v1621_v24, %v1620_v34 }
 0x1b2   :  { %v1635_v62 = vadd.f32 %v1634_v50, %v1633_v41  ;;  %v1641_v40 = vrot.slane %v1640_v14, 4  ;;  %v1651_v5 = vsel %vm243_vm6, %v1649_v54, %v1576_v53  ;;  %v1652_v27 = vsel %vm243_vm6, %v1650_v47, %v1583_v32 }
 0x1b3   :  { %v1671_v0 = vsel %vm240_vm5, %v3668_v37, %v1553_v15  ;;  %v1672_v17 = vsel %vm240_vm5, %v3680_v55, %v1560_v1  ;;  %v1617_v36 = vadd.f32 %v1616_v60, %v1615_v22  ;;  %v1623_v43 = vrot.slane %v1622_v10, 2 }
 0x1b4   :  { %v1636_v58 = vrot.slane %v1635_v62, 2  ;;  %v1642_v46 = vadd.f32 %v1641_v40, %v1640_v14  ;;  %v1673_v44 = vsel %vm243_vm6, %v1671_v0, %v1596_v61  ;;  %v1674_v38 = vsel %vm243_vm6, %v1672_v17, %v1603_v23 }
 0x1b5   :  { %vm1734_vm11 = vcmp.lt.s32.totalorder %v2863_v4, 110  ;;  %vm1691_vm12 = vcmp.lt.s32.totalorder %v2863_v4, 111  ;;  %v1618_v37 = vrot.slane %v1617_v36, 1  ;;  %v1624_v55 = vadd.f32 %v1623_v43, %v1622_v10  ;;  %v3748_v43 = vpop.permute.xlu2 %1816 }
 0x1b6   :  { %v1637_v53 = vadd.f32 %v1636_v58, %v1635_v62  ;;  %v1643_v21 = vrot.slane %v1642_v46, 2  ;;  %v1735_v32 = vsel %vm1734_vm11, %v1731_v28, %v1733_v20  ;;  %v1736_v30 = vsel %vm1734_vm11, %v1733_v20, %v1731_v28 }
 0x1b7   :  { %v1692_v11 = vsel %vm1691_vm12, %v1688_v59, %v1690_v39  ;;  %v1693_v16 = vsel %vm1691_vm12, %v1690_v39, %v1688_v59  ;;  %v1619_v19 = vadd.f32 %v1618_v37, %v1617_v36  ;;  %v1625_v51 = vrot.slane %v1624_v55, 1 }
 0x1b8   :  { %v1638_v29 = vrot.slane %v1637_v53, 1  ;;  %v1644_v6 = vadd.f32 %v1643_v21, %v1642_v46  ;;  %v1737_v61 = vmul.f32 %v1735_v32, %v2868_v7  ;;  %v1738_v18 = vmul.f32 %v1736_v30, %v2870_v8  ;;  %v1776_v58 = vpop.permute.xlu1 %1775 }
 0x1b9   :  { %v1694_v23 = vmul.f32 %v1692_v11, %v2868_v7  ;;  %v1695_v35 = vmul.f32 %v1693_v16, %v2870_v8  ;;  %v1626_v12 = vadd.f32 %v1625_v51, %v1624_v55  ;;  %v1653_v56 = vsel %vm246_vm8, %v1651_v5, %v1619_v19 }
 0x1ba   :  { %v1639_v31 = vadd.f32 %v1638_v29, %v1637_v53  ;;  %v1645_v63 = vrot.slane %v1644_v6, 1  ;;  %v1661_v59 = vmul.f32 %v1657_v57, %v1653_v56  ;;  %v1739_v45 = vsel %vm74_vm1, %v1737_v61, 0.0 }
 0x1bb   :  { %v1746_v25 = vsel %vm74_vm1, %v1738_v18, 0.0  ;;  %v1755_v42 = vrot.slane %v1737_v61, 4  ;;  %v1654_v52 = vsel %vm246_vm8, %v1652_v27, %v1626_v12  ;;  %v1740_v26 = vrot.slane %v1739_v45, 4 }
 0x1bc   :  { %v1646_v34 = vadd.f32 %v1645_v63, %v1644_v6  ;;  %v1675_v41 = vsel %vm246_vm8, %v1673_v44, %v1639_v31  ;;  %v1662_v49 = vmul.f32 %v1658_v33, %v1654_v52  ;;  %v1665_v3 = vrot.slane %v1661_v59, 4 }
 0x1bd   :  { %v1677_v48 = vmul.f32 %v1675_v41, %v1657_v57  ;;  %v1747_v22 = vrot.slane %v1746_v25, 4  ;;  %v1741_v50 = vadd.f32 %v1740_v26, %v1739_v45  ;;  %v1756_v14 = vrot.slane %v1738_v18, 4  ;;  %v1884_v52 = vpop.permute.xlu2 %1883 }
 0x1be   :  { %v1676_v24 = vsel %vm246_vm8, %v1674_v38, %v1646_v34  ;;  %v1759_v15 = vsel %vm74_vm1, %v1755_v42, 0.0  ;;  %v1666_v1 = vrot.slane %v1662_v49, 4  ;;  %1669 = vst [vmem:[%s4086_s3 + $0x30] sm:$0xf0] %v1665_v3  ;;  %v1696_v57 = vsel %vm74_vm1, %v1694_v23, 0.0  ;;  %v1774_v38 = vpop.permute.xlu0 %1773 }
 0x1bf   :  { %v1678_v54 = vmul.f32 %v1676_v24, %v1658_v33  ;;  %v1681_v47 = vrot.slane %v1677_v48, 4  ;;  %v1748_v60 = vadd.f32 %v1747_v22, %v1746_v25  ;;  %v1766_v9 = vsel %vm74_vm1, %v1756_v14, 0.0 }
 0x1c0   :  { %1670 = vst [vmem:[%s4086_s3 + $0x38] sm:$0xf0] %v1666_v1  ;;  %v1760_v62 = vrot.slane %v1759_v15, 4  ;;  %v1697_v40 = vrot.slane %v1696_v57, 4  ;;  %v1703_v13 = vsel %vm74_vm1, %v1695_v35, 0.0  ;;  %v1712_v33 = vrot.slane %v1694_v23, 4  ;;  %v1882_v41 = vpop.permute.xlu1 %1881 }
 0x1c1   :  { %v1682_v10 = vrot.slane %v1678_v54, 4  ;;  %2594 = vst [vmem:[%s4086_s3 + $0xa0] sm:$0xf0] %v1681_v47  ;;  %v1742_v0 = vrot.slane %v1741_v50, 2  ;;  %v1749_v17 = vrot.slane %v1748_v60, 2  ;;  %v1767_v5 = vrot.slane %v1766_v9, 4 }
 0x1c2   :  { %v1704_v27 = vrot.slane %v1703_v13, 4  ;;  %v1713_v20 = vrot.slane %v1695_v35, 4  ;;  %v1716_v36 = vsel %vm74_vm1, %v1712_v33, 0.0  ;;  %v1761_v46 = vadd.f32 %v1760_v62, %v1759_v15 }
 0x1c3   :  { %2595 = vst [vmem:[%s4086_s3 + $0xa8] sm:$0xf0] %v1682_v10  ;;  %v1698_v28 = vadd.f32 %v1697_v40, %v1696_v57  ;;  %v1717_v39 = vrot.slane %v1716_v36, 4  ;;  %v1743_v37 = vadd.f32 %v1742_v0, %v1741_v50  ;;  %v1750_v55 = vadd.f32 %v1749_v17, %v1748_v60 }
 0x1c4   :  { %v1723_v44 = vsel %vm74_vm1, %v1713_v20, 0.0  ;;  %v1768_v53 = vadd.f32 %v1767_v5, %v1766_v9  ;;  %v1705_v21 = vadd.f32 %v1704_v27, %v1703_v13  ;;  %vm1777_vm13 = vcmp.lt.s32.totalorder %v2863_v4, 109 }
 0x1c5   :  { %v1718_v32 = vadd.f32 %v1717_v39, %v1716_v36  ;;  %v1724_v30 = vrot.slane %v1723_v44, 4  ;;  %v1762_v11 = vrot.slane %v1761_v46, 2  ;;  %v1699_v16 = vrot.slane %v1698_v28, 2 }
 0x1c6   :  { %v1778_v19 = vsel %vm1777_vm13, %v1774_v38, %v1776_v58  ;;  %v1779_v29 = vsel %vm1777_vm13, %v1776_v58, %v1774_v38  ;;  %v1744_v6 = vrot.slane %v1743_v37, 1  ;;  %v1769_v61 = vrot.slane %v1768_v53, 2  ;;  %v1819_v58 = vpop.permute.xlu0 %1818 }
 0x1c7   :  { %v1725_v51 = vadd.f32 %v1724_v30, %v1723_v44  ;;  %v1780_v18 = vmul.f32 %v1778_v19, %v2868_v7  ;;  %v1751_v23 = vrot.slane %v1750_v55, 1  ;;  %v1706_v35 = vrot.slane %v1705_v21, 2 }
 0x1c8   :  { %v1719_v12 = vrot.slane %v1718_v32, 2  ;;  %v1781_v31 = vmul.f32 %v1779_v29, %v2870_v8  ;;  %v1763_v63 = vadd.f32 %v1762_v11, %v1761_v46  ;;  %v1700_v56 = vadd.f32 %v1699_v16, %v1698_v28 }
 0x1c9   :  { %v1782_v59 = vsel %vm74_vm1, %v1780_v18, 0.0  ;;  %v1798_v45 = vrot.slane %v1780_v18, 4  ;;  %v1726_v25 = vrot.slane %v1725_v51, 2  ;;  %vm1885_vm14 = vcmp.lt.s32.totalorder %v2863_v4, 98 }
 0x1ca   :  { %v1783_v42 = vrot.slane %v1782_v59, 4  ;;  %v1789_v34 = vsel %vm74_vm1, %v1781_v31, 0.0  ;;  %v1770_v26 = vadd.f32 %v1769_v61, %v1768_v53  ;;  %v1799_v3 = vrot.slane %v1781_v31, 4 }
 0x1cb   :  { %v1790_v49 = vrot.slane %v1789_v34, 4  ;;  %v1802_v48 = vsel %vm74_vm1, %v1798_v45, 0.0  ;;  %v1707_v22 = vadd.f32 %v1706_v35, %v1705_v21  ;;  %v1720_v24 = vadd.f32 %v1719_v12, %v1718_v32 }
 0x1cc   :  { %v1784_v50 = vadd.f32 %v1783_v42, %v1782_v59  ;;  %v1803_v14 = vrot.slane %v1802_v48, 4  ;;  %v1809_v1 = vsel %vm74_vm1, %v1799_v3, 0.0  ;;  %v1886_v54 = vsel %vm1885_vm14, %v1882_v41, %v1884_v52  ;;  %v1927_v3 = vpop.permute.xlu1 %1926 }
 0x1cd   :  { %v1791_v15 = vadd.f32 %v1790_v49, %v1789_v34  ;;  %v1887_v47 = vsel %vm1885_vm14, %v1884_v52, %v1882_v41  ;;  %v1701_v60 = vrot.slane %v1700_v56, 1  ;;  %v1727_v9 = vadd.f32 %v1726_v25, %v1725_v51 }
 0x1ce   :  { %v1785_v57 = vrot.slane %v1784_v50, 2  ;;  %v1804_v10 = vadd.f32 %v1803_v14, %v1802_v48  ;;  %v1810_v40 = vrot.slane %v1809_v1, 4  ;;  %v1888_v13 = vmul.f32 %v1886_v54, %v2868_v7 }
 0x1cf   :  { %v1792_v62 = vrot.slane %v1791_v15, 2  ;;  %v1889_v33 = vmul.f32 %v1887_v47, %v2870_v8  ;;  %v1764_v0 = vrot.slane %v1763_v63, 1  ;;  %v1708_v17 = vrot.slane %v1707_v22, 1 }
 0x1d0   :  { %v1786_v5 = vadd.f32 %v1785_v57, %v1784_v50  ;;  %v1805_v27 = vrot.slane %v1804_v10, 2  ;;  %v1771_v20 = vrot.slane %v1770_v26, 1  ;;  %v1721_v36 = vrot.slane %v1720_v24, 1  ;;  %v1925_v50 = vpop.permute.xlu0 %1924 }
 0x1d1   :  { %v1728_v46 = vrot.slane %v1727_v9, 1  ;;  %v1793_v28 = vadd.f32 %v1792_v62, %v1791_v15  ;;  %v1890_v39 = vsel %vm74_vm1, %v1888_v13, 0.0  ;;  %v1897_v44 = vsel %vm74_vm1, %v1889_v33, 0.0 }
 0x1d2   :  { %v1745_v38 = vadd.f32 %v1744_v6, %v1743_v37  ;;  %v1752_v53 = vadd.f32 %v1751_v23, %v1750_v55  ;;  %v1702_v21 = vadd.f32 %v1701_v60, %v1700_v56  ;;  %v1811_v32 = vadd.f32 %v1810_v40, %v1809_v1 }
 0x1d3   :  { %v1765_v30 = vadd.f32 %v1764_v0, %v1763_v63  ;;  %v1709_v11 = vadd.f32 %v1708_v17, %v1707_v22  ;;  %v1787_v16 = vrot.slane %v1786_v5, 1  ;;  %v1806_v19 = vadd.f32 %v1805_v27, %v1804_v10 }
 0x1d4   :  { %v1722_v51 = vadd.f32 %v1721_v36, %v1720_v24  ;;  %v1891_v29 = vrot.slane %v1890_v39, 4  ;;  %v1898_v61 = vrot.slane %v1897_v44, 4  ;;  %vm1820_vm15 = vcmp.lt.s32.totalorder %v2863_v4, 99 }
 0x1d5   :  { %v1772_v18 = vadd.f32 %v1771_v20, %v1770_v26  ;;  %v1729_v35 = vadd.f32 %v1728_v46, %v1727_v9  ;;  %v1794_v12 = vrot.slane %v1793_v28, 1  ;;  %v1861_v31 = vsel %vm240_vm5, %v1702_v21, %v1745_v38 }
 0x1d6   :  { %v1812_v59 = vrot.slane %v1811_v32, 2  ;;  %v1906_v45 = vrot.slane %v1888_v13, 4  ;;  %v1907_v37 = vrot.slane %v1889_v33, 4  ;;  %v1862_v55 = vsel %vm240_vm5, %v1709_v11, %v1752_v53 }
 0x1d7   :  { %v1788_v6 = vadd.f32 %v1787_v16, %v1786_v5  ;;  %v1807_v23 = vrot.slane %v1806_v19, 1  ;;  %v1821_v63 = vsel %vm1820_vm15, %v3748_v43, %v1819_v58  ;;  %v1871_v56 = vsel %vm240_vm5, %v1722_v51, %v1765_v30 }
 0x1d8   :  { %v1892_v25 = vadd.f32 %v1891_v29, %v1890_v39  ;;  %v3768_v42 = vadd.f32 %v1898_v61, %v1897_v44  ;;  %v1822_v34 = vsel %vm1820_vm15, %v1819_v58, %v3748_v43  ;;  %v3772_v52 = vsel %vm240_vm5, %v1729_v35, %v1772_v18  ;;  %v2290_v18 = vpop.permute.xlu1 %2289 }
 0x1d9   :  { %v1795_v41 = vadd.f32 %v1794_v12, %v1793_v28  ;;  %v1823_v26 = vmul.f32 %v1821_v63, %v2868_v7  ;;  %v1824_v49 = vmul.f32 %v1822_v34, %v2870_v8  ;;  %v1813_v48 = vadd.f32 %v1812_v59, %v1811_v32 }
 0x1da   :  { %v1910_v22 = vsel %vm74_vm1, %v1906_v45, 0.0  ;;  %v1917_v24 = vsel %vm74_vm1, %v1907_v37, 0.0  ;;  %vm1928_vm0 = vcmp.lt.s32.totalorder %v2863_v4, 97  ;;  %v1808_v14 = vadd.f32 %v1807_v23, %v1806_v19 }
 0x1db   :  { %v1863_v43 = vsel %vm243_vm6, %v1861_v31, %v1788_v6  ;;  %v1825_v15 = vsel %vm74_vm1, %v1823_v26, 0.0  ;;  %v1832_v1 = vsel %vm74_vm1, %v1824_v49, 0.0  ;;  %v1893_v54 = vrot.slane %v1892_v25, 2  ;;  %v1968_v31 = vpop.permute.xlu2 %1967 }
 0x1dc   :  { %v1900_v47 = vrot.slane %v3768_v42, 2  ;;  %v1826_v60 = vrot.slane %v1825_v15, 4  ;;  %v1833_v9 = vrot.slane %v1832_v1, 4  ;;  %v1841_v57 = vrot.slane %v1823_v26, 4 }
 0x1dd   :  { %v1842_v10 = vrot.slane %v1824_v49, 4  ;;  %v1929_v62 = vsel %vm1928_vm0, %v1925_v50, %v1927_v3  ;;  %v1930_v40 = vsel %vm1928_vm0, %v1927_v3, %v1925_v50  ;;  %v1814_v13 = vrot.slane %v1813_v48, 1 }
 0x1de   :  { %v1911_v33 = vrot.slane %v1910_v22, 4  ;;  %v1827_v0 = vadd.f32 %v1826_v60, %v1825_v15  ;;  %v1834_v17 = vadd.f32 %v1833_v9, %v1832_v1  ;;  %v1845_v5 = vsel %vm74_vm1, %v1841_v57, 0.0 }
 0x1df   :  { %v1852_v27 = vsel %vm74_vm1, %v1842_v10, 0.0  ;;  %v1931_v20 = vmul.f32 %v1929_v62, %v2868_v7  ;;  %v1932_v36 = vmul.f32 %v1930_v40, %v2870_v8  ;;  %v1864_v58 = vsel %vm243_vm6, %v1862_v55, %v1795_v41  ;;  %v1860_v41 = vld [vmem:[#allocation6 + $0x48] sm:$0xf] }
 0x1e0   :  { %v1918_v46 = vrot.slane %v1917_v24, 4  ;;  %v1828_v28 = vrot.slane %v1827_v0, 2  ;;  %v1835_v39 = vrot.slane %v1834_v17, 2  ;;  %v1846_v44 = vrot.slane %v1845_v5, 4 }
 0x1e1   :  { %v1853_v38 = vrot.slane %v1852_v27, 4  ;;  %v1933_v53 = vsel %vm74_vm1, %v1931_v20, 0.0  ;;  %v1940_v21 = vsel %vm74_vm1, %v1932_v36, 0.0  ;;  %v1873_v32 = vsel %vm243_vm6, %v1871_v56, %v1808_v14  ;;  %v1859_v56 = vld [vmem:[#allocation6 + $0x40] sm:$0xf] }
 0x1e2   :  { %v1912_v30 = vadd.f32 %v1911_v33, %v1910_v22  ;;  %v1829_v11 = vadd.f32 %v1828_v28, %v1827_v0  ;;  %v1836_v16 = vadd.f32 %v1835_v39, %v1834_v17  ;;  %v1847_v19 = vadd.f32 %v1846_v44, %v1845_v5 }
 0x1e3   :  { %v1854_v51 = vadd.f32 %v1853_v38, %v1852_v27  ;;  %v1934_v29 = vrot.slane %v1933_v53, 4  ;;  %v1949_v61 = vrot.slane %v1931_v20, 4  ;;  %v1941_v59 = vrot.slane %v1940_v21, 4 }
 0x1e4   :  { %v1830_v35 = vrot.slane %v1829_v11, 1  ;;  %v1837_v12 = vrot.slane %v1836_v16, 1  ;;  %v1950_v45 = vrot.slane %v1932_v36, 4  ;;  %v1815_v37 = vadd.f32 %v1814_v13, %v1813_v48  ;;  %v2288_v13 = vpop.permute.xlu0 %2287 }
 0x1e5   :  { %v1894_v55 = vadd.f32 %v1893_v54, %v1892_v25  ;;  %v1848_v6 = vrot.slane %v1847_v19, 2  ;;  %v1855_v23 = vrot.slane %v1854_v51, 2  ;;  %v1913_v63 = vrot.slane %v1912_v30, 2 }
 0x1e6   :  { %v1919_v34 = vadd.f32 %v1918_v46, %v1917_v24  ;;  %v1831_v26 = vadd.f32 %v1830_v35, %v1829_v11  ;;  %v1838_v49 = vadd.f32 %v1837_v12, %v1836_v16  ;;  %v1935_v50 = vadd.f32 %v1934_v29, %v1933_v53 }
 0x1e7   :  { %v1849_v3 = vadd.f32 %v1848_v6, %v1847_v19  ;;  %v1856_v22 = vadd.f32 %v1855_v23, %v1854_v51  ;;  %v1953_v14 = vsel %vm74_vm1, %v1949_v61, 0.0  ;;  %v1942_v60 = vadd.f32 %v1941_v59, %v1940_v21 }
 0x1e8   :  { %v1865_v15 = vsel %vm246_vm8, %v1863_v43, %v1831_v26  ;;  %v1866_v1 = vsel %vm246_vm8, %v1864_v58, %v1838_v49  ;;  %v1960_v25 = vsel %vm74_vm1, %v1950_v45, 0.0  ;;  %v1901_v57 = vadd.f32 %v1900_v47, %v3768_v42  ;;  %v1970_v58 = vpop.permute.xlu1 %1969 }
 0x1e9   :  { %v1850_v48 = vrot.slane %v1849_v3, 1  ;;  %v1857_v54 = vrot.slane %v1856_v22, 1  ;;  %v1867_v9 = vmul.f32 %v1865_v15, %v1859_v56  ;;  %v1868_v24 = vmul.f32 %v1866_v1, %v1860_v41 }
 0x1ea   :  { %v1914_v10 = vadd.f32 %v1913_v63, %v1912_v30  ;;  %v1920_v62 = vrot.slane %v1919_v34, 2  ;;  %v1954_v40 = vrot.slane %v1953_v14, 4  ;;  %v1936_v43 = vrot.slane %v1935_v50, 2 }
 0x1eb   :  { %v1851_v33 = vadd.f32 %v1850_v48, %v1849_v3  ;;  %v1858_v0 = vadd.f32 %v1857_v54, %v1856_v22  ;;  %1869 = vst [vmem:[%s4086_s3 + $0x40] sm:$0xf] %v1867_v9  ;;  %vm2291_vm2 = vcmp.lt.s32.totalorder %v2863_v4, 81  ;;  %v1874_v17 = vsel %vm243_vm6, %v3772_v52, %v1815_v37  ;;  %v3808_v52 = vpop.permute.xlu2 %2330 }
 0x1ec   :  { %1870 = vst [vmem:[%s4086_s3 + $0x48] sm:$0xf] %v1868_v24  ;;  %v1943_v42 = vrot.slane %v1942_v60, 2  ;;  %v1961_v47 = vrot.slane %v1960_v25, 4  ;;  %vm1971_vm3 = vcmp.lt.s32.totalorder %v2863_v4, 96  ;;  %v2292_v20 = vsel %vm2291_vm2, %v2288_v13, %v2290_v18 }
 0x1ed   :  { %v1875_v5 = vsel %vm246_vm8, %v1873_v32, %v1851_v33  ;;  %v1876_v27 = vsel %vm246_vm8, %v1874_v17, %v1858_v0  ;;  %v2293_v36 = vsel %vm2291_vm2, %v2290_v18, %v2288_v13  ;;  %v1895_v46 = vrot.slane %v1894_v55, 1 }
 0x1ee   :  { %v1877_v28 = vmul.f32 %v1875_v5, %v1859_v56  ;;  %v1878_v39 = vmul.f32 %v1876_v27, %v1860_v41  ;;  %v1955_v44 = vadd.f32 %v1954_v40, %v1953_v14  ;;  %v1902_v38 = vrot.slane %v1901_v57, 1 }
 0x1ef   :  { %v1915_v53 = vrot.slane %v1914_v10, 1  ;;  %v1921_v21 = vadd.f32 %v1920_v62, %v1919_v34  ;;  %v1937_v30 = vadd.f32 %v1936_v43, %v1935_v50  ;;  %v2294_v32 = vmul.f32 %v2292_v20, %v2868_v7 }
 0x1f0   :  { %2596 = vst [vmem:[%s4086_s3 + $0xb0] sm:$0xf] %v1877_v28  ;;  %v2295_v11 = vmul.f32 %v2293_v36, %v2870_v8  ;;  %v1972_v16 = vsel %vm1971_vm3, %v1968_v31, %v1970_v58  ;;  %v1973_v19 = vsel %vm1971_vm3, %v1970_v58, %v1968_v31  ;;  %v1944_v51 = vadd.f32 %v1943_v42, %v1942_v60 }
 0x1f1   :  { %2597 = vst [vmem:[%s4086_s3 + $0xb8] sm:$0xf] %v1878_v39  ;;  %v1962_v29 = vadd.f32 %v1961_v47, %v1960_v25  ;;  %v1896_v61 = vadd.f32 %v1895_v46, %v1894_v55  ;;  %v1956_v18 = vrot.slane %v1955_v44, 2  ;;  %v1903_v35 = vadd.f32 %v1902_v38, %v1901_v57  ;;  %v2333_v39 = vpop.permute.xlu0 %2332 }
 0x1f2   :  { %v1922_v12 = vrot.slane %v1921_v21, 1  ;;  %v1974_v59 = vmul.f32 %v1972_v16, %v2868_v7  ;;  %v1975_v45 = vmul.f32 %v1973_v19, %v2870_v8  ;;  %v1916_v37 = vadd.f32 %v1915_v53, %v1914_v10 }
 0x1f3   :  { %v1938_v6 = vrot.slane %v1937_v30, 1  ;;  %v2296_v23 = vsel %vm74_vm1, %v2294_v32, 0.0  ;;  %v2303_v31 = vsel %vm74_vm1, %v2295_v11, 0.0  ;;  %v1945_v63 = vrot.slane %v1944_v51, 1  ;;  %v3828_v25 = vpop.permute.xlu2 %2373 }
 0x1f4   :  { %v1963_v34 = vrot.slane %v1962_v29, 2  ;;  %v1976_v56 = vsel %vm74_vm1, %v1974_v59, 0.0  ;;  %v1983_v41 = vsel %vm74_vm1, %v1975_v45, 0.0  ;;  %v1957_v55 = vadd.f32 %v1956_v18, %v1955_v44 }
 0x1f5   :  { %v2312_v26 = vrot.slane %v2294_v32, 4  ;;  %v1977_v49 = vrot.slane %v1976_v56, 4  ;;  %v1984_v3 = vrot.slane %v1983_v41, 4  ;;  %v2297_v22 = vrot.slane %v2296_v23, 4 }
 0x1f6   :  { %v2304_v50 = vrot.slane %v2303_v31, 4  ;;  %v1992_v14 = vrot.slane %v1974_v59, 4  ;;  %v1993_v15 = vrot.slane %v1975_v45, 4  ;;  %v1939_v1 = vadd.f32 %v1938_v6, %v1937_v30 }
 0x1f7   :  { %v2313_v60 = vrot.slane %v2295_v11, 4  ;;  %v1978_v48 = vadd.f32 %v1977_v49, %v1976_v56  ;;  %v1985_v54 = vadd.f32 %v1984_v3, %v1983_v41  ;;  %v1946_v9 = vadd.f32 %v1945_v63, %v1944_v51 }
 0x1f8   :  { %v1964_v24 = vadd.f32 %v1963_v34, %v1962_v29  ;;  %v1996_v57 = vsel %vm74_vm1, %v1992_v14, 0.0  ;;  %v2003_v10 = vsel %vm74_vm1, %v1993_v15, 0.0  ;;  %v1958_v62 = vrot.slane %v1957_v55, 1 }
 0x1f9   :  { %v2316_v40 = vsel %vm74_vm1, %v2312_v26, 0.0  ;;  %v1979_v13 = vrot.slane %v1978_v48, 2  ;;  %v1986_v33 = vrot.slane %v1985_v54, 2  ;;  %v2298_v0 = vadd.f32 %v2297_v22, %v2296_v23 }
 0x1fa   :  { %v2305_v43 = vadd.f32 %v2304_v50, %v2303_v31  ;;  %v1997_v17 = vrot.slane %v1996_v57, 4  ;;  %v2004_v42 = vrot.slane %v2003_v10, 4  ;;  %v1923_v47 = vadd.f32 %v1922_v12, %v1921_v21  ;;  %v2011_v31 = vpop.permute.xlu1 %2010 }
 0x1fb   :  { %v2055_v5 = vsel %vm240_vm5, %v1896_v61, %v1939_v1  ;;  %v2323_v27 = vsel %vm74_vm1, %v2313_v60, 0.0  ;;  %v1980_v20 = vadd.f32 %v1979_v13, %v1978_v48  ;;  %v1965_v36 = vrot.slane %v1964_v24, 1  ;;  %v2013_v23 = vpop.permute.xlu2 %2012 }
 0x1fc   :  { %v1987_v58 = vadd.f32 %v1986_v33, %v1985_v54  ;;  %v1998_v46 = vadd.f32 %v1997_v17, %v1996_v57  ;;  %v2005_v28 = vadd.f32 %v2004_v42, %v2003_v10  ;;  %v1959_v44 = vadd.f32 %v1958_v62, %v1957_v55  ;;  %v3859_v62 = vld [vmem:[#allocation6 + $0x40] sm:$0xf0] }
 0x1fd   :  { %v2056_v38 = vsel %vm240_vm5, %v1903_v35, %v1946_v9  ;;  %v2317_v53 = vrot.slane %v2316_v40, 4  ;;  %vm2334_vm4 = vcmp.lt.s32.totalorder %v2863_v4, 80  ;;  %v2299_v30 = vrot.slane %v2298_v0, 2 }
 0x1fe   :  { %v2306_v32 = vrot.slane %v2305_v43, 2  ;;  %v2324_v11 = vrot.slane %v2323_v27, 4  ;;  %v1999_v21 = vrot.slane %v1998_v46, 2  ;;  %v1981_v16 = vrot.slane %v1980_v20, 1 }
 0x1ff   :  { %v2006_v19 = vrot.slane %v2005_v28, 2  ;;  %v2335_v51 = vsel %vm2334_vm4, %v3808_v52, %v2333_v39  ;;  %v2336_v29 = vsel %vm2334_vm4, %v2333_v39, %v3808_v52  ;;  %v1966_v61 = vadd.f32 %v1965_v36, %v1964_v24 }
 0x200   :  { %v1988_v18 = vrot.slane %v1987_v58, 1  ;;  %v2337_v12 = vmul.f32 %v2335_v51, %v2868_v7  ;;  %v2338_v59 = vmul.f32 %v2336_v29, %v2870_v8  ;;  %v2077_v35 = vsel %vm240_vm5, %v1916_v37, %v1959_v44 }
 0x201   :  { %v3842_v45 = vadd.f32 %v2317_v53, %v2316_v40  ;;  %v2000_v6 = vadd.f32 %v1999_v21, %v1998_v46  ;;  %vm2014_vm7 = vcmp.lt.s32.totalorder %v2863_v4, 95  ;;  %v3845_v63 = vadd.f32 %v2299_v30, %v2298_v0 }
 0x202   :  { %v3847_v34 = vadd.f32 %v2306_v32, %v2305_v43  ;;  %v3849_v52 = vadd.f32 %v2324_v11, %v2323_v27  ;;  %v2339_v56 = vsel %vm74_vm1, %v2337_v12, 0.0  ;;  %v1982_v41 = vadd.f32 %v1981_v16, %v1980_v20  ;;  %v3866_v27 = vld [vmem:[#allocation6 + $0x48] sm:$0xf0] }
 0x203   :  { %v2007_v55 = vadd.f32 %v2006_v19, %v2005_v28  ;;  %v2346_v26 = vsel %vm74_vm1, %v2338_v59, 0.0  ;;  %v2355_v37 = vrot.slane %v2337_v12, 4  ;;  %v1989_v49 = vadd.f32 %v1988_v18, %v1987_v58 }
 0x204   :  { %v2356_v3 = vrot.slane %v2338_v59, 4  ;;  %v2015_v22 = vsel %vm2014_vm7, %v2011_v31, %v2013_v23  ;;  %v2016_v50 = vsel %vm2014_vm7, %v2013_v23, %v2011_v31  ;;  %v2078_v14 = vsel %vm240_vm5, %v1923_v47, %v1966_v61  ;;  %v2376_v61 = vpop.permute.xlu0 %2375 }
 0x205   :  { %v2001_v15 = vrot.slane %v2000_v6, 1  ;;  %v2340_v1 = vrot.slane %v2339_v56, 4  ;;  %v2359_v60 = vsel %vm74_vm1, %v2355_v37, 0.0  ;;  %v2301_v48 = vrot.slane %v3845_v63, 1 }
 0x206   :  { %v2319_v54 = vrot.slane %v3842_v45, 2  ;;  %v2326_v9 = vrot.slane %v3849_v52, 2  ;;  %v2347_v24 = vrot.slane %v2346_v26, 4  ;;  %v2308_v57 = vrot.slane %v3847_v34, 1 }
 0x207   :  { %v2008_v10 = vrot.slane %v2007_v55, 1  ;;  %v2017_v40 = vmul.f32 %v2015_v22, %v2868_v7  ;;  %v2018_v13 = vmul.f32 %v2016_v50, %v2870_v8  ;;  %v2057_v33 = vsel %vm243_vm6, %v2055_v5, %v1982_v41 }
 0x208   :  { %v2058_v0 = vsel %vm243_vm6, %v2056_v38, %v1989_v49  ;;  %v2360_v43 = vrot.slane %v2359_v60, 4  ;;  %v2366_v17 = vsel %vm74_vm1, %v2356_v3, 0.0  ;;  %v2002_v42 = vadd.f32 %v2001_v15, %v2000_v6 }
 0x209   :  { %v2341_v47 = vadd.f32 %v2340_v1, %v2339_v56  ;;  %v2019_v20 = vsel %vm74_vm1, %v2017_v40, 0.0  ;;  %v2026_v36 = vsel %vm74_vm1, %v2018_v13, 0.0  ;;  %v2348_v58 = vadd.f32 %v2347_v24, %v2346_v26 }
 0x20a   :  { %v2063_v46 = vrot.slane %v3859_v62, 4  ;;  %v2020_v28 = vrot.slane %v2019_v20, 4  ;;  %v2027_v39 = vrot.slane %v2026_v36, 4  ;;  %v2009_v44 = vadd.f32 %v2008_v10, %v2007_v55 }
 0x20b   :  { %v2367_v5 = vrot.slane %v2366_v17, 4  ;;  %v2035_v53 = vrot.slane %v2017_v40, 4  ;;  %v2036_v38 = vrot.slane %v2018_v13, 4  ;;  %v2361_v30 = vadd.f32 %v2360_v43, %v2359_v60 }
 0x20c   :  { %v2064_v32 = vrot.slane %v3866_v27, 4  ;;  %v2021_v11 = vadd.f32 %v2020_v28, %v2019_v20  ;;  %v2028_v21 = vadd.f32 %v2027_v39, %v2026_v36  ;;  %v2079_v16 = vsel %vm243_vm6, %v2077_v35, %v2002_v42 }
 0x20d   :  { %v2342_v19 = vrot.slane %v2341_v47, 2  ;;  %v2039_v51 = vsel %vm74_vm1, %v2035_v53, 0.0  ;;  %v2046_v29 = vsel %vm74_vm1, %v2036_v38, 0.0  ;;  %v2349_v18 = vrot.slane %v2348_v58, 2 }
 0x20e   :  { %v2022_v12 = vrot.slane %v2021_v11, 2  ;;  %v2029_v59 = vrot.slane %v2028_v21, 2  ;;  %vm2377_vm9 = vcmp.lt.s32.totalorder %v2863_v4, 79  ;;  %v2080_v6 = vsel %vm243_vm6, %v2078_v14, %v2009_v44 }
 0x20f   :  { %v2368_v23 = vadd.f32 %v2367_v5, %v2366_v17  ;;  %v2040_v31 = vrot.slane %v2039_v51, 4  ;;  %v2047_v56 = vrot.slane %v2046_v29, 4  ;;  %v2362_v41 = vrot.slane %v2361_v30, 2 }
 0x210   :  { %v2023_v55 = vadd.f32 %v2022_v12, %v2021_v11  ;;  %v2030_v26 = vadd.f32 %v2029_v59, %v2028_v21  ;;  %vm2097_vm10 = vcmp.lt.s32.totalorder %v2863_v4, 94  ;;  %v2378_v49 = vsel %vm2377_vm9, %v3828_v25, %v2376_v61  ;;  %v2094_v11 = vpop.permute.xlu0 %2093 }
 0x211   :  { %v2041_v35 = vadd.f32 %v2040_v31, %v2039_v51  ;;  %v2048_v37 = vadd.f32 %v2047_v56, %v2046_v29  ;;  %v2379_v3 = vsel %vm2377_vm9, %v2376_v61, %v3828_v25  ;;  %v3880_v22 = vadd.f32 %v2342_v19, %v2341_v47  ;;  %v3898_v56 = vpop.permute.xlu2 %2136 }
 0x212   :  { %v3882_v50 = vadd.f32 %v2349_v18, %v2348_v58  ;;  %v2024_v15 = vrot.slane %v2023_v55, 1  ;;  %v2031_v14 = vrot.slane %v2030_v26, 1  ;;  %v2380_v24 = vmul.f32 %v2378_v49, %v2868_v7 }
 0x213   :  { %v2042_v1 = vrot.slane %v2041_v35, 2  ;;  %v2049_v60 = vrot.slane %v2048_v37, 2  ;;  %v2381_v10 = vmul.f32 %v2379_v3, %v2870_v8  ;;  %v3886_v40 = vadd.f32 %v2362_v41, %v2361_v30  ;;  %v2096_v30 = vpop.permute.xlu1 %2095 }
 0x214   :  { %v2369_v13 = vrot.slane %v2368_v23, 2  ;;  %v2025_v43 = vadd.f32 %v2024_v15, %v2023_v55  ;;  %v2032_v17 = vadd.f32 %v2031_v14, %v2030_v26  ;;  %v2382_v25 = vsel %vm74_vm1, %v2380_v24, 0.0 }
 0x215   :  { %v2043_v42 = vadd.f32 %v2042_v1, %v2041_v35  ;;  %v2050_v20 = vadd.f32 %v2049_v60, %v2048_v37  ;;  %v2389_v47 = vsel %vm74_vm1, %v2381_v10, 0.0  ;;  %v2383_v28 = vrot.slane %v2382_v25, 4 }
 0x216   :  { %v2059_v36 = vsel %vm246_vm8, %v2057_v33, %v2025_v43  ;;  %v2060_v58 = vsel %vm246_vm8, %v2058_v0, %v2032_v17  ;;  %v2390_v39 = vrot.slane %v2389_v47, 4  ;;  %v2398_v51 = vrot.slane %v2380_v24, 4 }
 0x217   :  { %v2044_v44 = vrot.slane %v2043_v42, 1  ;;  %v2051_v5 = vrot.slane %v2050_v20, 1  ;;  %v2067_v53 = vmul.f32 %v2063_v46, %v2059_v36  ;;  %v2068_v38 = vmul.f32 %v2064_v32, %v2060_v58 }
 0x218   :  { %v2384_v21 = vadd.f32 %v2383_v28, %v2382_v25  ;;  %v2391_v19 = vadd.f32 %v2390_v39, %v2389_v47  ;;  %v2399_v29 = vrot.slane %v2381_v10, 4  ;;  %v2402_v59 = vsel %vm74_vm1, %v2398_v51, 0.0 }
 0x219   :  { %v2045_v61 = vadd.f32 %v2044_v44, %v2043_v42  ;;  %v2052_v33 = vadd.f32 %v2051_v5, %v2050_v20  ;;  %v2071_v18 = vrot.slane %v2067_v53, 4  ;;  %v2072_v0 = vrot.slane %v2068_v38, 4  ;;  %v2419_v38 = vpop.permute.xlu2 %2418 }
 0x21a   :  { %v2385_v12 = vrot.slane %v2384_v21, 2  ;;  %v2409_v31 = vsel %vm74_vm1, %v2399_v29, 0.0  ;;  %v2098_v41 = vsel %vm2097_vm10, %v2094_v11, %v2096_v30  ;;  %v2403_v35 = vrot.slane %v2402_v59, 4 }
 0x21b   :  { %2075 = vst [vmem:[%s4086_s3 + $0x40] sm:$0xf0] %v2071_v18  ;;  %v2081_v55 = vsel %vm246_vm8, %v2079_v16, %v2045_v61  ;;  %v2082_v26 = vsel %vm246_vm8, %v2080_v6, %v2052_v33  ;;  %v2099_v37 = vsel %vm2097_vm10, %v2096_v30, %v2094_v11  ;;  %v2392_v15 = vrot.slane %v2391_v19, 2  ;;  %v2417_v30 = vpop.permute.xlu1 %2416 }
 0x21c   :  { %2076 = vst [vmem:[%s4086_s3 + $0x48] sm:$0xf0] %v2072_v0  ;;  %v2083_v49 = vmul.f32 %v2081_v55, %v2063_v46  ;;  %v2084_v3 = vmul.f32 %v2082_v26, %v2064_v32  ;;  %v2410_v14 = vrot.slane %v2409_v31, 4  ;;  %v2320_v16 = vadd.f32 %v2319_v54, %v3842_v45 }
 0x21d   :  { %v2327_v6 = vadd.f32 %v2326_v9, %v3849_v52  ;;  %v2370_v1 = vadd.f32 %v2369_v13, %v2368_v23  ;;  %v2100_v60 = vmul.f32 %v2098_v41, %v2868_v7  ;;  %v2386_v62 = vadd.f32 %v2385_v12, %v2384_v21 }
 0x21e   :  { %v2087_v24 = vrot.slane %v2083_v49, 4  ;;  %v2088_v10 = vrot.slane %v2084_v3, 4  ;;  %v2404_v46 = vadd.f32 %v2403_v35, %v2402_v59  ;;  %v2344_v27 = vrot.slane %v3880_v22, 1 }
 0x21f   :  { %v2351_v32 = vrot.slane %v3882_v50, 1  ;;  %v2101_v43 = vmul.f32 %v2099_v37, %v2870_v8  ;;  %v2302_v45 = vadd.f32 %v2301_v48, %v3845_v63  ;;  %v2364_v54 = vrot.slane %v3886_v40, 1 }
 0x220   :  { %2598 = vst [vmem:[%s4086_s3 + $0xb0] sm:$0xf0] %v2087_v24  ;;  %v2393_v52 = vadd.f32 %v2392_v15, %v2391_v19  ;;  %v2411_v9 = vadd.f32 %v2410_v14, %v2409_v31  ;;  %v2321_v23 = vrot.slane %v2320_v16, 1  ;;  %v2328_v13 = vrot.slane %v2327_v6, 1 }
 0x221   :  { %v2371_v17 = vrot.slane %v2370_v1, 1  ;;  %2599 = vst [vmem:[%s4086_s3 + $0xb8] sm:$0xf0] %v2088_v10  ;;  %v2102_v42 = vsel %vm74_vm1, %v2100_v60, 0.0  ;;  %v2309_v63 = vadd.f32 %v2308_v57, %v3847_v34  ;;  %v2387_v48 = vrot.slane %v2386_v62, 1 }
 0x222   :  { %v2405_v20 = vrot.slane %v2404_v46, 2  ;;  %v2118_v25 = vrot.slane %v2100_v60, 4  ;;  %v2345_v47 = vadd.f32 %v2344_v27, %v3880_v22  ;;  %v2352_v36 = vadd.f32 %v2351_v32, %v3882_v50 }
 0x223   :  { %v2109_v58 = vsel %vm74_vm1, %v2101_v43, 0.0  ;;  %v2119_v28 = vrot.slane %v2101_v43, 4  ;;  %v2365_v39 = vadd.f32 %v2364_v54, %v3886_v40  ;;  %v2394_v44 = vrot.slane %v2393_v52, 1  ;;  %v2459_v43 = vld [vmem:[#allocation6 + $0x50] sm:$0xf0] }
 0x224   :  { %v2412_v5 = vrot.slane %v2411_v9, 2  ;;  %v2103_v53 = vrot.slane %v2102_v42, 4  ;;  %v2322_v11 = vadd.f32 %v2321_v23, %v2320_v16  ;;  %v2329_v21 = vadd.f32 %v2328_v13, %v2327_v6  ;;  %v2139_v16 = vpop.permute.xlu0 %2138 }
 0x225   :  { %v2372_v34 = vadd.f32 %v2371_v17, %v2370_v1  ;;  %vm2420_vm11 = vcmp.lt.s32.totalorder %v2863_v4, 78  ;;  %v2388_v57 = vadd.f32 %v2387_v48, %v2386_v62  ;;  %v2406_v19 = vadd.f32 %v2405_v20, %v2404_v46 }
 0x226   :  { %v2110_v22 = vrot.slane %v2109_v58, 4  ;;  %v2122_v50 = vsel %vm74_vm1, %v2118_v25, 0.0  ;;  %v2461_v51 = vsel %vm240_vm5, %v2302_v45, %v2345_v47  ;;  %v2462_v29 = vsel %vm240_vm5, %v2309_v63, %v2352_v36 }
 0x227   :  { %v2129_v40 = vsel %vm74_vm1, %v2119_v28, 0.0  ;;  %v2421_v61 = vsel %vm2420_vm11, %v2417_v30, %v2419_v38  ;;  %v2483_v33 = vsel %vm240_vm5, %v2322_v11, %v2365_v39  ;;  %v2395_v18 = vadd.f32 %v2394_v44, %v2393_v52 }
 0x228   :  { %v2413_v0 = vadd.f32 %v2412_v5, %v2411_v9  ;;  %v2104_v12 = vadd.f32 %v2103_v53, %v2102_v42  ;;  %v2484_v59 = vsel %vm240_vm5, %v2329_v21, %v2372_v34  ;;  %v2123_v31 = vrot.slane %v2122_v50, 4  ;;  %v2460_v34 = vld [vmem:[#allocation6 + $0x58] sm:$0xf0] }
 0x229   :  { %v2422_v41 = vsel %vm2420_vm11, %v2419_v38, %v2417_v30  ;;  %v2423_v55 = vmul.f32 %v2421_v61, %v2868_v7  ;;  %v2407_v26 = vrot.slane %v2406_v19, 1  ;;  %v3953_v35 = vsel %vm243_vm6, %v2461_v51, %v2388_v57  ;;  %v3972_v61 = vpop.permute.xlu2 %2179 }
 0x22a   :  { %v2111_v37 = vadd.f32 %v2110_v22, %v2109_v58  ;;  %v2130_v49 = vrot.slane %v2129_v40, 4  ;;  %v2424_v3 = vmul.f32 %v2422_v41, %v2870_v8  ;;  %vm2140_vm12 = vcmp.lt.s32.totalorder %v2863_v4, 93 }
 0x22b   :  { %v2425_v15 = vsel %vm74_vm1, %v2423_v55, 0.0  ;;  %v2441_v14 = vrot.slane %v2423_v55, 4  ;;  %v2414_v6 = vrot.slane %v2413_v0, 1  ;;  %v2464_v1 = vsel %vm243_vm6, %v2462_v29, %v2395_v18  ;;  %v2502_v18 = vpop.permute.xlu1 %2501 }
 0x22c   :  { %v2105_v60 = vrot.slane %v2104_v12, 2  ;;  %v2426_v24 = vrot.slane %v2425_v15, 4  ;;  %v2124_v10 = vadd.f32 %v2123_v31, %v2122_v50  ;;  %v2432_v62 = vsel %vm74_vm1, %v2424_v3, 0.0 }
 0x22d   :  { %v2442_v46 = vrot.slane %v2424_v3, 4  ;;  %v2445_v27 = vsel %vm74_vm1, %v2441_v14, 0.0  ;;  %v2112_v32 = vrot.slane %v2111_v37, 2  ;;  %v2433_v54 = vrot.slane %v2432_v62, 4 }
 0x22e   :  { %v2427_v45 = vadd.f32 %v2426_v24, %v2425_v15  ;;  %v2141_v52 = vsel %vm2140_vm12, %v3898_v56, %v2139_v16  ;;  %v2408_v9 = vadd.f32 %v2407_v26, %v2406_v19  ;;  %v2131_v23 = vadd.f32 %v2130_v49, %v2129_v40 }
 0x22f   :  { %v2446_v13 = vrot.slane %v2445_v27, 4  ;;  %v2452_v17 = vsel %vm74_vm1, %v2442_v46, 0.0  ;;  %v2415_v42 = vadd.f32 %v2414_v6, %v2413_v0  ;;  %v2434_v48 = vadd.f32 %v2433_v54, %v2432_v62 }
 0x230   :  { %v2428_v63 = vrot.slane %v2427_v45, 2  ;;  %v2453_v20 = vrot.slane %v2452_v17, 4  ;;  %v2125_v25 = vrot.slane %v2124_v10, 2  ;;  %v2469_v47 = vrot.slane %v2459_v43, 4 }
 0x231   :  { %v2447_v36 = vadd.f32 %v2446_v13, %v2445_v27  ;;  %v2143_v58 = vmul.f32 %v2141_v52, %v2868_v7  ;;  %v2106_v28 = vadd.f32 %v2105_v60, %v2104_v12  ;;  %v2435_v44 = vrot.slane %v2434_v48, 2  ;;  %v2500_v13 = vpop.permute.xlu0 %2499 }
 0x232   :  { %v2429_v39 = vadd.f32 %v2428_v63, %v2427_v45  ;;  %v2454_v5 = vadd.f32 %v2453_v20, %v2452_v17  ;;  %v2113_v53 = vadd.f32 %v2112_v32, %v2111_v37  ;;  %v2132_v38 = vrot.slane %v2131_v23, 2 }
 0x233   :  { %v2448_v30 = vrot.slane %v2447_v36, 2  ;;  %v2142_v11 = vsel %vm2140_vm12, %v2139_v16, %v3898_v56  ;;  %v2485_v21 = vsel %vm243_vm6, %v2483_v33, %v2408_v9  ;;  %v2436_v19 = vadd.f32 %v2435_v44, %v2434_v48 }
 0x234   :  { %v2430_v57 = vrot.slane %v2429_v39, 1  ;;  %v2455_v22 = vrot.slane %v2454_v5, 2  ;;  %v2486_v50 = vsel %vm243_vm6, %v2484_v59, %v2415_v42  ;;  %v2126_v51 = vadd.f32 %v2125_v25, %v2124_v10 }
 0x235   :  { %v2449_v29 = vadd.f32 %v2448_v30, %v2447_v36  ;;  %v2145_v40 = vsel %vm74_vm1, %v2143_v58, 0.0  ;;  %v2437_v12 = vrot.slane %v2436_v19, 1  ;;  %v2144_v56 = vmul.f32 %v2142_v11, %v2870_v8  ;;  %v2225_v36 = vpop.permute.xlu2 %2224 }
 0x236   :  { %v2431_v0 = vadd.f32 %v2430_v57, %v2429_v39  ;;  %v2456_v31 = vadd.f32 %v2455_v22, %v2454_v5  ;;  %v2107_v41 = vrot.slane %v2106_v28, 1  ;;  %v2133_v33 = vadd.f32 %v2132_v38, %v2131_v23 }
 0x237   :  { %v2470_v55 = vrot.slane %v2460_v34, 4  ;;  %v2450_v26 = vrot.slane %v2449_v29, 1  ;;  %v2438_v37 = vadd.f32 %v2437_v12, %v2436_v19  ;;  %v2146_v3 = vrot.slane %v2145_v40, 4 }
 0x238   :  { %v2457_v49 = vrot.slane %v2456_v31, 1  ;;  %v2465_v59 = vsel %vm246_vm8, %v3953_v35, %v2431_v0  ;;  %v2114_v15 = vrot.slane %v2113_v53, 1  ;;  %v2127_v14 = vrot.slane %v2126_v51, 1 }
 0x239   :  { %v2451_v16 = vadd.f32 %v2450_v26, %v2449_v29  ;;  %v2473_v6 = vmul.f32 %v2469_v47, %v2465_v59  ;;  %v2466_v24 = vsel %vm246_vm8, %v2464_v1, %v2438_v37  ;;  %v2152_v10 = vsel %vm74_vm1, %v2144_v56, 0.0 }
 0x23a   :  { %v2458_v60 = vadd.f32 %v2457_v49, %v2456_v31  ;;  %v2161_v62 = vrot.slane %v2143_v58, 4  ;;  %v2474_v46 = vmul.f32 %v2470_v55, %v2466_v24  ;;  %v2162_v43 = vrot.slane %v2144_v56, 4  ;;  %v2223_v58 = vpop.permute.xlu1 %2222 }
 0x23b   :  { %v2477_v27 = vrot.slane %v2473_v6, 4  ;;  %v2487_v32 = vsel %vm246_vm8, %v2485_v21, %v2451_v16  ;;  %v2134_v45 = vrot.slane %v2133_v33, 1  ;;  %v2147_v52 = vadd.f32 %v2146_v3, %v2145_v40 }
 0x23c   :  { %v2488_v54 = vsel %vm246_vm8, %v2486_v50, %v2458_v60  ;;  %v2489_v35 = vmul.f32 %v2487_v32, %v2469_v47  ;;  %v2478_v9 = vrot.slane %v2474_v46, 4  ;;  %v2153_v1 = vrot.slane %v2152_v10, 4 }
 0x23d   :  { %2481 = vst [vmem:[%s4086_s3 + $0x50] sm:$0xf0] %v2477_v27  ;;  %v2490_v23 = vmul.f32 %v2488_v54, %v2470_v55  ;;  %vm2503_vm13 = vcmp.lt.s32.totalorder %v2863_v4, 77  ;;  %v3985_v17 = vadd.f32 %v2107_v41, %v2106_v28  ;;  %v3987_v42 = vadd.f32 %v2114_v15, %v2113_v53 }
 0x23e   :  { %v2493_v63 = vrot.slane %v2489_v35, 4  ;;  %v3989_v48 = vadd.f32 %v2127_v14, %v2126_v51  ;;  %2482 = vst [vmem:[%s4086_s3 + $0x58] sm:$0xf0] %v2478_v9  ;;  %v2165_v25 = vsel %vm74_vm1, %v2161_v62, 0.0  ;;  %v2172_v47 = vsel %vm74_vm1, %v2162_v43, 0.0 }
 0x23f   :  { %v2494_v20 = vrot.slane %v2490_v23, 4  ;;  %v3996_v39 = vadd.f32 %v2134_v45, %v2133_v33  ;;  %v2148_v28 = vrot.slane %v2147_v52, 2  ;;  %v2504_v44 = vsel %vm2503_vm13, %v2500_v13, %v2502_v18  ;;  %v2543_v14 = vld [vmem:[#allocation6 + $0x60] ss:$8 sm:$0x3] }
 0x240   :  { %2602 = vst [vmem:[%s4086_s3 + $0xc0] sm:$0xf0] %v2493_v63  ;;  %v2505_v5 = vsel %vm2503_vm13, %v2502_v18, %v2500_v13  ;;  %v2154_v53 = vadd.f32 %v2153_v1, %v2152_v10  ;;  %v2506_v38 = vmul.f32 %v2504_v44, %v2868_v7  ;;  %vm2226_vm14 = vcmp.lt.s32.totalorder %v2863_v4, 82 }
 0x241   :  { %2603 = vst [vmem:[%s4086_s3 + $0xc8] sm:$0xf0] %v2494_v20  ;;  %v2507_v30 = vmul.f32 %v2505_v5, %v2870_v8  ;;  %v2166_v11 = vrot.slane %v2165_v25, 4  ;;  %v2173_v21 = vrot.slane %v2172_v47, 4  ;;  %v2227_v34 = vsel %vm2226_vm14, %v2223_v58, %v2225_v36  ;;  %v2182_v20 = vpop.permute.xlu0 %2181 }
 0x242   :  { %v2228_v57 = vsel %vm2226_vm14, %v2225_v36, %v2223_v58  ;;  %v2508_v19 = vsel %vm74_vm1, %v2506_v38, 0.0  ;;  %v2524_v50 = vrot.slane %v2506_v38, 4  ;;  %v2229_v18 = vmul.f32 %v2227_v34, %v2868_v7 }
 0x243   :  { %v2515_v22 = vsel %vm74_vm1, %v2507_v30, 0.0  ;;  %v2525_v51 = vrot.slane %v2507_v30, 4  ;;  %v2509_v29 = vrot.slane %v2508_v19, 4  ;;  %v2230_v0 = vmul.f32 %v2228_v57, %v2870_v8 }
 0x244   :  { %v2516_v40 = vrot.slane %v2515_v22, 4  ;;  %v4015_v12 = vadd.f32 %v2148_v28, %v2147_v52  ;;  %v2155_v31 = vrot.slane %v2154_v53, 2  ;;  %v2528_v56 = vsel %vm74_vm1, %v2524_v50, 0.0 }
 0x245   :  { %v2535_v41 = vsel %vm74_vm1, %v2525_v51, 0.0  ;;  %v2510_v33 = vadd.f32 %v2509_v29, %v2508_v19  ;;  %v2529_v26 = vrot.slane %v2528_v56, 4  ;;  %v2231_v49 = vsel %vm74_vm1, %v2229_v18, 0.0 }
 0x246   :  { %v2517_v55 = vadd.f32 %v2516_v40, %v2515_v22  ;;  %v2536_v37 = vrot.slane %v2535_v41, 4  ;;  %v2238_v59 = vsel %vm74_vm1, %v2230_v0, 0.0  ;;  %v2247_v3 = vrot.slane %v2229_v18, 4 }
 0x247   :  { %v2248_v15 = vrot.slane %v2230_v0, 4  ;;  %v2511_v16 = vrot.slane %v2510_v33, 2  ;;  %v2530_v60 = vadd.f32 %v2529_v26, %v2528_v56  ;;  %v2167_v10 = vadd.f32 %v2166_v11, %v2165_v25 }
 0x248   :  { %v2518_v6 = vrot.slane %v2517_v55, 2  ;;  %v2537_v24 = vadd.f32 %v2536_v37, %v2535_v41  ;;  %v2232_v62 = vrot.slane %v2231_v49, 4  ;;  %v2251_v46 = vsel %vm74_vm1, %v2247_v3, 0.0 }
 0x249   :  { %v2258_v27 = vsel %vm74_vm1, %v2248_v15, 0.0  ;;  %v2512_v32 = vadd.f32 %v2511_v16, %v2510_v33  ;;  %v2531_v45 = vrot.slane %v2530_v60, 2  ;;  %v2174_v35 = vadd.f32 %v2173_v21, %v2172_v47 }
 0x24a   :  { %v2519_v43 = vadd.f32 %v2518_v6, %v2517_v55  ;;  %v2538_v54 = vrot.slane %v2537_v24, 2  ;;  %v2546_v52 = vperm.slane %v2543_v14, 1  ;;  %v2239_v9 = vrot.slane %v2238_v59, 4 }
 0x24b   :  { %vm2183_vm15 = vcmp.lt.s32.totalorder %v2863_v4, 83  ;;  %v2513_v23 = vrot.slane %v2512_v32, 1  ;;  %v2532_v13 = vadd.f32 %v2531_v45, %v2530_v60  ;;  %v2545_v25 = vperm.slane %v2543_v14, 0 }
 0x24c   :  { %v2520_v1 = vrot.slane %v2519_v43, 1  ;;  %v2539_v63 = vadd.f32 %v2538_v54, %v2537_v24  ;;  %v2233_v36 = vadd.f32 %v2232_v62, %v2231_v49  ;;  %v2252_v58 = vrot.slane %v2251_v46, 4 }
 0x24d   :  { %v2259_v28 = vrot.slane %v2258_v27, 4  ;;  %v2514_v44 = vadd.f32 %v2513_v23, %v2512_v32  ;;  %v2533_v38 = vrot.slane %v2532_v13, 1  ;;  %v2150_v11 = vrot.slane %v4015_v12, 1 }
 0x24e   :  { %v2521_v5 = vadd.f32 %v2520_v1, %v2519_v43  ;;  %v2540_v30 = vrot.slane %v2539_v63, 1  ;;  %v2156_v47 = vadd.f32 %v2155_v31, %v2154_v53  ;;  %v2240_v21 = vadd.f32 %v2239_v9, %v2238_v59 }
 0x24f   :  { %v2184_v34 = vsel %vm2183_vm15, %v3972_v61, %v2182_v20  ;;  %vm4029_vm0 = vcmp.lt.s32.totalorder %v67_v2, 256  ;;  %v2534_v19 = vadd.f32 %v2533_v38, %v2532_v13  ;;  %v2234_v51 = vrot.slane %v2233_v36, 2 }
 0x250   :  { %v2541_v22 = vadd.f32 %v2540_v30, %v2539_v63  ;;  %v2550_v50 = vmul.f32 %v2546_v52, %v2521_v5  ;;  %v2253_v29 = vadd.f32 %v2252_v58, %v2251_v46  ;;  %v2260_v40 = vadd.f32 %v2259_v28, %v2258_v27 }
 0x251   :  { %v2185_v53 = vsel %vm2183_vm15, %v2182_v20, %v3972_v61  ;;  %v2549_v18 = vmul.f32 %v2545_v25, %v2514_v44  ;;  %v2186_v56 = vmul.f32 %v2184_v34, %v2868_v7  ;;  %v2168_v41 = vrot.slane %v2167_v10, 2 }
 0x252   :  { %v2553_v0 = vrot.slane %v2550_v50, 7  ;;  %v2564_v31 = vmul.f32 %v2546_v52, %v2541_v22  ;;  %v2175_v2 = vrot.slane %v2174_v35, 2  ;;  %v2563_v33 = vmul.f32 %v2545_v25, %v2534_v19 }
 0x253   :  { %v2241_v55 = vrot.slane %v2240_v21, 2  ;;  %v2187_v49 = vmul.f32 %v2185_v53, %v2870_v8  ;;  %v2188_v59 = vsel %vm74_vm1, %v2186_v56, 0.0  ;;  %v2235_v4 = vadd.f32 %v2234_v51, %v2233_v36 }
 0x254   :  { %v2554_v26 = vsel %vm240_vm5, %v2549_v18, %v2553_v0  ;;  %v2567_v37 = vrot.slane %v2564_v31, 7  ;;  %v2254_v61 = vrot.slane %v2253_v29, 2  ;;  %v2189_v7 = vrot.slane %v2188_v59, 4 }
 0x255   :  { %2604 = vst.msk [vmem:[%s4086_s3 + $0x60] ss:$8 sm:$0x3] %vm4029_vm0, %v2554_v26  ;;  %v2204_v3 = vrot.slane %v2186_v56, 4  ;;  %v2261_v14 = vrot.slane %v2260_v40, 2  ;;  %v2195_v16 = vsel %vm74_vm1, %v2187_v49, 0.0  ;;  %v2169_v60 = vadd.f32 %v2168_v41, %v2167_v10 }
 0x256   :  { %v2568_v15 = vsel %vm240_vm5, %v2563_v33, %v2567_v37  ;;  %v2205_v6 = vrot.slane %v2187_v49, 4  ;;  %v2190_v8 = vadd.f32 %v2189_v7, %v2188_v59  ;;  %v2196_v24 = vrot.slane %v2195_v16, 4 }
 0x257   :  { %2605 = vst.msk [vmem:[%s4086_s3 + $0xd0] ss:$8 sm:$0x3] %vm4029_vm0, %v2568_v15  ;;  %v2208_v62 = vsel %vm74_vm1, %v2204_v3, 0.0  ;;  %v2176_v46 = vadd.f32 %v2175_v2, %v2174_v35  ;;  %v2242_v27 = vadd.f32 %v2241_v55, %v2240_v21  ;;  %v2255_v45 = vadd.f32 %v2254_v61, %v2253_v29  ;;  %v2266_v55 = vld [vmem:[#allocation6 + $0x58] sm:$0xf] }
 0x258   :  { %v2209_v32 = vrot.slane %v2208_v62, 4  ;;  %v2215_v43 = vsel %vm74_vm1, %v2205_v6, 0.0  ;;  %v2191_v54 = vrot.slane %v2190_v8, 2  ;;  %v2197_v52 = vadd.f32 %v2196_v24, %v2195_v16 }
 0x259   :  { %v2216_v9 = vrot.slane %v2215_v43, 4  ;;  %v2157_v10 = vrot.slane %v2156_v47, 1  ;;  %v2236_v23 = vrot.slane %v2235_v4, 1  ;;  %v2262_v1 = vadd.f32 %v2261_v14, %v2260_v40 }
 0x25a   :  { %v2210_v13 = vadd.f32 %v2209_v32, %v2208_v62  ;;  %v2170_v63 = vrot.slane %v2169_v60, 1  ;;  %v2192_v20 = vadd.f32 %v2191_v54, %v2190_v8  ;;  %v2198_v25 = vrot.slane %v2197_v52, 2 }
 0x25b   :  { %v2217_v36 = vadd.f32 %v2216_v9, %v2215_v43  ;;  %v2151_v58 = vadd.f32 %v2150_v11, %v4015_v12  ;;  %v2177_v28 = vrot.slane %v2176_v46, 1  ;;  %v2243_v35 = vrot.slane %v2242_v27, 1  ;;  %v2265_v11 = vld [vmem:[#allocation6 + $0x50] sm:$0xf] }
 0x25c   :  { %v2211_v44 = vrot.slane %v2210_v13, 2  ;;  %v2256_v5 = vrot.slane %v2255_v45, 1  ;;  %v2193_v38 = vrot.slane %v2192_v20, 1  ;;  %v2199_v30 = vadd.f32 %v2198_v25, %v2197_v52 }
 0x25d   :  { %v2218_v21 = vrot.slane %v2217_v36, 2  ;;  %v2158_v34 = vadd.f32 %v2157_v10, %v2156_v47  ;;  %v2237_v57 = vadd.f32 %v2236_v23, %v2235_v4  ;;  %v2263_v19 = vrot.slane %v2262_v1, 1 }
 0x25e   :  { %v2212_v22 = vadd.f32 %v2211_v44, %v2210_v13  ;;  %v2171_v50 = vadd.f32 %v2170_v63, %v2169_v60  ;;  %v2194_v51 = vadd.f32 %v2193_v38, %v2192_v20  ;;  %v2200_v29 = vrot.slane %v2199_v30, 1 }
 0x25f   :  { %v2219_v40 = vadd.f32 %v2218_v21, %v2217_v36  ;;  %v2178_v53 = vadd.f32 %v2177_v28, %v2176_v46  ;;  %v2267_v18 = vsel %vm240_vm5, %v3985_v17, %v2151_v58  ;;  %v2244_v12 = vadd.f32 %v2243_v35, %v2242_v27 }
 0x260   :  { %v2213_v0 = vrot.slane %v2212_v22, 1  ;;  %v2257_v31 = vadd.f32 %v2256_v5, %v2255_v45  ;;  %v2201_v56 = vadd.f32 %v2200_v29, %v2199_v30  ;;  %v2269_v2 = vsel %vm243_vm6, %v2267_v18, %v2194_v51 }
 0x261   :  { %v2220_v41 = vrot.slane %v2219_v40, 1  ;;  %v2268_v47 = vsel %vm240_vm5, %v3987_v42, %v2158_v34  ;;  %v2264_v33 = vadd.f32 %v2263_v19, %v2262_v1  ;;  %v2271_v37 = vsel %vm246_vm8, %v2269_v2, %v2237_v57 }
 0x262   :  { %v2214_v26 = vadd.f32 %v2213_v0, %v2212_v22  ;;  %v2277_v49 = vsel %vm240_vm5, %v3989_v48, %v2171_v50  ;;  %v2270_v59 = vsel %vm243_vm6, %v2268_v47, %v2201_v56  ;;  %v2273_v4 = vmul.f32 %v2271_v37, %v2265_v11 }
 0x263   :  { %v2221_v17 = vadd.f32 %v2220_v41, %v2219_v40  ;;  %v2278_v61 = vsel %vm240_vm5, %v3996_v39, %v2178_v53  ;;  %v2272_v7 = vsel %vm246_vm8, %v2270_v59, %v2244_v12 }
 0x264   :  { %v2279_v3 = vsel %vm243_vm6, %v2277_v49, %v2214_v26  ;;  %v2274_v42 = vmul.f32 %v2272_v7, %v2266_v55  ;;  %2275 = vst [vmem:[%s4086_s3 + $0x50] sm:$0xf] %v2273_v4 }
 0x265   :  { %v2280_v15 = vsel %vm243_vm6, %v2278_v61, %v2221_v17  ;;  %v2281_v48 = vsel %vm246_vm8, %v2279_v3, %v2257_v31 }
 0x266   :  { %v2282_v14 = vsel %vm246_vm8, %v2280_v15, %v2264_v33  ;;  %v2283_v16 = vmul.f32 %v2281_v48, %v2265_v11  ;;  %2276 = vst [vmem:[%s4086_s3 + $0x58] sm:$0xf] %v2274_v42 }
 0x267   :  { %v2284_v39 = vmul.f32 %v2282_v14, %v2266_v55 }
 0x268   :  { %2600 = vst [vmem:[%s4086_s3 + $0xc0] sm:$0xf] %v2283_v16 }
 0x269   :  { %2601 = vst [vmem:[%s4086_s3 + $0xc8] sm:$0xf] %v2284_v39 }
 0x26a   :  { %2577 = vsyncpa [#allocation3], 1 }
 0x26b   :  { %2578 = vsyncpa [#allocation5], 1 }

</bundles_post_ra>
